<compile_context>
chip_gen: v7x
topology: tpu7x:2x2x1
jax: 0.10.0
libtpu: 0.0.40
codegen_flags: <defaults>
</compile_context>

<pallas_src>
import jax
import jax.numpy as jnp
from jax import lax
from jax.experimental import pallas as pl
from jax.experimental.pallas import tpu as pltpu


def _self_attention_kernel(x_ref, wk_t_ref, wq_t_ref, wih_t_ref, whh_t_ref,
                           b_ref, wout_t_ref, y_ref, att_ref,
                           gates_scr, v_scr):
    n, m = x_ref.shape  # static Python ints

    x = x_ref[...]                                                    # (n, m)

    # Linear projections (MXU). Weights are pre-transposed: contract directly.
    K = jnp.dot(x, wk_t_ref[...], preferred_element_type=jnp.float32)   # (n, o)
    Q = jnp.dot(x, wq_t_ref[...], preferred_element_type=jnp.float32) * 0.06

    # LSTM: input-to-hidden projection for all timesteps at once (one big MXU
    # matmul). Gate layout is already permuted to [i | f | o | g] and the two
    # bias vectors are pre-summed in the wrapper.
    gates_scr[...] = (jnp.dot(x, wih_t_ref[...],
                              preferred_element_type=jnp.float32)
                      + b_ref[...])                                   # (n, 4m)

    whh_t = whh_t_ref[...]                                            # (m, 4m)

    def lstm_step(t, carry):
        h, c = carry                                                  # (1, m) values
        gates = gates_scr[pl.ds(t, 1), :] + jnp.dot(
            h, whh_t, preferred_element_type=jnp.float32)             # (1, 4m)
        ifo = jax.nn.sigmoid(gates[:, :3 * m])     # one contiguous sigmoid sweep
        g_g = jnp.tanh(gates[:, 3 * m:])
        i_g = ifo[:, 0 * m:1 * m]
        f_g = ifo[:, 1 * m:2 * m]
        o_g = ifo[:, 2 * m:3 * m]
        c_new = f_g * c + i_g * g_g
        h_new = o_g * jnp.tanh(c_new)
        v_scr[pl.ds(t, 1), :] = h_new
        return (h_new, c_new)

    h0 = jnp.zeros((1, m), jnp.float32)
    c0 = jnp.zeros((1, m), jnp.float32)
    lax.fori_loop(0, n, lstm_step, (h0, c0), unroll=True)
    V = v_scr[...]                                                    # (n, m)

    # logits = Q @ K.T without materializing an explicit transpose of K.
    logits = lax.dot_general(Q, K, (((1,), (1,)), ((), ())),
                             preferred_element_type=jnp.float32)      # (n, n)
    logits = logits - jnp.max(logits, axis=-1, keepdims=True)
    e = jnp.exp(logits)
    inv = pl.reciprocal(jnp.sum(e, axis=-1, keepdims=True), approx=False)
    att = e * inv
    att_ref[...] = att

    # y = att.T @ V via a transposed-LHS contraction (axis 0 with axis 0).
    y = lax.dot_general(att, V, (((0,), (0,)), ((), ())),
                        preferred_element_type=jnp.float32)           # (n, m)
    y_ref[...] = jnp.dot(y, wout_t_ref[...],
                         preferred_element_type=jnp.float32)


def self_attention_forward(x, params):
    """x: (n, m) float32. params: dict of PyTorch-layout weights. Returns (y, att)."""
    n, m = x.shape
    out_size = params["Wk"].shape[0]

    # Gate-row permutation: PyTorch LSTM stacks rows as [i | f | g | o];
    # rearrange to [i | f | o | g] so the kernel can do one sigmoid + one tanh.
    perm = jnp.concatenate([
        jnp.arange(0 * m, 1 * m), jnp.arange(1 * m, 2 * m),
        jnp.arange(3 * m, 4 * m), jnp.arange(2 * m, 3 * m)])

    wih_t = jnp.transpose(params["Wih"][perm, :])        # (m, 4m)
    whh_t = jnp.transpose(params["Whh"][perm, :])        # (m, 4m)
    b = (params["bih"] + params["bhh"])[perm].reshape(1, 4 * m)

    wk_t = jnp.transpose(params["Wk"])                   # (m, out)
    wq_t = jnp.transpose(params["Wq"])                   # (m, out)
    wout_t = jnp.transpose(params["Wout"])               # (out, m)

    vmem_spec = pl.BlockSpec(memory_space=pltpu.MemorySpace.VMEM)

    itemsize = 4
    io_bytes = itemsize * (x.size + wk_t.size + wq_t.size + wih_t.size
                           + whh_t.size + b.size + wout_t.size
                           + n * m + n * n)
    scratch_bytes = itemsize * (n * 4 * m + n * m)
    vmem_limit = int(min(64 * 1024 * 1024,
                         max(8 * 1024 * 1024, 2 * (io_bytes + scratch_bytes))))

    flops = (2 * n * m * out_size * 2          # K, Q projections
             + 2 * n * m * 4 * m               # x @ Wih^T
             + n * 2 * m * 4 * m               # recurrence h @ Whh^T
             + 12 * n * m                      # gate elementwise
             + 2 * n * n * out_size            # Q K^T
             + 6 * n * n                       # softmax elementwise
             + 2 * n * n * m                   # att^T V
             + 2 * n * m * out_size)           # output linear
    transcendentals = 5 * n * m + n * n

    return pl.pallas_call(
        _self_attention_kernel,
        out_shape=(
            jax.ShapeDtypeStruct((n, m), jnp.float32),   # y
            jax.ShapeDtypeStruct((n, n), jnp.float32),   # att_weights_
        ),
        in_specs=[vmem_spec] * 7,
        out_specs=(vmem_spec, vmem_spec),
        scratch_shapes=[
            pltpu.VMEM((n, 4 * m), jnp.float32),   # x gates (all timesteps)
            pltpu.VMEM((n, m), jnp.float32),       # LSTM output sequence V
        ],
        compiler_params=pltpu.CompilerParams(vmem_limit_bytes=vmem_limit),
        cost_estimate=pl.CostEstimate(flops=flops,
                                      transcendentals=transcendentals,
                                      bytes_accessed=io_bytes),
    )(x, wk_t, wq_t, wih_t, whh_t, b, wout_t)


def reference_forward(x, params):
    """Pure-JAX reference matching the PyTorch forward (eval mode)."""
    m = x.shape[1]
    K = x @ params["Wk"].T
    Q = (x @ params["Wq"].T) * 0.06

    def lstm_step(carry, xt):
        h, c = carry
        gates = params["Wih"] @ xt + params["bih"] + params["Whh"] @ h + params["bhh"]
        i_g, f_g, g_g, o_g = jnp.split(gates, 4)
        i_g = jax.nn.sigmoid(i_g)
        f_g = jax.nn.sigmoid(f_g)
        o_g = jax.nn.sigmoid(o_g)
        g_g = jnp.tanh(g_g)
        c_new = f_g * c + i_g * g_g
        h_new = o_g * jnp.tanh(c_new)
        return (h_new, c_new), h_new

    (_, _), V = lax.scan(lstm_step, (jnp.zeros(m), jnp.zeros(m)), x)
    logits = Q @ K.T
    att = jax.nn.softmax(logits, axis=-1)
    y = att.T @ V
    y = y @ params["Wout"].T
    return y, att


def init_params(key, input_size, output_size):
    m, out = input_size, output_size
    ks = jax.random.split(key, 6)
    s_lin = 1.0 / jnp.sqrt(m)
    s_lstm = 1.0 / jnp.sqrt(m)
    u = lambda k, shape, s: jax.random.uniform(
        k, shape, dtype=jnp.float32, minval=-s, maxval=s)
    return {
        "Wk": u(ks[0], (out, m), s_lin),
        "Wq": u(ks[1], (out, m), s_lin),
        "Wout": u(ks[2], (m, out), 1.0 / jnp.sqrt(out)),
        "Wih": u(ks[3], (4 * m, m), s_lstm),
        "Whh": u(ks[4], (4 * m, m), s_lstm),
        "bih": u(ks[5], (4 * m,), s_lstm),
        "bhh": jnp.zeros((4 * m,), jnp.float32),
    }


if __name__ == "__main__":
    # Lane-dense small shapes: n multiple of 8, m = out_size multiple of 128.
    n, m = 16, 128  # seq_len, input_size == output_size
    key = jax.random.PRNGKey(0)
    kx, kp = jax.random.split(key)
    x = jax.random.normal(kx, (n, m), dtype=jnp.float32)
    params = init_params(kp, m, m)

    y, att = jax.block_until_ready(self_attention_forward(x, params))
    y_ref, att_ref = reference_forward(x, params)

    assert y.shape == (n, m) and att.shape == (n, n)
    assert jnp.allclose(y, y_ref, atol=1e-4, rtol=1e-4)
    assert jnp.allclose(att, att_ref, atol=1e-4, rtol=1e-4)
    print("KERNEL_OK")
</pallas_src>

<mosaic_0001>
module attributes {stable_mosaic.version = 11 : i64} {
  func.func @_self_attention_kernel(%arg0: memref<16x128xf32, #tpu.memory_space<vmem>>, %arg1: memref<128x128xf32, #tpu.memory_space<vmem>>, %arg2: memref<128x128xf32, #tpu.memory_space<vmem>>, %arg3: memref<128x512xf32, #tpu.memory_space<vmem>>, %arg4: memref<128x512xf32, #tpu.memory_space<vmem>>, %arg5: memref<1x512xf32, #tpu.memory_space<vmem>>, %arg6: memref<128x128xf32, #tpu.memory_space<vmem>>, %arg7: memref<16x128xf32, #tpu.memory_space<vmem>>, %arg8: memref<16x16xf32, #tpu.memory_space<vmem>>, %arg9: memref<16x512xf32, #tpu.memory_space<vmem>>, %arg10: memref<16x128xf32, #tpu.memory_space<vmem>>) attributes {dimension_semantics = [], scalar_prefetch = 0 : i64, scratch_operands = 2 : i64, tpu.core_type = #tpu.core_type<tc>} {
    %c0 = arith.constant 0 : index
    %c0_0 = arith.constant 0 : index
    %0 = vector.load %arg0[%c0, %c0_0] : memref<16x128xf32, #tpu.memory_space<vmem>>, vector<16x128xf32>
    %c0_1 = arith.constant 0 : index
    %c0_2 = arith.constant 0 : index
    %1 = vector.load %arg1[%c0_1, %c0_2] : memref<128x128xf32, #tpu.memory_space<vmem>>, vector<128x128xf32>
    %cst = arith.constant dense<0.000000e+00> : vector<16x128xf32>
    %2 = tpu.matmul %0, %1, %cst {dimension_numbers = #tpu.dot_dimension_numbers<[1], [0], [0], [1], [0, 0, 1, 1], [], []>} : vector<16x128xf32>, vector<128x128xf32>, vector<16x128xf32> -> vector<16x128xf32>
    %c0_3 = arith.constant 0 : index
    %c0_4 = arith.constant 0 : index
    %3 = vector.load %arg2[%c0_3, %c0_4] : memref<128x128xf32, #tpu.memory_space<vmem>>, vector<128x128xf32>
    %cst_5 = arith.constant dense<0.000000e+00> : vector<16x128xf32>
    %4 = tpu.matmul %0, %3, %cst_5 {dimension_numbers = #tpu.dot_dimension_numbers<[1], [0], [0], [1], [0, 0, 1, 1], [], []>} : vector<16x128xf32>, vector<128x128xf32>, vector<16x128xf32> -> vector<16x128xf32>
    %cst_6 = arith.constant 6.000000e-02 : f32
    %5 = vector.broadcast %cst_6 : f32 to vector<16x128xf32>
    %6 = arith.mulf %4, %5 : vector<16x128xf32>
    %c0_7 = arith.constant 0 : index
    %c0_8 = arith.constant 0 : index
    %7 = vector.load %arg3[%c0_7, %c0_8] : memref<128x512xf32, #tpu.memory_space<vmem>>, vector<128x512xf32>
    %cst_9 = arith.constant dense<0.000000e+00> : vector<16x512xf32>
    %8 = tpu.matmul %0, %7, %cst_9 {dimension_numbers = #tpu.dot_dimension_numbers<[1], [0], [0], [1], [0, 0, 1, 1], [], []>} : vector<16x128xf32>, vector<128x512xf32>, vector<16x512xf32> -> vector<16x512xf32>
    %c0_10 = arith.constant 0 : index
    %c0_11 = arith.constant 0 : index
    %9 = vector.load %arg5[%c0_10, %c0_11] : memref<1x512xf32, #tpu.memory_space<vmem>>, vector<1x512xf32>
    %10 = vector.broadcast %9 : vector<1x512xf32> to vector<16x512xf32>
    %11 = arith.addf %8, %10 : vector<16x512xf32>
    %c0_12 = arith.constant 0 : index
    %c0_13 = arith.constant 0 : index
    %12 = vector.load %arg9[%c0_12, %c0_13] : memref<16x512xf32, #tpu.memory_space<vmem>>, vector<16x512xf32>
    tpu.vector_store %arg9[%c0_12, %c0_13], %11 {strides = array<i32>} : memref<16x512xf32, #tpu.memory_space<vmem>>, vector<16x512xf32>,
    %c0_14 = arith.constant 0 : index
    %c0_15 = arith.constant 0 : index
    %13 = vector.load %arg4[%c0_14, %c0_15] : memref<128x512xf32, #tpu.memory_space<vmem>>, vector<128x512xf32>
    %cst_16 = arith.constant 0.000000e+00 : f32
    %14 = vector.broadcast %cst_16 : f32 to vector<1x128xf32>
    %cst_17 = arith.constant 0.000000e+00 : f32
    %15 = vector.broadcast %cst_17 : f32 to vector<1x128xf32>
    %c0_i32 = arith.constant 0 : i32
    %16 = arith.index_cast %c0_i32 : i32 to index
    %c0_18 = arith.constant 0 : index
    %17 = vector.load %arg9[%16, %c0_18] : memref<16x512xf32, #tpu.memory_space<vmem>>, vector<1x512xf32>
    %cst_19 = arith.constant dense<0.000000e+00> : vector<1x512xf32>
    %18 = tpu.matmul %14, %13, %cst_19 {dimension_numbers = #tpu.dot_dimension_numbers<[1], [0], [0], [1], [0, 0, 1, 1], [], []>} : vector<1x128xf32>, vector<128x512xf32>, vector<1x512xf32> -> vector<1x512xf32>
    %19 = arith.addf %17, %18 : vector<1x512xf32>
    %20 = vector.extract_strided_slice %19 {offsets = [0, 0], sizes = [1, 384], strides = [1, 1]} : vector<1x512xf32> to vector<1x384xf32>
    %21 = arith.negf %20 : vector<1x384xf32>
    %22 = math.exp %21 : vector<1x384xf32>
    %cst_20 = arith.constant 1.000000e+00 : f32
    %23 = vector.broadcast %cst_20 : f32 to vector<1x384xf32>
    %24 = arith.addf %23, %22 : vector<1x384xf32>
    %25 = arith.divf %23, %24 : vector<1x384xf32>
    %26 = vector.extract_strided_slice %19 {offsets = [0, 384], sizes = [1, 128], strides = [1, 1]} : vector<1x512xf32> to vector<1x128xf32>
    %27 = math.tanh %26 : vector<1x128xf32>
    %28 = vector.extract_strided_slice %25 {offsets = [0, 0], sizes = [1, 128], strides = [1, 1]} : vector<1x384xf32> to vector<1x128xf32>
    %29 = vector.extract_strided_slice %25 {offsets = [0, 128], sizes = [1, 128], strides = [1, 1]} : vector<1x384xf32> to vector<1x128xf32>
    %30 = vector.extract_strided_slice %25 {offsets = [0, 256], sizes = [1, 128], strides = [1, 1]} : vector<1x384xf32> to vector<1x128xf32>
    %31 = arith.mulf %29, %15 : vector<1x128xf32>
    %32 = arith.mulf %28, %27 : vector<1x128xf32>
    %33 = arith.addf %31, %32 : vector<1x128xf32>
    %34 = math.tanh %33 : vector<1x128xf32>
    %35 = arith.mulf %30, %34 : vector<1x128xf32>
    %36 = arith.index_cast %c0_i32 : i32 to index
    %c0_21 = arith.constant 0 : index
    %37 = vector.load %arg10[%36, %c0_21] : memref<16x128xf32, #tpu.memory_space<vmem>>, vector<1x128xf32>
    tpu.vector_store %arg10[%36, %c0_21], %35 {strides = array<i32>} : memref<16x128xf32, #tpu.memory_space<vmem>>, vector<1x128xf32>,
    %c1_i32 = arith.constant 1 : i32
    %38 = arith.index_cast %c1_i32 : i32 to index
    %c0_22 = arith.constant 0 : index
    %39 = vector.load %arg9[%38, %c0_22] : memref<16x512xf32, #tpu.memory_space<vmem>>, vector<1x512xf32>
    %cst_23 = arith.constant dense<0.000000e+00> : vector<1x512xf32>
    %40 = tpu.matmul %35, %13, %cst_23 {dimension_numbers = #tpu.dot_dimension_numbers<[1], [0], [0], [1], [0, 0, 1, 1], [], []>} : vector<1x128xf32>, vector<128x512xf32>, vector<1x512xf32> -> vector<1x512xf32>
    %41 = arith.addf %39, %40 : vector<1x512xf32>
    %42 = vector.extract_strided_slice %41 {offsets = [0, 0], sizes = [1, 384], strides = [1, 1]} : vector<1x512xf32> to vector<1x384xf32>
    %43 = arith.negf %42 : vector<1x384xf32>
    %44 = math.exp %43 : vector<1x384xf32>
    %cst_24 = arith.constant 1.000000e+00 : f32
    %45 = vector.broadcast %cst_24 : f32 to vector<1x384xf32>
    %46 = arith.addf %45, %44 : vector<1x384xf32>
    %47 = arith.divf %45, %46 : vector<1x384xf32>
    %48 = vector.extract_strided_slice %41 {offsets = [0, 384], sizes = [1, 128], strides = [1, 1]} : vector<1x512xf32> to vector<1x128xf32>
    %49 = math.tanh %48 : vector<1x128xf32>
    %50 = vector.extract_strided_slice %47 {offsets = [0, 0], sizes = [1, 128], strides = [1, 1]} : vector<1x384xf32> to vector<1x128xf32>
    %51 = vector.extract_strided_slice %47 {offsets = [0, 128], sizes = [1, 128], strides = [1, 1]} : vector<1x384xf32> to vector<1x128xf32>
    %52 = vector.extract_strided_slice %47 {offsets = [0, 256], sizes = [1, 128], strides = [1, 1]} : vector<1x384xf32> to vector<1x128xf32>
    %53 = arith.mulf %51, %33 : vector<1x128xf32>
    %54 = arith.mulf %50, %49 : vector<1x128xf32>
    %55 = arith.addf %53, %54 : vector<1x128xf32>
    %56 = math.tanh %55 : vector<1x128xf32>
    %57 = arith.mulf %52, %56 : vector<1x128xf32>
    %58 = arith.index_cast %c1_i32 : i32 to index
    %c0_25 = arith.constant 0 : index
    %59 = vector.load %arg10[%58, %c0_25] : memref<16x128xf32, #tpu.memory_space<vmem>>, vector<1x128xf32>
    tpu.vector_store %arg10[%58, %c0_25], %57 {strides = array<i32>} : memref<16x128xf32, #tpu.memory_space<vmem>>, vector<1x128xf32>,
    %c2_i32 = arith.constant 2 : i32
    %60 = arith.index_cast %c2_i32 : i32 to index
    %c0_26 = arith.constant 0 : index
    %61 = vector.load %arg9[%60, %c0_26] : memref<16x512xf32, #tpu.memory_space<vmem>>, vector<1x512xf32>
    %cst_27 = arith.constant dense<0.000000e+00> : vector<1x512xf32>
    %62 = tpu.matmul %57, %13, %cst_27 {dimension_numbers = #tpu.dot_dimension_numbers<[1], [0], [0], [1], [0, 0, 1, 1], [], []>} : vector<1x128xf32>, vector<128x512xf32>, vector<1x512xf32> -> vector<1x512xf32>
    %63 = arith.addf %61, %62 : vector<1x512xf32>
    %64 = vector.extract_strided_slice %63 {offsets = [0, 0], sizes = [1, 384], strides = [1, 1]} : vector<1x512xf32> to vector<1x384xf32>
    %65 = arith.negf %64 : vector<1x384xf32>
    %66 = math.exp %65 : vector<1x384xf32>
    %cst_28 = arith.constant 1.000000e+00 : f32
    %67 = vector.broadcast %cst_28 : f32 to vector<1x384xf32>
    %68 = arith.addf %67, %66 : vector<1x384xf32>
    %69 = arith.divf %67, %68 : vector<1x384xf32>
    %70 = vector.extract_strided_slice %63 {offsets = [0, 384], sizes = [1, 128], strides = [1, 1]} : vector<1x512xf32> to vector<1x128xf32>
    %71 = math.tanh %70 : vector<1x128xf32>
    %72 = vector.extract_strided_slice %69 {offsets = [0, 0], sizes = [1, 128], strides = [1, 1]} : vector<1x384xf32> to vector<1x128xf32>
    %73 = vector.extract_strided_slice %69 {offsets = [0, 128], sizes = [1, 128], strides = [1, 1]} : vector<1x384xf32> to vector<1x128xf32>
    %74 = vector.extract_strided_slice %69 {offsets = [0, 256], sizes = [1, 128], strides = [1, 1]} : vector<1x384xf32> to vector<1x128xf32>
    %75 = arith.mulf %73, %55 : vector<1x128xf32>
    %76 = arith.mulf %72, %71 : vector<1x128xf32>
    %77 = arith.addf %75, %76 : vector<1x128xf32>
    %78 = math.tanh %77 : vector<1x128xf32>
    %79 = arith.mulf %74, %78 : vector<1x128xf32>
    %80 = arith.index_cast %c2_i32 : i32 to index
    %c0_29 = arith.constant 0 : index
    %81 = vector.load %arg10[%80, %c0_29] : memref<16x128xf32, #tpu.memory_space<vmem>>, vector<1x128xf32>
    tpu.vector_store %arg10[%80, %c0_29], %79 {strides = array<i32>} : memref<16x128xf32, #tpu.memory_space<vmem>>, vector<1x128xf32>,
    %c3_i32 = arith.constant 3 : i32
    %82 = arith.index_cast %c3_i32 : i32 to index
    %c0_30 = arith.constant 0 : index
    %83 = vector.load %arg9[%82, %c0_30] : memref<16x512xf32, #tpu.memory_space<vmem>>, vector<1x512xf32>
    %cst_31 = arith.constant dense<0.000000e+00> : vector<1x512xf32>
    %84 = tpu.matmul %79, %13, %cst_31 {dimension_numbers = #tpu.dot_dimension_numbers<[1], [0], [0], [1], [0, 0, 1, 1], [], []>} : vector<1x128xf32>, vector<128x512xf32>, vector<1x512xf32> -> vector<1x512xf32>
    %85 = arith.addf %83, %84 : vector<1x512xf32>
    %86 = vector.extract_strided_slice %85 {offsets = [0, 0], sizes = [1, 384], strides = [1, 1]} : vector<1x512xf32> to vector<1x384xf32>
    %87 = arith.negf %86 : vector<1x384xf32>
    %88 = math.exp %87 : vector<1x384xf32>
    %cst_32 = arith.constant 1.000000e+00 : f32
    %89 = vector.broadcast %cst_32 : f32 to vector<1x384xf32>
    %90 = arith.addf %89, %88 : vector<1x384xf32>
    %91 = arith.divf %89, %90 : vector<1x384xf32>
    %92 = vector.extract_strided_slice %85 {offsets = [0, 384], sizes = [1, 128], strides = [1, 1]} : vector<1x512xf32> to vector<1x128xf32>
    %93 = math.tanh %92 : vector<1x128xf32>
    %94 = vector.extract_strided_slice %91 {offsets = [0, 0], sizes = [1, 128], strides = [1, 1]} : vector<1x384xf32> to vector<1x128xf32>
    %95 = vector.extract_strided_slice %91 {offsets = [0, 128], sizes = [1, 128], strides = [1, 1]} : vector<1x384xf32> to vector<1x128xf32>
    %96 = vector.extract_strided_slice %91 {offsets = [0, 256], sizes = [1, 128], strides = [1, 1]} : vector<1x384xf32> to vector<1x128xf32>
    %97 = arith.mulf %95, %77 : vector<1x128xf32>
    %98 = arith.mulf %94, %93 : vector<1x128xf32>
    %99 = arith.addf %97, %98 : vector<1x128xf32>
    %100 = math.tanh %99 : vector<1x128xf32>
    %101 = arith.mulf %96, %100 : vector<1x128xf32>
    %102 = arith.index_cast %c3_i32 : i32 to index
    %c0_33 = arith.constant 0 : index
    %103 = vector.load %arg10[%102, %c0_33] : memref<16x128xf32, #tpu.memory_space<vmem>>, vector<1x128xf32>
    tpu.vector_store %arg10[%102, %c0_33], %101 {strides = array<i32>} : memref<16x128xf32, #tpu.memory_space<vmem>>, vector<1x128xf32>,
    %c4_i32 = arith.constant 4 : i32
    %104 = arith.index_cast %c4_i32 : i32 to index
    %c0_34 = arith.constant 0 : index
    %105 = vector.load %arg9[%104, %c0_34] : memref<16x512xf32, #tpu.memory_space<vmem>>, vector<1x512xf32>
    %cst_35 = arith.constant dense<0.000000e+00> : vector<1x512xf32>
    %106 = tpu.matmul %101, %13, %cst_35 {dimension_numbers = #tpu.dot_dimension_numbers<[1], [0], [0], [1], [0, 0, 1, 1], [], []>} : vector<1x128xf32>, vector<128x512xf32>, vector<1x512xf32> -> vector<1x512xf32>
    %107 = arith.addf %105, %106 : vector<1x512xf32>
    %108 = vector.extract_strided_slice %107 {offsets = [0, 0], sizes = [1, 384], strides = [1, 1]} : vector<1x512xf32> to vector<1x384xf32>
    %109 = arith.negf %108 : vector<1x384xf32>
    %110 = math.exp %109 : vector<1x384xf32>
    %cst_36 = arith.constant 1.000000e+00 : f32
    %111 = vector.broadcast %cst_36 : f32 to vector<1x384xf32>
    %112 = arith.addf %111, %110 : vector<1x384xf32>
    %113 = arith.divf %111, %112 : vector<1x384xf32>
    %114 = vector.extract_strided_slice %107 {offsets = [0, 384], sizes = [1, 128], strides = [1, 1]} : vector<1x512xf32> to vector<1x128xf32>
    %115 = math.tanh %114 : vector<1x128xf32>
    %116 = vector.extract_strided_slice %113 {offsets = [0, 0], sizes = [1, 128], strides = [1, 1]} : vector<1x384xf32> to vector<1x128xf32>
    %117 = vector.extract_strided_slice %113 {offsets = [0, 128], sizes = [1, 128], strides = [1, 1]} : vector<1x384xf32> to vector<1x128xf32>
    %118 = vector.extract_strided_slice %113 {offsets = [0, 256], sizes = [1, 128], strides = [1, 1]} : vector<1x384xf32> to vector<1x128xf32>
    %119 = arith.mulf %117, %99 : vector<1x128xf32>
    %120 = arith.mulf %116, %115 : vector<1x128xf32>
    %121 = arith.addf %119, %120 : vector<1x128xf32>
    %122 = math.tanh %121 : vector<1x128xf32>
    %123 = arith.mulf %118, %122 : vector<1x128xf32>
    %124 = arith.index_cast %c4_i32 : i32 to index
    %c0_37 = arith.constant 0 : index
    %125 = vector.load %arg10[%124, %c0_37] : memref<16x128xf32, #tpu.memory_space<vmem>>, vector<1x128xf32>
    tpu.vector_store %arg10[%124, %c0_37], %123 {strides = array<i32>} : memref<16x128xf32, #tpu.memory_space<vmem>>, vector<1x128xf32>,
    %c5_i32 = arith.constant 5 : i32
    %126 = arith.index_cast %c5_i32 : i32 to index
    %c0_38 = arith.constant 0 : index
    %127 = vector.load %arg9[%126, %c0_38] : memref<16x512xf32, #tpu.memory_space<vmem>>, vector<1x512xf32>
    %cst_39 = arith.constant dense<0.000000e+00> : vector<1x512xf32>
    %128 = tpu.matmul %123, %13, %cst_39 {dimension_numbers = #tpu.dot_dimension_numbers<[1], [0], [0], [1], [0, 0, 1, 1], [], []>} : vector<1x128xf32>, vector<128x512xf32>, vector<1x512xf32> -> vector<1x512xf32>
    %129 = arith.addf %127, %128 : vector<1x512xf32>
    %130 = vector.extract_strided_slice %129 {offsets = [0, 0], sizes = [1, 384], strides = [1, 1]} : vector<1x512xf32> to vector<1x384xf32>
    %131 = arith.negf %130 : vector<1x384xf32>
    %132 = math.exp %131 : vector<1x384xf32>
    %cst_40 = arith.constant 1.000000e+00 : f32
    %133 = vector.broadcast %cst_40 : f32 to vector<1x384xf32>
    %134 = arith.addf %133, %132 : vector<1x384xf32>
    %135 = arith.divf %133, %134 : vector<1x384xf32>
    %136 = vector.extract_strided_slice %129 {offsets = [0, 384], sizes = [1, 128], strides = [1, 1]} : vector<1x512xf32> to vector<1x128xf32>
    %137 = math.tanh %136 : vector<1x128xf32>
    %138 = vector.extract_strided_slice %135 {offsets = [0, 0], sizes = [1, 128], strides = [1, 1]} : vector<1x384xf32> to vector<1x128xf32>
    %139 = vector.extract_strided_slice %135 {offsets = [0, 128], sizes = [1, 128], strides = [1, 1]} : vector<1x384xf32> to vector<1x128xf32>
    %140 = vector.extract_strided_slice %135 {offsets = [0, 256], sizes = [1, 128], strides = [1, 1]} : vector<1x384xf32> to vector<1x128xf32>
    %141 = arith.mulf %139, %121 : vector<1x128xf32>
    %142 = arith.mulf %138, %137 : vector<1x128xf32>
    %143 = arith.addf %141, %142 : vector<1x128xf32>
    %144 = math.tanh %143 : vector<1x128xf32>
    %145 = arith.mulf %140, %144 : vector<1x128xf32>
    %146 = arith.index_cast %c5_i32 : i32 to index
    %c0_41 = arith.constant 0 : index
    %147 = vector.load %arg10[%146, %c0_41] : memref<16x128xf32, #tpu.memory_space<vmem>>, vector<1x128xf32>
    tpu.vector_store %arg10[%146, %c0_41], %145 {strides = array<i32>} : memref<16x128xf32, #tpu.memory_space<vmem>>, vector<1x128xf32>,
    %c6_i32 = arith.constant 6 : i32
    %148 = arith.index_cast %c6_i32 : i32 to index
    %c0_42 = arith.constant 0 : index
    %149 = vector.load %arg9[%148, %c0_42] : memref<16x512xf32, #tpu.memory_space<vmem>>, vector<1x512xf32>
    %cst_43 = arith.constant dense<0.000000e+00> : vector<1x512xf32>
    %150 = tpu.matmul %145, %13, %cst_43 {dimension_numbers = #tpu.dot_dimension_numbers<[1], [0], [0], [1], [0, 0, 1, 1], [], []>} : vector<1x128xf32>, vector<128x512xf32>, vector<1x512xf32> -> vector<1x512xf32>
    %151 = arith.addf %149, %150 : vector<1x512xf32>
    %152 = vector.extract_strided_slice %151 {offsets = [0, 0], sizes = [1, 384], strides = [1, 1]} : vector<1x512xf32> to vector<1x384xf32>
    %153 = arith.negf %152 : vector<1x384xf32>
    %154 = math.exp %153 : vector<1x384xf32>
    %cst_44 = arith.constant 1.000000e+00 : f32
    %155 = vector.broadcast %cst_44 : f32 to vector<1x384xf32>
    %156 = arith.addf %155, %154 : vector<1x384xf32>
    %157 = arith.divf %155, %156 : vector<1x384xf32>
    %158 = vector.extract_strided_slice %151 {offsets = [0, 384], sizes = [1, 128], strides = [1, 1]} : vector<1x512xf32> to vector<1x128xf32>
    %159 = math.tanh %158 : vector<1x128xf32>
    %160 = vector.extract_strided_slice %157 {offsets = [0, 0], sizes = [1, 128], strides = [1, 1]} : vector<1x384xf32> to vector<1x128xf32>
    %161 = vector.extract_strided_slice %157 {offsets = [0, 128], sizes = [1, 128], strides = [1, 1]} : vector<1x384xf32> to vector<1x128xf32>
    %162 = vector.extract_strided_slice %157 {offsets = [0, 256], sizes = [1, 128], strides = [1, 1]} : vector<1x384xf32> to vector<1x128xf32>
    %163 = arith.mulf %161, %143 : vector<1x128xf32>
    %164 = arith.mulf %160, %159 : vector<1x128xf32>
    %165 = arith.addf %163, %164 : vector<1x128xf32>
    %166 = math.tanh %165 : vector<1x128xf32>
    %167 = arith.mulf %162, %166 : vector<1x128xf32>
    %168 = arith.index_cast %c6_i32 : i32 to index
    %c0_45 = arith.constant 0 : index
    %169 = vector.load %arg10[%168, %c0_45] : memref<16x128xf32, #tpu.memory_space<vmem>>, vector<1x128xf32>
    tpu.vector_store %arg10[%168, %c0_45], %167 {strides = array<i32>} : memref<16x128xf32, #tpu.memory_space<vmem>>, vector<1x128xf32>,
    %c7_i32 = arith.constant 7 : i32
    %170 = arith.index_cast %c7_i32 : i32 to index
    %c0_46 = arith.constant 0 : index
    %171 = vector.load %arg9[%170, %c0_46] : memref<16x512xf32, #tpu.memory_space<vmem>>, vector<1x512xf32>
    %cst_47 = arith.constant dense<0.000000e+00> : vector<1x512xf32>
    %172 = tpu.matmul %167, %13, %cst_47 {dimension_numbers = #tpu.dot_dimension_numbers<[1], [0], [0], [1], [0, 0, 1, 1], [], []>} : vector<1x128xf32>, vector<128x512xf32>, vector<1x512xf32> -> vector<1x512xf32>
    %173 = arith.addf %171, %172 : vector<1x512xf32>
    %174 = vector.extract_strided_slice %173 {offsets = [0, 0], sizes = [1, 384], strides = [1, 1]} : vector<1x512xf32> to vector<1x384xf32>
    %175 = arith.negf %174 : vector<1x384xf32>
    %176 = math.exp %175 : vector<1x384xf32>
    %cst_48 = arith.constant 1.000000e+00 : f32
    %177 = vector.broadcast %cst_48 : f32 to vector<1x384xf32>
    %178 = arith.addf %177, %176 : vector<1x384xf32>
    %179 = arith.divf %177, %178 : vector<1x384xf32>
    %180 = vector.extract_strided_slice %173 {offsets = [0, 384], sizes = [1, 128], strides = [1, 1]} : vector<1x512xf32> to vector<1x128xf32>
    %181 = math.tanh %180 : vector<1x128xf32>
    %182 = vector.extract_strided_slice %179 {offsets = [0, 0], sizes = [1, 128], strides = [1, 1]} : vector<1x384xf32> to vector<1x128xf32>
    %183 = vector.extract_strided_slice %179 {offsets = [0, 128], sizes = [1, 128], strides = [1, 1]} : vector<1x384xf32> to vector<1x128xf32>
    %184 = vector.extract_strided_slice %179 {offsets = [0, 256], sizes = [1, 128], strides = [1, 1]} : vector<1x384xf32> to vector<1x128xf32>
    %185 = arith.mulf %183, %165 : vector<1x128xf32>
    %186 = arith.mulf %182, %181 : vector<1x128xf32>
    %187 = arith.addf %185, %186 : vector<1x128xf32>
    %188 = math.tanh %187 : vector<1x128xf32>
    %189 = arith.mulf %184, %188 : vector<1x128xf32>
    %190 = arith.index_cast %c7_i32 : i32 to index
    %c0_49 = arith.constant 0 : index
    %191 = vector.load %arg10[%190, %c0_49] : memref<16x128xf32, #tpu.memory_space<vmem>>, vector<1x128xf32>
    tpu.vector_store %arg10[%190, %c0_49], %189 {strides = array<i32>} : memref<16x128xf32, #tpu.memory_space<vmem>>, vector<1x128xf32>,
    %c8_i32 = arith.constant 8 : i32
    %192 = arith.index_cast %c8_i32 : i32 to index
    %c0_50 = arith.constant 0 : index
    %193 = vector.load %arg9[%192, %c0_50] : memref<16x512xf32, #tpu.memory_space<vmem>>, vector<1x512xf32>
    %cst_51 = arith.constant dense<0.000000e+00> : vector<1x512xf32>
    %194 = tpu.matmul %189, %13, %cst_51 {dimension_numbers = #tpu.dot_dimension_numbers<[1], [0], [0], [1], [0, 0, 1, 1], [], []>} : vector<1x128xf32>, vector<128x512xf32>, vector<1x512xf32> -> vector<1x512xf32>
    %195 = arith.addf %193, %194 : vector<1x512xf32>
    %196 = vector.extract_strided_slice %195 {offsets = [0, 0], sizes = [1, 384], strides = [1, 1]} : vector<1x512xf32> to vector<1x384xf32>
    %197 = arith.negf %196 : vector<1x384xf32>
    %198 = math.exp %197 : vector<1x384xf32>
    %cst_52 = arith.constant 1.000000e+00 : f32
    %199 = vector.broadcast %cst_52 : f32 to vector<1x384xf32>
    %200 = arith.addf %199, %198 : vector<1x384xf32>
    %201 = arith.divf %199, %200 : vector<1x384xf32>
    %202 = vector.extract_strided_slice %195 {offsets = [0, 384], sizes = [1, 128], strides = [1, 1]} : vector<1x512xf32> to vector<1x128xf32>
    %203 = math.tanh %202 : vector<1x128xf32>
    %204 = vector.extract_strided_slice %201 {offsets = [0, 0], sizes = [1, 128], strides = [1, 1]} : vector<1x384xf32> to vector<1x128xf32>
    %205 = vector.extract_strided_slice %201 {offsets = [0, 128], sizes = [1, 128], strides = [1, 1]} : vector<1x384xf32> to vector<1x128xf32>
    %206 = vector.extract_strided_slice %201 {offsets = [0, 256], sizes = [1, 128], strides = [1, 1]} : vector<1x384xf32> to vector<1x128xf32>
    %207 = arith.mulf %205, %187 : vector<1x128xf32>
    %208 = arith.mulf %204, %203 : vector<1x128xf32>
    %209 = arith.addf %207, %208 : vector<1x128xf32>
    %210 = math.tanh %209 : vector<1x128xf32>
    %211 = arith.mulf %206, %210 : vector<1x128xf32>
    %212 = arith.index_cast %c8_i32 : i32 to index
    %c0_53 = arith.constant 0 : index
    %213 = vector.load %arg10[%212, %c0_53] : memref<16x128xf32, #tpu.memory_space<vmem>>, vector<1x128xf32>
    tpu.vector_store %arg10[%212, %c0_53], %211 {strides = array<i32>} : memref<16x128xf32, #tpu.memory_space<vmem>>, vector<1x128xf32>,
    %c9_i32 = arith.constant 9 : i32
    %214 = arith.index_cast %c9_i32 : i32 to index
    %c0_54 = arith.constant 0 : index
    %215 = vector.load %arg9[%214, %c0_54] : memref<16x512xf32, #tpu.memory_space<vmem>>, vector<1x512xf32>
    %cst_55 = arith.constant dense<0.000000e+00> : vector<1x512xf32>
    %216 = tpu.matmul %211, %13, %cst_55 {dimension_numbers = #tpu.dot_dimension_numbers<[1], [0], [0], [1], [0, 0, 1, 1], [], []>} : vector<1x128xf32>, vector<128x512xf32>, vector<1x512xf32> -> vector<1x512xf32>
    %217 = arith.addf %215, %216 : vector<1x512xf32>
    %218 = vector.extract_strided_slice %217 {offsets = [0, 0], sizes = [1, 384], strides = [1, 1]} : vector<1x512xf32> to vector<1x384xf32>
    %219 = arith.negf %218 : vector<1x384xf32>
    %220 = math.exp %219 : vector<1x384xf32>
    %cst_56 = arith.constant 1.000000e+00 : f32
    %221 = vector.broadcast %cst_56 : f32 to vector<1x384xf32>
    %222 = arith.addf %221, %220 : vector<1x384xf32>
    %223 = arith.divf %221, %222 : vector<1x384xf32>
    %224 = vector.extract_strided_slice %217 {offsets = [0, 384], sizes = [1, 128], strides = [1, 1]} : vector<1x512xf32> to vector<1x128xf32>
    %225 = math.tanh %224 : vector<1x128xf32>
    %226 = vector.extract_strided_slice %223 {offsets = [0, 0], sizes = [1, 128], strides = [1, 1]} : vector<1x384xf32> to vector<1x128xf32>
    %227 = vector.extract_strided_slice %223 {offsets = [0, 128], sizes = [1, 128], strides = [1, 1]} : vector<1x384xf32> to vector<1x128xf32>
    %228 = vector.extract_strided_slice %223 {offsets = [0, 256], sizes = [1, 128], strides = [1, 1]} : vector<1x384xf32> to vector<1x128xf32>
    %229 = arith.mulf %227, %209 : vector<1x128xf32>
    %230 = arith.mulf %226, %225 : vector<1x128xf32>
    %231 = arith.addf %229, %230 : vector<1x128xf32>
    %232 = math.tanh %231 : vector<1x128xf32>
    %233 = arith.mulf %228, %232 : vector<1x128xf32>
    %234 = arith.index_cast %c9_i32 : i32 to index
    %c0_57 = arith.constant 0 : index
    %235 = vector.load %arg10[%234, %c0_57] : memref<16x128xf32, #tpu.memory_space<vmem>>, vector<1x128xf32>
    tpu.vector_store %arg10[%234, %c0_57], %233 {strides = array<i32>} : memref<16x128xf32, #tpu.memory_space<vmem>>, vector<1x128xf32>,
    %c10_i32 = arith.constant 10 : i32
    %236 = arith.index_cast %c10_i32 : i32 to index
    %c0_58 = arith.constant 0 : index
    %237 = vector.load %arg9[%236, %c0_58] : memref<16x512xf32, #tpu.memory_space<vmem>>, vector<1x512xf32>
    %cst_59 = arith.constant dense<0.000000e+00> : vector<1x512xf32>
    %238 = tpu.matmul %233, %13, %cst_59 {dimension_numbers = #tpu.dot_dimension_numbers<[1], [0], [0], [1], [0, 0, 1, 1], [], []>} : vector<1x128xf32>, vector<128x512xf32>, vector<1x512xf32> -> vector<1x512xf32>
    %239 = arith.addf %237, %238 : vector<1x512xf32>
    %240 = vector.extract_strided_slice %239 {offsets = [0, 0], sizes = [1, 384], strides = [1, 1]} : vector<1x512xf32> to vector<1x384xf32>
    %241 = arith.negf %240 : vector<1x384xf32>
    %242 = math.exp %241 : vector<1x384xf32>
    %cst_60 = arith.constant 1.000000e+00 : f32
    %243 = vector.broadcast %cst_60 : f32 to vector<1x384xf32>
    %244 = arith.addf %243, %242 : vector<1x384xf32>
    %245 = arith.divf %243, %244 : vector<1x384xf32>
    %246 = vector.extract_strided_slice %239 {offsets = [0, 384], sizes = [1, 128], strides = [1, 1]} : vector<1x512xf32> to vector<1x128xf32>
    %247 = math.tanh %246 : vector<1x128xf32>
    %248 = vector.extract_strided_slice %245 {offsets = [0, 0], sizes = [1, 128], strides = [1, 1]} : vector<1x384xf32> to vector<1x128xf32>
    %249 = vector.extract_strided_slice %245 {offsets = [0, 128], sizes = [1, 128], strides = [1, 1]} : vector<1x384xf32> to vector<1x128xf32>
    %250 = vector.extract_strided_slice %245 {offsets = [0, 256], sizes = [1, 128], strides = [1, 1]} : vector<1x384xf32> to vector<1x128xf32>
    %251 = arith.mulf %249, %231 : vector<1x128xf32>
    %252 = arith.mulf %248, %247 : vector<1x128xf32>
    %253 = arith.addf %251, %252 : vector<1x128xf32>
    %254 = math.tanh %253 : vector<1x128xf32>
    %255 = arith.mulf %250, %254 : vector<1x128xf32>
    %256 = arith.index_cast %c10_i32 : i32 to index
    %c0_61 = arith.constant 0 : index
    %257 = vector.load %arg10[%256, %c0_61] : memref<16x128xf32, #tpu.memory_space<vmem>>, vector<1x128xf32>
    tpu.vector_store %arg10[%256, %c0_61], %255 {strides = array<i32>} : memref<16x128xf32, #tpu.memory_space<vmem>>, vector<1x128xf32>,
    %c11_i32 = arith.constant 11 : i32
    %258 = arith.index_cast %c11_i32 : i32 to index
    %c0_62 = arith.constant 0 : index
    %259 = vector.load %arg9[%258, %c0_62] : memref<16x512xf32, #tpu.memory_space<vmem>>, vector<1x512xf32>
    %cst_63 = arith.constant dense<0.000000e+00> : vector<1x512xf32>
    %260 = tpu.matmul %255, %13, %cst_63 {dimension_numbers = #tpu.dot_dimension_numbers<[1], [0], [0], [1], [0, 0, 1, 1], [], []>} : vector<1x128xf32>, vector<128x512xf32>, vector<1x512xf32> -> vector<1x512xf32>
    %261 = arith.addf %259, %260 : vector<1x512xf32>
    %262 = vector.extract_strided_slice %261 {offsets = [0, 0], sizes = [1, 384], strides = [1, 1]} : vector<1x512xf32> to vector<1x384xf32>
    %263 = arith.negf %262 : vector<1x384xf32>
    %264 = math.exp %263 : vector<1x384xf32>
    %cst_64 = arith.constant 1.000000e+00 : f32
    %265 = vector.broadcast %cst_64 : f32 to vector<1x384xf32>
    %266 = arith.addf %265, %264 : vector<1x384xf32>
    %267 = arith.divf %265, %266 : vector<1x384xf32>
    %268 = vector.extract_strided_slice %261 {offsets = [0, 384], sizes = [1, 128], strides = [1, 1]} : vector<1x512xf32> to vector<1x128xf32>
    %269 = math.tanh %268 : vector<1x128xf32>
    %270 = vector.extract_strided_slice %267 {offsets = [0, 0], sizes = [1, 128], strides = [1, 1]} : vector<1x384xf32> to vector<1x128xf32>
    %271 = vector.extract_strided_slice %267 {offsets = [0, 128], sizes = [1, 128], strides = [1, 1]} : vector<1x384xf32> to vector<1x128xf32>
    %272 = vector.extract_strided_slice %267 {offsets = [0, 256], sizes = [1, 128], strides = [1, 1]} : vector<1x384xf32> to vector<1x128xf32>
    %273 = arith.mulf %271, %253 : vector<1x128xf32>
    %274 = arith.mulf %270, %269 : vector<1x128xf32>
    %275 = arith.addf %273, %274 : vector<1x128xf32>
    %276 = math.tanh %275 : vector<1x128xf32>
    %277 = arith.mulf %272, %276 : vector<1x128xf32>
    %278 = arith.index_cast %c11_i32 : i32 to index
    %c0_65 = arith.constant 0 : index
    %279 = vector.load %arg10[%278, %c0_65] : memref<16x128xf32, #tpu.memory_space<vmem>>, vector<1x128xf32>
    tpu.vector_store %arg10[%278, %c0_65], %277 {strides = array<i32>} : memref<16x128xf32, #tpu.memory_space<vmem>>, vector<1x128xf32>,
    %c12_i32 = arith.constant 12 : i32
    %280 = arith.index_cast %c12_i32 : i32 to index
    %c0_66 = arith.constant 0 : index
    %281 = vector.load %arg9[%280, %c0_66] : memref<16x512xf32, #tpu.memory_space<vmem>>, vector<1x512xf32>
    %cst_67 = arith.constant dense<0.000000e+00> : vector<1x512xf32>
    %282 = tpu.matmul %277, %13, %cst_67 {dimension_numbers = #tpu.dot_dimension_numbers<[1], [0], [0], [1], [0, 0, 1, 1], [], []>} : vector<1x128xf32>, vector<128x512xf32>, vector<1x512xf32> -> vector<1x512xf32>
    %283 = arith.addf %281, %282 : vector<1x512xf32>
    %284 = vector.extract_strided_slice %283 {offsets = [0, 0], sizes = [1, 384], strides = [1, 1]} : vector<1x512xf32> to vector<1x384xf32>
    %285 = arith.negf %284 : vector<1x384xf32>
    %286 = math.exp %285 : vector<1x384xf32>
    %cst_68 = arith.constant 1.000000e+00 : f32
    %287 = vector.broadcast %cst_68 : f32 to vector<1x384xf32>
    %288 = arith.addf %287, %286 : vector<1x384xf32>
    %289 = arith.divf %287, %288 : vector<1x384xf32>
    %290 = vector.extract_strided_slice %283 {offsets = [0, 384], sizes = [1, 128], strides = [1, 1]} : vector<1x512xf32> to vector<1x128xf32>
    %291 = math.tanh %290 : vector<1x128xf32>
    %292 = vector.extract_strided_slice %289 {offsets = [0, 0], sizes = [1, 128], strides = [1, 1]} : vector<1x384xf32> to vector<1x128xf32>
    %293 = vector.extract_strided_slice %289 {offsets = [0, 128], sizes = [1, 128], strides = [1, 1]} : vector<1x384xf32> to vector<1x128xf32>
    %294 = vector.extract_strided_slice %289 {offsets = [0, 256], sizes = [1, 128], strides = [1, 1]} : vector<1x384xf32> to vector<1x128xf32>
    %295 = arith.mulf %293, %275 : vector<1x128xf32>
    %296 = arith.mulf %292, %291 : vector<1x128xf32>
    %297 = arith.addf %295, %296 : vector<1x128xf32>
    %298 = math.tanh %297 : vector<1x128xf32>
    %299 = arith.mulf %294, %298 : vector<1x128xf32>
    %300 = arith.index_cast %c12_i32 : i32 to index
    %c0_69 = arith.constant 0 : index
    %301 = vector.load %arg10[%300, %c0_69] : memref<16x128xf32, #tpu.memory_space<vmem>>, vector<1x128xf32>
    tpu.vector_store %arg10[%300, %c0_69], %299 {strides = array<i32>} : memref<16x128xf32, #tpu.memory_space<vmem>>, vector<1x128xf32>,
    %c13_i32 = arith.constant 13 : i32
    %302 = arith.index_cast %c13_i32 : i32 to index
    %c0_70 = arith.constant 0 : index
    %303 = vector.load %arg9[%302, %c0_70] : memref<16x512xf32, #tpu.memory_space<vmem>>, vector<1x512xf32>
    %cst_71 = arith.constant dense<0.000000e+00> : vector<1x512xf32>
    %304 = tpu.matmul %299, %13, %cst_71 {dimension_numbers = #tpu.dot_dimension_numbers<[1], [0], [0], [1], [0, 0, 1, 1], [], []>} : vector<1x128xf32>, vector<128x512xf32>, vector<1x512xf32> -> vector<1x512xf32>
    %305 = arith.addf %303, %304 : vector<1x512xf32>
    %306 = vector.extract_strided_slice %305 {offsets = [0, 0], sizes = [1, 384], strides = [1, 1]} : vector<1x512xf32> to vector<1x384xf32>
    %307 = arith.negf %306 : vector<1x384xf32>
    %308 = math.exp %307 : vector<1x384xf32>
    %cst_72 = arith.constant 1.000000e+00 : f32
    %309 = vector.broadcast %cst_72 : f32 to vector<1x384xf32>
    %310 = arith.addf %309, %308 : vector<1x384xf32>
    %311 = arith.divf %309, %310 : vector<1x384xf32>
    %312 = vector.extract_strided_slice %305 {offsets = [0, 384], sizes = [1, 128], strides = [1, 1]} : vector<1x512xf32> to vector<1x128xf32>
    %313 = math.tanh %312 : vector<1x128xf32>
    %314 = vector.extract_strided_slice %311 {offsets = [0, 0], sizes = [1, 128], strides = [1, 1]} : vector<1x384xf32> to vector<1x128xf32>
    %315 = vector.extract_strided_slice %311 {offsets = [0, 128], sizes = [1, 128], strides = [1, 1]} : vector<1x384xf32> to vector<1x128xf32>
    %316 = vector.extract_strided_slice %311 {offsets = [0, 256], sizes = [1, 128], strides = [1, 1]} : vector<1x384xf32> to vector<1x128xf32>
    %317 = arith.mulf %315, %297 : vector<1x128xf32>
    %318 = arith.mulf %314, %313 : vector<1x128xf32>
    %319 = arith.addf %317, %318 : vector<1x128xf32>
    %320 = math.tanh %319 : vector<1x128xf32>
    %321 = arith.mulf %316, %320 : vector<1x128xf32>
    %322 = arith.index_cast %c13_i32 : i32 to index
    %c0_73 = arith.constant 0 : index
    %323 = vector.load %arg10[%322, %c0_73] : memref<16x128xf32, #tpu.memory_space<vmem>>, vector<1x128xf32>
    tpu.vector_store %arg10[%322, %c0_73], %321 {strides = array<i32>} : memref<16x128xf32, #tpu.memory_space<vmem>>, vector<1x128xf32>,
    %c14_i32 = arith.constant 14 : i32
    %324 = arith.index_cast %c14_i32 : i32 to index
    %c0_74 = arith.constant 0 : index
    %325 = vector.load %arg9[%324, %c0_74] : memref<16x512xf32, #tpu.memory_space<vmem>>, vector<1x512xf32>
    %cst_75 = arith.constant dense<0.000000e+00> : vector<1x512xf32>
    %326 = tpu.matmul %321, %13, %cst_75 {dimension_numbers = #tpu.dot_dimension_numbers<[1], [0], [0], [1], [0, 0, 1, 1], [], []>} : vector<1x128xf32>, vector<128x512xf32>, vector<1x512xf32> -> vector<1x512xf32>
    %327 = arith.addf %325, %326 : vector<1x512xf32>
    %328 = vector.extract_strided_slice %327 {offsets = [0, 0], sizes = [1, 384], strides = [1, 1]} : vector<1x512xf32> to vector<1x384xf32>
    %329 = arith.negf %328 : vector<1x384xf32>
    %330 = math.exp %329 : vector<1x384xf32>
    %cst_76 = arith.constant 1.000000e+00 : f32
    %331 = vector.broadcast %cst_76 : f32 to vector<1x384xf32>
    %332 = arith.addf %331, %330 : vector<1x384xf32>
    %333 = arith.divf %331, %332 : vector<1x384xf32>
    %334 = vector.extract_strided_slice %327 {offsets = [0, 384], sizes = [1, 128], strides = [1, 1]} : vector<1x512xf32> to vector<1x128xf32>
    %335 = math.tanh %334 : vector<1x128xf32>
    %336 = vector.extract_strided_slice %333 {offsets = [0, 0], sizes = [1, 128], strides = [1, 1]} : vector<1x384xf32> to vector<1x128xf32>
    %337 = vector.extract_strided_slice %333 {offsets = [0, 128], sizes = [1, 128], strides = [1, 1]} : vector<1x384xf32> to vector<1x128xf32>
    %338 = vector.extract_strided_slice %333 {offsets = [0, 256], sizes = [1, 128], strides = [1, 1]} : vector<1x384xf32> to vector<1x128xf32>
    %339 = arith.mulf %337, %319 : vector<1x128xf32>
    %340 = arith.mulf %336, %335 : vector<1x128xf32>
    %341 = arith.addf %339, %340 : vector<1x128xf32>
    %342 = math.tanh %341 : vector<1x128xf32>
    %343 = arith.mulf %338, %342 : vector<1x128xf32>
    %344 = arith.index_cast %c14_i32 : i32 to index
    %c0_77 = arith.constant 0 : index
    %345 = vector.load %arg10[%344, %c0_77] : memref<16x128xf32, #tpu.memory_space<vmem>>, vector<1x128xf32>
    tpu.vector_store %arg10[%344, %c0_77], %343 {strides = array<i32>} : memref<16x128xf32, #tpu.memory_space<vmem>>, vector<1x128xf32>,
    %c15_i32 = arith.constant 15 : i32
    %346 = arith.index_cast %c15_i32 : i32 to index
    %c0_78 = arith.constant 0 : index
    %347 = vector.load %arg9[%346, %c0_78] : memref<16x512xf32, #tpu.memory_space<vmem>>, vector<1x512xf32>
    %cst_79 = arith.constant dense<0.000000e+00> : vector<1x512xf32>
    %348 = tpu.matmul %343, %13, %cst_79 {dimension_numbers = #tpu.dot_dimension_numbers<[1], [0], [0], [1], [0, 0, 1, 1], [], []>} : vector<1x128xf32>, vector<128x512xf32>, vector<1x512xf32> -> vector<1x512xf32>
    %349 = arith.addf %347, %348 : vector<1x512xf32>
    %350 = vector.extract_strided_slice %349 {offsets = [0, 0], sizes = [1, 384], strides = [1, 1]} : vector<1x512xf32> to vector<1x384xf32>
    %351 = arith.negf %350 : vector<1x384xf32>
    %352 = math.exp %351 : vector<1x384xf32>
    %cst_80 = arith.constant 1.000000e+00 : f32
    %353 = vector.broadcast %cst_80 : f32 to vector<1x384xf32>
    %354 = arith.addf %353, %352 : vector<1x384xf32>
    %355 = arith.divf %353, %354 : vector<1x384xf32>
    %356 = vector.extract_strided_slice %349 {offsets = [0, 384], sizes = [1, 128], strides = [1, 1]} : vector<1x512xf32> to vector<1x128xf32>
    %357 = math.tanh %356 : vector<1x128xf32>
    %358 = vector.extract_strided_slice %355 {offsets = [0, 0], sizes = [1, 128], strides = [1, 1]} : vector<1x384xf32> to vector<1x128xf32>
    %359 = vector.extract_strided_slice %355 {offsets = [0, 128], sizes = [1, 128], strides = [1, 1]} : vector<1x384xf32> to vector<1x128xf32>
    %360 = vector.extract_strided_slice %355 {offsets = [0, 256], sizes = [1, 128], strides = [1, 1]} : vector<1x384xf32> to vector<1x128xf32>
    %361 = arith.mulf %359, %341 : vector<1x128xf32>
    %362 = arith.mulf %358, %357 : vector<1x128xf32>
    %363 = arith.addf %361, %362 : vector<1x128xf32>
    %364 = math.tanh %363 : vector<1x128xf32>
    %365 = arith.mulf %360, %364 : vector<1x128xf32>
    %366 = arith.index_cast %c15_i32 : i32 to index
    %c0_81 = arith.constant 0 : index
    %367 = vector.load %arg10[%366, %c0_81] : memref<16x128xf32, #tpu.memory_space<vmem>>, vector<1x128xf32>
    tpu.vector_store %arg10[%366, %c0_81], %365 {strides = array<i32>} : memref<16x128xf32, #tpu.memory_space<vmem>>, vector<1x128xf32>,
    %c16_i32 = arith.constant 16 : i32
    %c0_82 = arith.constant 0 : index
    %c0_83 = arith.constant 0 : index
    %368 = vector.load %arg10[%c0_82, %c0_83] : memref<16x128xf32, #tpu.memory_space<vmem>>, vector<16x128xf32>
    %cst_84 = arith.constant dense<0.000000e+00> : vector<16x16xf32>
    %369 = tpu.matmul %6, %2, %cst_84 {dimension_numbers = #tpu.dot_dimension_numbers<[1], [1], [0], [0], [0, 0, 1, 0], [], []>} : vector<16x128xf32>, vector<16x128xf32>, vector<16x16xf32> -> vector<16x16xf32>
    %cst_85 = arith.constant dense<0xFF800000> : vector<16xf32>
    %370 = vector.multi_reduction <maximumf>, %369, %cst_85 [1] : vector<16x16xf32> to vector<16xf32>
    %371 = vector.shape_cast %370 : vector<16xf32> to vector<16x1xf32>
    %372 = vector.broadcast %371 : vector<16x1xf32> to vector<16x16xf32>
    %373 = arith.subf %369, %372 : vector<16x16xf32>
    %374 = math.exp %373 : vector<16x16xf32>
    %cst_86 = arith.constant dense<0.000000e+00> : vector<16xf32>
    %375 = vector.multi_reduction <add>, %374, %cst_86 [1] : vector<16x16xf32> to vector<16xf32>
    %376 = vector.shape_cast %375 : vector<16xf32> to vector<16x1xf32>
    %377 = tpu.reciprocal %376 : vector<16x1xf32> -> vector<16x1xf32>
    %378 = vector.broadcast %377 : vector<16x1xf32> to vector<16x16xf32>
    %379 = arith.mulf %374, %378 : vector<16x16xf32>
    %c0_87 = arith.constant 0 : index
    %c0_88 = arith.constant 0 : index
    %380 = vector.load %arg8[%c0_87, %c0_88] : memref<16x16xf32, #tpu.memory_space<vmem>>, vector<16x16xf32>
    tpu.vector_store %arg8[%c0_87, %c0_88], %379 {strides = array<i32>} : memref<16x16xf32, #tpu.memory_space<vmem>>, vector<16x16xf32>,
    %cst_89 = arith.constant dense<0.000000e+00> : vector<16x128xf32>
    %381 = tpu.matmul %379, %368, %cst_89 {dimension_numbers = #tpu.dot_dimension_numbers<[0], [0], [1], [1], [0, 1, 1, 1], [], []>} : vector<16x16xf32>, vector<16x128xf32>, vector<16x128xf32> -> vector<16x128xf32>
    %c0_90 = arith.constant 0 : index
    %c0_91 = arith.constant 0 : index
    %382 = vector.load %arg6[%c0_90, %c0_91] : memref<128x128xf32, #tpu.memory_space<vmem>>, vector<128x128xf32>
    %cst_92 = arith.constant dense<0.000000e+00> : vector<16x128xf32>
    %383 = tpu.matmul %381, %382, %cst_92 {dimension_numbers = #tpu.dot_dimension_numbers<[1], [0], [0], [1], [0, 0, 1, 1], [], []>} : vector<16x128xf32>, vector<128x128xf32>, vector<16x128xf32> -> vector<16x128xf32>
    %c0_93 = arith.constant 0 : index
    %c0_94 = arith.constant 0 : index
    %384 = vector.load %arg7[%c0_93, %c0_94] : memref<16x128xf32, #tpu.memory_space<vmem>>, vector<16x128xf32>
    tpu.vector_store %arg7[%c0_93, %c0_94], %383 {strides = array<i32>} : memref<16x128xf32, #tpu.memory_space<vmem>>, vector<16x128xf32>,
    return
  }
}

</mosaic_0001>

<bundles_post_ra>
// kernel: tpu_custom_call.1
= control target key start
LH: loop header
LB: loop body
LE: loop exit
PB: predicated region body
PF: predicated region fallthrough
CT: control target
= control target key end

     0   :  { %14 = vsyncpa [#allocation5], 0  ;;  %s6755_s0 = inlined_call_operand.hbm [shape: f32[16,128], index: 0, kind: input, shape index: {}]   ;;  %s6756_s1 = inlined_call_operand.hbm [shape: f32[128,128], index: 1, kind: input, shape index: {}]   ;;  %s6757_s2 = inlined_call_operand.hbm [shape: f32[128,128], index: 2, kind: input, shape index: {}]   ;;  %s6758_s3 = inlined_call_operand.hbm [shape: f32[128,512], index: 3, kind: input, shape index: {}]   ;;  %s6759_s4 = inlined_call_operand.hbm [shape: f32[128,512], index: 4, kind: input, shape index: {}]   ;;  %s6760_s5 = inlined_call_operand.vmem [shape: f32[1,512], index: 5, kind: input, shape index: {}]   ;;  %s6761_s6 = inlined_call_operand.hbm [shape: f32[128,128], index: 6, kind: input, shape index: {}]   ;;  %s6762_s7 = inlined_call_operand.hbm [shape: f32[16,128], index: 7, kind: output, shape index: {0}]   ;;  %s6763_s8 = inlined_call_operand.hbm [shape: f32[16,16], index: 8, kind: output, shape index: {1}]  }
   0x1   :  { %15 = vsyncpa [#allocation8], 0 }
   0x2   :  { %16 = vsyncpa [#allocation11], 0 }
   0x3   :  { %17 = vsyncpa [#allocation14], 0 }
   0x4   :  { %18 = vsyncpa [#allocation6], 0 }
   0x5   :  { %19 = vsyncpa [#allocation17], 0  ;;  %s5802_s27 = smov [#allocation7]   ;;  %s5803_s29 = smov [#allocation10]  }
   0x6   :  { %s37_s28 = sshll.u32 %s5802_s27, 4  ;;  %s61_s30 = sshll.u32 %s5803_s29, 4  ;;  %s38_s28 = int_to_ptr.vmem [resolvable:$true] %s37_s28  ;;  %s5861_s30 = int_to_ptr.vmem [resolvable:$true] %s61_s30 }
   0x7   :  { %s5614_s11 = scalar_lea.hbm %s6756_s1, 2048 }
   0x8   :  { %p5615_p0 = scmp.ne.s32.totalorder %s6756_s1, %s5614_s11  ;;  %p5618_p1 = scmp.lt.u32.totalorder %s5614_s11, %s6756_s1 }
   0xa   :  { %p5620_p2 = pnand %p5618_p1, %p5615_p0 }
   0xc   :  { %5623 = shalt.err (!%p5620_p2)
}
   0xd   :  { %s5624_s16 = scalar_lea.vmem %s38_s28, 2048  ;;  %p5629_p4 = scmp.lt.s32.totalorder %s38_s28, %s38_s28 }
   0xe   :  { %p5625_p3 = scmp.ne.s32.totalorder %s38_s28, %s5624_s16  ;;  %p5630_p5 = scmp.lt.s32.totalorder %s5624_s16, %s5624_s16 }
  0x10   :  { %p5631_p6 = por %p5630_p5, %p5629_p4 }
  0x12   :  { %p5632_p7 = pnand %p5631_p6, %p5625_p3 }
  0x14   :  { %5635 = shalt.err (!%p5632_p7)
}
  0x15   :  { %s5804_s17 = smov 128   ;;  %s5805_s18 = smov 8  }
  0x16   :  { %43 = dma.hbm_to_vmem [thread:$0]  %s6756_s1, 2048, %s38_s28, [#allocation8], %s5804_s17, %s5804_s17, %s5805_s18  }
  0x17   :  { %s5636_s23 = scalar_lea.hbm %s6758_s3, 8192 }
  0x18   :  { %p5637_p8 = scmp.ne.s32.totalorder %s6758_s3, %s5636_s23  ;;  %p5640_p9 = scmp.lt.u32.totalorder %s5636_s23, %s6758_s3 }
  0x1a   :  { %p5642_p10 = pnand %p5640_p9, %p5637_p8 }
  0x1c   :  { %5645 = shalt.err (!%p5642_p10)
}
  0x1d   :  { %s5646_s29 = scalar_lea.vmem %s5861_s30, 8192  ;;  %p5651_p12 = scmp.lt.s32.totalorder %s5861_s30, %s5861_s30 }
  0x1e   :  { %p5647_p11 = scmp.ne.s32.totalorder %s5861_s30, %s5646_s29  ;;  %p5652_p13 = scmp.lt.s32.totalorder %s5646_s29, %s5646_s29 }
  0x20   :  { %p5653_p0 = por %p5652_p13, %p5651_p12 }
  0x22   :  { %p5654_p1 = pnand %p5653_p0, %p5647_p11 }
  0x24   :  { %5657 = shalt.err (!%p5654_p1)
}
  0x25   :  { %s5806_s1 = smov 512   ;;  %s5807_s28 = smov 32  }
  0x26   :  { %67 = dma.hbm_to_vmem [thread:$0]  %s6758_s3, 8192, %s5861_s30, [#allocation11], %s5806_s1, %s5806_s1, %s5807_s28  }
  0x27   :  { %s5808_s11 = smov [#allocation4]   ;;  %s5809_s13 = smov [#allocation9]  }
  0x28   :  { %s25_s12 = sshll.u32 %s5808_s11, 4  ;;  %s49_s14 = sshll.u32 %s5809_s13, 4  ;;  %s26_s12 = int_to_ptr.vmem [resolvable:$true] %s25_s12  ;;  %s5898_s14 = int_to_ptr.vmem [resolvable:$true] %s49_s14 }
  0x29   :  { %s5658_s19 = scalar_lea.hbm %s6755_s0, 256 }
  0x2a   :  { %p5659_p2 = scmp.ne.s32.totalorder %s6755_s0, %s5658_s19  ;;  %p5662_p3 = scmp.lt.u32.totalorder %s5658_s19, %s6755_s0 }
  0x2c   :  { %p5664_p4 = pnand %p5662_p3, %p5659_p2 }
  0x2e   :  { %5667 = shalt.err (!%p5664_p4)
}
  0x2f   :  { %s5668_s3 = scalar_lea.vmem %s26_s12, 256  ;;  %p5673_p6 = scmp.lt.s32.totalorder %s26_s12, %s26_s12 }
  0x30   :  { %p5669_p5 = scmp.ne.s32.totalorder %s26_s12, %s5668_s3  ;;  %p5674_p7 = scmp.lt.s32.totalorder %s5668_s3, %s5668_s3 }
  0x32   :  { %p5675_p8 = por %p5674_p7, %p5673_p6 }
  0x34   :  { %p5676_p9 = pnand %p5675_p8, %p5669_p5 }
  0x36   :  { %5679 = shalt.err (!%p5676_p9)
}
  0x37   :  { %31 = dma.hbm_to_vmem [thread:$0]  %s6755_s0, 256, %s26_s12, [#allocation5], %s5804_s17, %s5804_s17, %s5805_s18  }
  0x38   :  { %s5680_s27 = scalar_lea.hbm %s6757_s2, 2048 }
  0x39   :  { %p5681_p10 = scmp.ne.s32.totalorder %s6757_s2, %s5680_s27  ;;  %p5684_p11 = scmp.lt.u32.totalorder %s5680_s27, %s6757_s2 }
  0x3b   :  { %p5686_p12 = pnand %p5684_p11, %p5681_p10 }
  0x3d   :  { %5689 = shalt.err (!%p5686_p12)
}
  0x3e   :  { %s5690_s13 = scalar_lea.vmem %s5898_s14, 2048  ;;  %p5695_p0 = scmp.lt.s32.totalorder %s5898_s14, %s5898_s14 }
  0x3f   :  { %p5691_p13 = scmp.ne.s32.totalorder %s5898_s14, %s5690_s13  ;;  %p5696_p1 = scmp.lt.s32.totalorder %s5690_s13, %s5690_s13 }
  0x41   :  { %p5697_p2 = por %p5696_p1, %p5695_p0 }
  0x43   :  { %p5698_p3 = pnand %p5697_p2, %p5691_p13 }
  0x45   :  { %5701 = shalt.err (!%p5698_p3)
}
  0x46   :  { %55 = dma.hbm_to_vmem [thread:$0]  %s6757_s2, 2048, %s5898_s14, [#allocation8], %s5804_s17, %s5804_s17, %s5805_s18  }
  0x47   :  { %s5810_s15 = smov [#allocation12]   ;;  %s5811_s19 = smov [#allocation13]  }
  0x48   :  { %s73_s16 = sshll.u32 %s5810_s15, 4  ;;  %s87_s20 = sshll.u32 %s5811_s19, 4  ;;  %s74_s16 = int_to_ptr.vmem [resolvable:$true] %s73_s16  ;;  %s5935_s20 = int_to_ptr.vmem [resolvable:$true] %s87_s20 }
  0x49   :  { %s5702_s23 = scalar_lea.hbm %s6759_s4, 8192 }
  0x4a   :  { %p5703_p4 = scmp.ne.s32.totalorder %s6759_s4, %s5702_s23  ;;  %p5706_p5 = scmp.lt.u32.totalorder %s5702_s23, %s6759_s4 }
  0x4c   :  { %p5708_p6 = pnand %p5706_p5, %p5703_p4 }
  0x4e   :  { %5711 = shalt.err (!%p5708_p6)
}
  0x4f   :  { %s5712_s2 = scalar_lea.vmem %s74_s16, 8192  ;;  %p5717_p8 = scmp.lt.s32.totalorder %s74_s16, %s74_s16 }
  0x50   :  { %p5713_p7 = scmp.ne.s32.totalorder %s74_s16, %s5712_s2  ;;  %p5718_p9 = scmp.lt.s32.totalorder %s5712_s2, %s5712_s2 }
  0x52   :  { %p5719_p10 = por %p5718_p9, %p5717_p8 }
  0x54   :  { %p5720_p11 = pnand %p5719_p10, %p5713_p7 }
  0x56   :  { %5723 = shalt.err (!%p5720_p11)
}
  0x57   :  { %79 = dma.hbm_to_vmem [thread:$0]  %s6759_s4, 8192, %s74_s16, [#allocation11], %s5806_s1, %s5806_s1, %s5807_s28  }
  0x58   :  { %s5724_s9 = scalar_lea.hbm %s6761_s6, 2048 }
  0x59   :  { %p5725_p12 = scmp.ne.s32.totalorder %s6761_s6, %s5724_s9  ;;  %p5728_p13 = scmp.lt.u32.totalorder %s5724_s9, %s6761_s6 }
  0x5b   :  { %p5730_p0 = pnand %p5728_p13, %p5725_p12 }
  0x5d   :  { %5733 = shalt.err (!%p5730_p0)
}
  0x5e   :  { %s5734_s12 = scalar_lea.vmem %s5935_s20, 2048  ;;  %p5739_p2 = scmp.lt.s32.totalorder %s5935_s20, %s5935_s20 }
  0x5f   :  { %p5735_p1 = scmp.ne.s32.totalorder %s5935_s20, %s5734_s12  ;;  %p5740_p3 = scmp.lt.s32.totalorder %s5734_s12, %s5734_s12 }
  0x61   :  { %p5741_p4 = por %p5740_p3, %p5739_p2 }
  0x63   :  { %p5742_p5 = pnand %p5741_p4, %p5735_p1 }
  0x65   :  { %5745 = shalt.err (!%p5742_p5)
}
  0x66   :  { %93 = dma.hbm_to_vmem [thread:$0]  %s6761_s6, 2048, %s5935_s20, [#allocation14], %s5804_s17, %s5804_s17, %s5805_s18  }
  0x67   :  { %5790 = dma.done.wait [#allocation5], 256  }
  0x68   :  { %5791 = vsyncadd [#allocation5], 4294967040 }
  0x69   :  { %5792 = dma.done.wait [#allocation8], 4096  }
  0x6a   :  { %5793 = vsyncadd [#allocation8], 4294963200 }
  0x6b   :  { %5794 = dma.done.wait [#allocation11], 16384  }
  0x6c   :  { %5795 = vsyncadd [#allocation11], 4294950912 }
  0x6d   :  { %5796 = dma.done.wait [#allocation14], 2048  }
  0x6e   :  { %5797 = vsyncadd [#allocation14], 4294965248  ;;  %v114_v0 = vld [vmem:[#allocation7] sm:$0xff]  ;;  %v115_v1 = vld [vmem:[#allocation7 + $0x8] sm:$0xff]  ;;  %vm3806_vm0 = vcmask 130048  }
  0x6f   :  { %v205_v2 = vld [vmem:[#allocation9] sm:$0xff]  ;;  %v4272_v3 = vpack.c.bf16 %v115_v1, %v114_v0  ;;  %v206_v4 = vld [vmem:[#allocation9 + $0x8] sm:$0xff]  ;;  %v116_v5 = vld [vmem:[#allocation7 + $0x10] sm:$0xff] }
  0x70   :  { %v117_v6 = vld [vmem:[#allocation7 + $0x18] sm:$0xff]  ;;  %v4304_v7 = vpack.c.bf16 %v206_v4, %v205_v2  ;;  %v207_v9 = vld [vmem:[#allocation9 + $0x10] sm:$0xff]  ;;  %v118_v11 = vld [vmem:[#allocation7 + $0x20] sm:$0xff] }
  0x71   :  { %v4276_v8 = vpack.c.bf16 %v117_v6, %v116_v5  ;;  %v208_v10 = vld [vmem:[#allocation9 + $0x18] sm:$0xff]  ;;  %4273 = vmatprep.subr.bf16.mxu0 %v4272_v3  ;;  %v119_v13 = vld [vmem:[#allocation7 + $0x28] sm:$0xff]  ;;  %v209_v14 = vld [vmem:[#allocation9 + $0x20] sm:$0xff] }
  0x72   :  { %v4308_v12 = vpack.c.bf16 %v208_v10, %v207_v9  ;;  %v210_v15 = vld [vmem:[#allocation9 + $0x28] sm:$0xff]  ;;  %4305 = vmatprep.subr.bf16.mxu1 %v4304_v7  ;;  %4275 = vmatpush3.bf16.msra.mxu0 %v4272_v3  ;;  %v4280_v16 = vpack.c.bf16 %v119_v13, %v118_v11  ;;  %v120_v18 = vld [vmem:[#allocation7 + $0x30] sm:$0xff]  ;;  %v121_v19 = vld [vmem:[#allocation7 + $0x38] sm:$0xff] }
  0x73   :  { %4307 = vmatpush3.bf16.msra.mxu1 %v4304_v7  ;;  %4277 = vmatprep.subr.bf16.mxu0 %v4276_v8  ;;  %v4312_v17 = vpack.c.bf16 %v210_v15, %v209_v14  ;;  %v211_v20 = vld [vmem:[#allocation9 + $0x30] sm:$0xff]  ;;  %v212_v21 = vld [vmem:[#allocation9 + $0x38] sm:$0xff]  ;;  %v4284_v22 = vpack.c.bf16 %v121_v19, %v120_v18  ;;  %v122_v24 = vld [vmem:[#allocation7 + $0x40] sm:$0xff] }
  0x74   :  { %4309 = vmatprep.subr.bf16.mxu1 %v4308_v12  ;;  %v4316_v23 = vpack.c.bf16 %v212_v21, %v211_v20  ;;  %v123_v25 = vld [vmem:[#allocation7 + $0x48] sm:$0xff]  ;;  %v5972_v26 = vld [vmem:[#allocation4] sm:$0xff]  ;;  %v213_v27 = vld [vmem:[#allocation9 + $0x40] sm:$0xff] }
  0x75   :  { %v214_v28 = vld [vmem:[#allocation9 + $0x48] sm:$0xff]  ;;  %4185 = vmatprep.mubr.f32.mxu0 %v5972_v26  ;;  %4220 = vmatprep.mubr.f32.mxu1 %v5972_v26  ;;  %v4288_v29 = vpack.c.bf16 %v123_v25, %v122_v24  ;;  %v124_v31 = vld [vmem:[#allocation7 + $0x50] sm:$0xff]  ;;  %v125_v32 = vld [vmem:[#allocation7 + $0x58] sm:$0xff] }
  0x76   :  { %4279 = vmatpush3.bf16.msra.mxu0 %v4276_v8  ;;  %v4320_v30 = vpack.c.bf16 %v214_v28, %v213_v27  ;;  %v215_v33 = vld [vmem:[#allocation9 + $0x50] sm:$0xff]  ;;  %v216_v34 = vld [vmem:[#allocation9 + $0x58] sm:$0xff]  ;;  %v4292_v35 = vpack.c.bf16 %v125_v32, %v124_v31  ;;  %v126_v37 = vld [vmem:[#allocation7 + $0x60] sm:$0xff] }
  0x77   :  { %4311 = vmatpush3.bf16.msra.mxu1 %v4308_v12  ;;  %4281 = vmatprep.subr.bf16.mxu0 %v4280_v16  ;;  %v4324_v36 = vpack.c.bf16 %v216_v34, %v215_v33  ;;  %v127_v38 = vld [vmem:[#allocation7 + $0x68] sm:$0xff]  ;;  %v217_v39 = vld [vmem:[#allocation9 + $0x60] sm:$0xff]  ;;  %v128_v43 = vld [vmem:[#allocation7 + $0x70] sm:$0xff] }
  0x78   :  { %4313 = vmatprep.subr.bf16.mxu1 %v4312_v17  ;;  %v218_v40 = vld [vmem:[#allocation9 + $0x68] sm:$0xff]  ;;  %v4296_v41 = vpack.c.bf16 %v127_v38, %v126_v37  ;;  %v129_v44 = vld [vmem:[#allocation7 + $0x78] sm:$0xff]  ;;  %v219_v45 = vld [vmem:[#allocation9 + $0x70] sm:$0xff] }
  0x79   :  { %v4328_v42 = vpack.c.bf16 %v218_v40, %v217_v39  ;;  %v220_v46 = vld [vmem:[#allocation9 + $0x78] sm:$0xff]  ;;  %v4300_v47 = vpack.c.bf16 %v129_v44, %v128_v43  ;;  %v299_v49 = vld [vmem:[#allocation10 + $0x8] sm:$0xff]  ;;  %v298_v54 = vld [vmem:[#allocation10] sm:$0xff] }
  0x7a   :  { %4283 = vmatpush3.bf16.msra.mxu0 %v4280_v16  ;;  %v4332_v48 = vpack.c.bf16 %v220_v46, %v219_v45  ;;  %v303_v50 = vld [vmem:[#allocation10 + $0x28] sm:$0xff]  ;;  %v301_v51 = vld [vmem:[#allocation10 + $0x18] sm:$0xff]  ;;  %v302_v55 = vld [vmem:[#allocation10 + $0x20] sm:$0xff] }
  0x7b   :  { %4315 = vmatpush3.bf16.msra.mxu1 %v4312_v17  ;;  %4285 = vmatprep.subr.bf16.mxu0 %v4284_v22  ;;  %v305_v52 = vld [vmem:[#allocation10 + $0x38] sm:$0xff]  ;;  %v4336_v53 = vpack.c.bf16 %v303_v50, %v299_v49  ;;  %v300_v56 = vld [vmem:[#allocation10 + $0x10] sm:$0xff]  ;;  %v307_v59 = vld [vmem:[#allocation10 + $0x48] sm:$0xff]  ;;  %v4338_v0 = vpack.c.bf16 %v302_v55, %v298_v54 }
  0x7c   :  { %4317 = vmatprep.subr.bf16.mxu1 %v4316_v23  ;;  %v4368_v57 = vpack.c.bf16 %v305_v52, %v301_v51  ;;  %v304_v58 = vld [vmem:[#allocation10 + $0x30] sm:$0xff]  ;;  %v311_v60 = vld [vmem:[#allocation10 + $0x68] sm:$0xff]  ;;  %v309_v61 = vld [vmem:[#allocation10 + $0x58] sm:$0xff] }
  0x7d   :  { %v313_v62 = vld [vmem:[#allocation10 + $0x78] sm:$0xff]  ;;  %v4370_v1 = vpack.c.bf16 %v304_v58, %v300_v56  ;;  %v4340_v2 = vpack.c.bf16 %v311_v60, %v307_v59  ;;  %v306_v3 = vld [vmem:[#allocation10 + $0x40] sm:$0xff]  ;;  %v308_v5 = vld [vmem:[#allocation10 + $0x50] sm:$0xff] }
  0x7e   :  { %4287 = vmatpush3.bf16.msra.mxu0 %v4284_v22  ;;  %v5976_v63 = vld [vmem:[#allocation4 + $0x8] sm:$0xff]  ;;  %v310_v4 = vld [vmem:[#allocation10 + $0x60] sm:$0xff]  ;;  %v4372_v6 = vpack.c.bf16 %v313_v62, %v309_v61  ;;  %v312_v7 = vld [vmem:[#allocation10 + $0x70] sm:$0xff]  ;;  %v5812_v22 = vmov 0.0  }
  0x7f   :  { %4319 = vmatpush3.bf16.msra.mxu1 %v4316_v23  ;;  %4289 = vmatprep.subr.bf16.mxu0 %v4288_v29  ;;  %v315_v8 = vld [vmem:[#allocation10 + $0x88] sm:$0xff]  ;;  %v317_v10 = vld [vmem:[#allocation10 + $0x98] sm:$0xff]  ;;  %v4342_v12 = vpack.c.bf16 %v310_v4, %v306_v3  ;;  %v4374_v13 = vpack.c.bf16 %v312_v7, %v308_v5  ;;  %v314_v15 = vld [vmem:[#allocation10 + $0x80] sm:$0xff] }
  0x80   :  { %4321 = vmatprep.subr.bf16.mxu1 %v4320_v30  ;;  %v319_v9 = vld [vmem:[#allocation10 + $0xa8] sm:$0xff]  ;;  %v321_v11 = vld [vmem:[#allocation10 + $0xb8] sm:$0xff]  ;;  %v318_v16 = vld [vmem:[#allocation10 + $0xa0] sm:$0xff] }
  0x81   :  { %v4344_v14 = vpack.c.bf16 %v319_v9, %v315_v8  ;;  %v316_v17 = vld [vmem:[#allocation10 + $0x90] sm:$0xff]  ;;  %v4376_v18 = vpack.c.bf16 %v321_v11, %v317_v10  ;;  %v323_v20 = vld [vmem:[#allocation10 + $0xc8] sm:$0xff]  ;;  %v325_v23 = vld [vmem:[#allocation10 + $0xd8] sm:$0xff]  ;;  %v4346_v25 = vpack.c.bf16 %v318_v16, %v314_v15 }
  0x82   :  { %4291 = vmatpush3.bf16.msra.mxu0 %v4288_v29  ;;  %v320_v19 = vld [vmem:[#allocation10 + $0xb0] sm:$0xff]  ;;  %v327_v21 = vld [vmem:[#allocation10 + $0xe8] sm:$0xff]  ;;  %v329_v24 = vld [vmem:[#allocation10 + $0xf8] sm:$0xff] }
  0x83   :  { %4323 = vmatpush3.bf16.msra.mxu1 %v4320_v30  ;;  %4293 = vmatprep.subr.bf16.mxu0 %v4292_v35  ;;  %v4378_v27 = vpack.c.bf16 %v320_v19, %v316_v17  ;;  %v4348_v28 = vpack.c.bf16 %v327_v21, %v323_v20  ;;  %v322_v29 = vld [vmem:[#allocation10 + $0xc0] sm:$0xff]  ;;  %v324_v31 = vld [vmem:[#allocation10 + $0xd0] sm:$0xff]  ;;  %v4380_v32 = vpack.c.bf16 %v329_v24, %v325_v23  ;;  %v331_v34 = vld [vmem:[#allocation10 + $0x108] sm:$0xff] }
  0x84   :  { %4325 = vmatprep.subr.bf16.mxu1 %v4324_v36  ;;  %v326_v30 = vld [vmem:[#allocation10 + $0xe0] sm:$0xff]  ;;  %v328_v33 = vld [vmem:[#allocation10 + $0xf0] sm:$0xff]  ;;  %v337_v37 = vld [vmem:[#allocation10 + $0x138] sm:$0xff] }
  0x85   :  { %v4350_v38 = vpack.c.bf16 %v326_v30, %v322_v29  ;;  %v4382_v39 = vpack.c.bf16 %v328_v33, %v324_v31  ;;  %v332_v43 = vld [vmem:[#allocation10 + $0x110] sm:$0xff]  ;;  %v339_v46 = vld [vmem:[#allocation10 + $0x148] sm:$0xff]  ;;  %v345_v49 = vld [vmem:[#allocation10 + $0x178] sm:$0xff] }
  0x86   :  { %4295 = vmatpush3.bf16.msra.mxu0 %v4292_v35  ;;  %v335_v35 = vld [vmem:[#allocation10 + $0x128] sm:$0xff]  ;;  %v336_v45 = vld [vmem:[#allocation10 + $0x130] sm:$0xff]  ;;  %v342_v54 = vld [vmem:[#allocation10 + $0x160] sm:$0xff] }
  0x87   :  { %4327 = vmatpush3.bf16.msra.mxu1 %v4324_v36  ;;  %4297 = vmatprep.subr.bf16.mxu0 %v4296_v41  ;;  %v333_v36 = vld [vmem:[#allocation10 + $0x118] sm:$0xff]  ;;  %v4352_v40 = vpack.c.bf16 %v335_v35, %v331_v34  ;;  %v4386_v51 = vpack.c.bf16 %v336_v45, %v332_v43  ;;  %v340_v55 = vld [vmem:[#allocation10 + $0x150] sm:$0xff]  ;;  %v347_v58 = vld [vmem:[#allocation10 + $0x188] sm:$0xff] }
  0x88   :  { %4329 = vmatprep.subr.bf16.mxu1 %v4328_v42  ;;  %v4384_v44 = vpack.c.bf16 %v337_v37, %v333_v36  ;;  %v351_v59 = vld [vmem:[#allocation10 + $0x1a8] sm:$0xff]  ;;  %v349_v60 = vld [vmem:[#allocation10 + $0x198] sm:$0xff]  ;;  %v350_v3 = vld [vmem:[#allocation10 + $0x1a0] sm:$0xff] }
  0x89   :  { %v353_v61 = vld [vmem:[#allocation10 + $0x1b8] sm:$0xff]  ;;  %v348_v4 = vld [vmem:[#allocation10 + $0x190] sm:$0xff]  ;;  %v355_v7 = vld [vmem:[#allocation10 + $0x1c8] sm:$0xff] }
  0x8a   :  { %4299 = vmatpush3.bf16.msra.mxu0 %v4296_v41  ;;  %v330_v41 = vld [vmem:[#allocation10 + $0x100] sm:$0xff]  ;;  %v4392_v5 = vpack.c.bf16 %v353_v61, %v349_v60  ;;  %v359_v8 = vld [vmem:[#allocation10 + $0x1e8] sm:$0xff]  ;;  %v357_v9 = vld [vmem:[#allocation10 + $0x1d8] sm:$0xff] }
  0x8b   :  { %4331 = vmatpush3.bf16.msra.mxu1 %v4328_v42  ;;  %4301 = vmatprep.subr.bf16.mxu0 %v4300_v47  ;;  %v334_v42 = vld [vmem:[#allocation10 + $0x120] sm:$0xff]  ;;  %v361_v10 = vld [vmem:[#allocation10 + $0x1f8] sm:$0xff]  ;;  %v356_v16 = vld [vmem:[#allocation10 + $0x1d0] sm:$0xff] }
  0x8c   :  { %4333 = vmatprep.subr.bf16.mxu1 %v4332_v48  ;;  %v4354_v50 = vpack.c.bf16 %v334_v42, %v330_v41  ;;  %v358_v15 = vld [vmem:[#allocation10 + $0x1e0] sm:$0xff]  ;;  %v4396_v17 = vpack.c.bf16 %v361_v10, %v357_v9  ;;  %v547_v19 = vld [vmem:[#allocation12 + $0x8] sm:$0xff]  ;;  %v549_v21 = vld [vmem:[#allocation12 + $0x18] sm:$0xff] }
  0x8d   :  { %v551_v20 = vld [vmem:[#allocation12 + $0x28] sm:$0xff]  ;;  %v553_v23 = vld [vmem:[#allocation12 + $0x38] sm:$0xff]  ;;  %v550_v29 = vld [vmem:[#allocation12 + $0x20] sm:$0xff] }
  0x8e   :  { %4303 = vmatpush3.bf16.msra.mxu0 %v4300_v47  ;;  %v343_v47 = vld [vmem:[#allocation10 + $0x168] sm:$0xff]  ;;  %v548_v30 = vld [vmem:[#allocation12 + $0x10] sm:$0xff]  ;;  %v5984_v31 = vpack.c.bf16 %v553_v23, %v549_v21  ;;  %v557_v35 = vld [vmem:[#allocation12 + $0x58] sm:$0xff] }
  0x8f   :  { %4335 = vmatpush3.bf16.msra.mxu1 %v4332_v48  ;;  %4337 = vmatprep.subr.bf16.mxu0 %v4336_v53  ;;  %v341_v48 = vld [vmem:[#allocation10 + $0x158] sm:$0xff]  ;;  %v4356_v52 = vpack.c.bf16 %v343_v47, %v339_v46  ;;  %v338_v53 = vld [vmem:[#allocation10 + $0x140] sm:$0xff]  ;;  %v555_v33 = vld [vmem:[#allocation12 + $0x48] sm:$0xff] }
  0x90   :  { %4369 = vmatprep.subr.bf16.mxu1 %v4368_v57  ;;  %v4388_v56 = vpack.c.bf16 %v345_v49, %v341_v48  ;;  %v344_v57 = vld [vmem:[#allocation10 + $0x170] sm:$0xff]  ;;  %v4358_v62 = vpack.c.bf16 %v342_v54, %v338_v53  ;;  %v559_v34 = vld [vmem:[#allocation12 + $0x68] sm:$0xff]  ;;  %v561_v36 = vld [vmem:[#allocation12 + $0x78] sm:$0xff] }
  0x91   :  { %4186 = vmatmul.mubr.f32.vlgmr.msra.gmra.mrb[0].mxu0 %v5976_v63  ;;  %v558_v41 = vld [vmem:[#allocation12 + $0x60] sm:$0xff]  ;;  %v556_v42 = vld [vmem:[#allocation12 + $0x50] sm:$0xff]  ;;  %v5994_v43 = vpack.c.bf16 %v561_v36, %v557_v35  ;;  %v563_v45 = vld [vmem:[#allocation12 + $0x88] sm:$0xff] }
  0x92   :  { %4221 = vmatmul.mubr.f32.vlgmr.msra.gmra.mrb[0].mxu1 %v5976_v63  ;;  %4339 = vmatpush1.bf16.msra.mxu0 %v4338_v0  ;;  %v4390_v0 = vpack.c.bf16 %v344_v57, %v340_v55  ;;  %v567_v46 = vld [vmem:[#allocation12 + $0xa8] sm:$0xff]  ;;  %v565_v47 = vld [vmem:[#allocation12 + $0x98] sm:$0xff]  ;;  %v566_v53 = vld [vmem:[#allocation12 + $0xa0] sm:$0xff] }
  0x93   :  { %4371 = vmatpush1.bf16.msra.mxu1 %v4370_v1  ;;  %4341 = vmatprep.subr.bf16.mxu0 %v4340_v2  ;;  %v4360_v1 = vpack.c.bf16 %v351_v59, %v347_v58  ;;  %v346_v2 = vld [vmem:[#allocation10 + $0x180] sm:$0xff]  ;;  %v569_v48 = vld [vmem:[#allocation12 + $0xb8] sm:$0xff]  ;;  %v564_v54 = vld [vmem:[#allocation12 + $0x90] sm:$0xff] }
  0x94   :  { %4373 = vmatprep.subr.bf16.mxu1 %v4372_v6  ;;  %448 = vmatprep.mubr.f32.mxu0 %v5812_v22  ;;  %v352_v6 = vld [vmem:[#allocation10 + $0x1b0] sm:$0xff]  ;;  %v4362_v11 = vpack.c.bf16 %v350_v3, %v346_v2  ;;  %v6008_v55 = vpack.c.bf16 %v569_v48, %v565_v47  ;;  %v575_v57 = vld [vmem:[#allocation12 + $0xe8] sm:$0xff]  ;;  %v573_v58 = vld [vmem:[#allocation12 + $0xd8] sm:$0xff] }
  0x95   :  { %525 = vmatprep.mubr.f32.mxu1 %v5812_v22  ;;  %v577_v59 = vld [vmem:[#allocation12 + $0xf8] sm:$0xff]  ;;  %v572_v2 = vld [vmem:[#allocation12 + $0xd0] sm:$0xff]  ;;  %v603_v48 = vld [vmem:[#allocation12 + $0x1c8] sm:$0xff] }
  0x96   :  { %4343 = vmatpush1.bf16.msra.mxu0 %v4342_v12  ;;  %v4394_v12 = vpack.c.bf16 %v352_v6, %v348_v4  ;;  %v6024_v3 = vpack.c.bf16 %v577_v59, %v573_v58  ;;  %v576_v4 = vld [vmem:[#allocation12 + $0xf0] sm:$0xff]  ;;  %v583_v6 = vld [vmem:[#allocation12 + $0x128] sm:$0xff]  ;;  %v601_v35 = vld [vmem:[#allocation12 + $0x1b8] sm:$0xff] }
  0x97   :  { %4375 = vmatpush1.bf16.msra.mxu1 %v4374_v13  ;;  %4345 = vmatprep.subr.bf16.mxu0 %v4344_v14  ;;  %v4364_v13 = vpack.c.bf16 %v359_v8, %v355_v7  ;;  %v354_v14 = vld [vmem:[#allocation10 + $0x1c0] sm:$0xff]  ;;  %v585_v7 = vld [vmem:[#allocation12 + $0x138] sm:$0xff]  ;;  %v6033_v9 = vpack.c.bf16 %v576_v4, %v572_v2  ;;  %v600_v47 = vld [vmem:[#allocation12 + $0x1b0] sm:$0xff] }
  0x98   :  { %4377 = vmatprep.subr.bf16.mxu1 %v4376_v18  ;;  %v360_v18 = vld [vmem:[#allocation10 + $0x1f0] sm:$0xff]  ;;  %v4366_v24 = vpack.c.bf16 %v358_v15, %v354_v14  ;;  %v602_v58 = vld [vmem:[#allocation12 + $0x1c0] sm:$0xff] }
  0x99   :  { %v584_v15 = vld [vmem:[#allocation12 + $0x130] sm:$0xff]  ;;  %v606_v59 = vld [vmem:[#allocation12 + $0x1e0] sm:$0xff] }
  0x9a   :  { %4347 = vmatpush1.bf16.msra.mxu0 %v4346_v25  ;;  %v4398_v25 = vpack.c.bf16 %v360_v18, %v356_v16  ;;  %v587_v16 = vld [vmem:[#allocation12 + $0x148] sm:$0xff]  ;;  %v589_v18 = vld [vmem:[#allocation12 + $0x158] sm:$0xff]  ;;  %v608_v2 = vld [vmem:[#allocation12 + $0x1f0] sm:$0xff]  ;;  %v6077_v4 = vpack.c.bf16 %v606_v59, %v602_v58 }
  0x9b   :  { %4379 = vmatpush1.bf16.msra.mxu1 %v4378_v27  ;;  %4349 = vmatprep.subr.bf16.mxu0 %v4348_v28  ;;  %v5982_v27 = vpack.c.bf16 %v551_v20, %v547_v19  ;;  %v546_v28 = vld [vmem:[#allocation12] sm:$0xff]  ;;  %v593_v19 = vld [vmem:[#allocation12 + $0x178] sm:$0xff] }
  0x9c   :  { %4381 = vmatprep.subr.bf16.mxu1 %v4380_v32  ;;  %v552_v32 = vld [vmem:[#allocation12 + $0x30] sm:$0xff]  ;;  %v5986_v37 = vpack.c.bf16 %v550_v29, %v546_v28  ;;  %v6050_v29 = vpack.c.bf16 %v593_v19, %v589_v18 }
  0x9d   :  { %v588_v28 = vld [vmem:[#allocation12 + $0x150] sm:$0xff] }
  0x9e   :  { %4351 = vmatpush1.bf16.msra.mxu0 %v4350_v38  ;;  %v5989_v38 = vpack.c.bf16 %v552_v32, %v548_v30  ;;  %v592_v30 = vld [vmem:[#allocation12 + $0x170] sm:$0xff]  ;;  %v595_v32 = vld [vmem:[#allocation12 + $0x188] sm:$0xff] }
  0x9f   :  { %4383 = vmatpush1.bf16.msra.mxu1 %v4382_v39  ;;  %4353 = vmatprep.subr.bf16.mxu0 %v4352_v40  ;;  %v5991_v39 = vpack.c.bf16 %v559_v34, %v555_v33  ;;  %v554_v40 = vld [vmem:[#allocation12 + $0x40] sm:$0xff]  ;;  %v599_v33 = vld [vmem:[#allocation12 + $0x1a8] sm:$0xff]  ;;  %v597_v34 = vld [vmem:[#allocation12 + $0x198] sm:$0xff] }
  0xa0   :  { %4385 = vmatprep.subr.bf16.mxu1 %v4384_v44  ;;  %v560_v44 = vld [vmem:[#allocation12 + $0x70] sm:$0xff]  ;;  %v5999_v49 = vpack.c.bf16 %v558_v41, %v554_v40  ;;  %v6057_v40 = vpack.c.bf16 %v592_v30, %v588_v28  ;;  %v6059_v41 = vpack.c.bf16 %v599_v33, %v595_v32 }
  0xa2   :  { %4355 = vmatpush1.bf16.msra.mxu0 %v4354_v50  ;;  %v6003_v50 = vpack.c.bf16 %v560_v44, %v556_v42  ;;  %v594_v42 = vld [vmem:[#allocation12 + $0x180] sm:$0xff] }
  0xa3   :  { %4387 = vmatpush1.bf16.msra.mxu1 %v4386_v51  ;;  %4357 = vmatprep.subr.bf16.mxu0 %v4356_v52  ;;  %v6005_v51 = vpack.c.bf16 %v567_v46, %v563_v45  ;;  %v562_v52 = vld [vmem:[#allocation12 + $0x80] sm:$0xff]  ;;  %v596_v45 = vld [vmem:[#allocation12 + $0x190] sm:$0xff]  ;;  %v6062_v46 = vpack.c.bf16 %v601_v35, %v597_v34 }
  0xa4   :  { %4389 = vmatprep.subr.bf16.mxu1 %v4388_v56  ;;  %v571_v56 = vld [vmem:[#allocation12 + $0xc8] sm:$0xff]  ;;  %v6014_v60 = vpack.c.bf16 %v566_v53, %v562_v52  ;;  %v598_v44 = vld [vmem:[#allocation12 + $0x1a0] sm:$0xff]  ;;  %v605_v53 = vld [vmem:[#allocation12 + $0x1d8] sm:$0xff] }
  0xa5   :  { %v607_v52 = vld [vmem:[#allocation12 + $0x1e8] sm:$0xff] }
  0xa6   :  { %4359 = vmatpush1.bf16.msra.mxu0 %v4358_v62  ;;  %v6021_v62 = vpack.c.bf16 %v575_v57, %v571_v56  ;;  %v6069_v56 = vpack.c.bf16 %v600_v47, %v596_v45  ;;  %v6071_v57 = vpack.c.bf16 %v607_v52, %v603_v48 }
  0xa7   :  { %4391 = vmatpush1.bf16.msra.mxu1 %v4390_v0  ;;  %4361 = vmatprep.subr.bf16.mxu0 %v4360_v1  ;;  %v570_v0 = vld [vmem:[#allocation12 + $0xc0] sm:$0xff] }
  0xa8   :  { %4393 = vmatprep.subr.bf16.mxu1 %v4392_v5  ;;  %v574_v1 = vld [vmem:[#allocation12 + $0xe0] sm:$0xff]  ;;  %v579_v5 = vld [vmem:[#allocation12 + $0x108] sm:$0xff] }
  0xa9   :  { %v6029_v8 = vpack.c.bf16 %v574_v1, %v570_v0  ;;  %v6035_v10 = vpack.c.bf16 %v583_v6, %v579_v5  ;;  %v604_v1 = vld [vmem:[#allocation12 + $0x1d0] sm:$0xff] }
  0xaa   :  { %4363 = vmatpush1.bf16.msra.mxu0 %v4362_v11  ;;  %v578_v11 = vld [vmem:[#allocation12 + $0x100] sm:$0xff]  ;;  %v6081_v5 = vpack.c.bf16 %v608_v2, %v604_v1 }
  0xab   :  { %4395 = vmatpush1.bf16.msra.mxu1 %v4394_v12  ;;  %4365 = vmatprep.subr.bf16.mxu0 %v4364_v13  ;;  %v582_v12 = vld [vmem:[#allocation12 + $0x120] sm:$0xff]  ;;  %v580_v13 = vld [vmem:[#allocation12 + $0x110] sm:$0xff] }
  0xac   :  { %4397 = vmatprep.subr.bf16.mxu1 %v4396_v17  ;;  %v591_v17 = vld [vmem:[#allocation12 + $0x168] sm:$0xff]  ;;  %v6041_v20 = vpack.c.bf16 %v582_v12, %v578_v11  ;;  %v6045_v21 = vpack.c.bf16 %v584_v15, %v580_v13  ;;  %v364_v13 = vlaneseq }
  0xad   :  { %v6047_v23 = vpack.c.bf16 %v591_v17, %v587_v16  ;;  %v362_v17 = vld [vmem:[%s6760_s5] sm:$0xf]  ;;  %s5814_s5 = smov [#allocation16]  }
  0xae   :  { %4367 = vmatpush1.bf16.msra.mxu0 %v4366_v24  ;;  %v586_v24 = vld [vmem:[#allocation12 + $0x140] sm:$0xff]  ;;  %v365_v15 = vshrl.u32 %v364_v13, 7  ;;  %s4054_s15 = sshll.u32 %s5814_s5, 4  ;;  %s4055_s15 = int_to_ptr.vmem [resolvable:$true] %s4054_s15 }
  0xaf   :  { %4399 = vmatpush1.bf16.msra.mxu1 %v4398_v25  ;;  %4401 = vmatprep.subr.bf16.mxu0 %v5982_v27  ;;  %v590_v25 = vld [vmem:[#allocation12 + $0x160] sm:$0xff]  ;;  %s5746_s16 = scalar_lea.vmem %s4055_s15, 256  ;;  %p5751_p7 = scmp.lt.s32.totalorder %s4055_s15, %s4055_s15 }
  0xb0   :  { %4433 = vmatprep.subr.bf16.mxu1 %v5984_v31  ;;  %v6053_v36 = vpack.c.bf16 %v590_v25, %v586_v24  ;;  %v366_v16 = vsub.s32 0, %v365_v15  ;;  %v374_v18 = vsub.s32 2, %v365_v15  ;;  %v370_v19 = vsub.s32 1, %v365_v15  ;;  %p5747_p6 = scmp.ne.s32.totalorder %s4055_s15, %s5746_s16  ;;  %p5752_p8 = scmp.lt.s32.totalorder %s5746_s16, %s5746_s16 }
  0xb1   :  { %449 = vmatmul.mubr.f32.vlgmr.msra.gmra.mrb[2].mxu0 %v5972_v26  ;;  %v378_v24 = vsub.s32 3, %v365_v15 }
  0xb2   :  { %526 = vmatmul.mubr.f32.vlgmr.msra.gmra.mrb[2].mxu1 %v5972_v26  ;;  %4403 = vmatpush1.bf16.msra.mxu0 %v5986_v37  ;;  %v568_v26 = vld [vmem:[#allocation12 + $0xb0] sm:$0xff]  ;;  %v367_v25 = vrot.slane %v362_v17, %v366_v16  ;;  %v375_v28 = vrot.slane %v362_v17, %v374_v18  ;;  %v371_v30 = vrot.slane %v362_v17, %v370_v19  ;;  %p5753_p9 = por %p5752_p8, %p5751_p7 }
  0xb3   :  { %4435 = vmatpush1.bf16.msra.mxu1 %v5989_v38  ;;  %4405 = vmatprep.subr.bf16.mxu0 %v5991_v39  ;;  %v6019_v61 = vpack.c.bf16 %v568_v26, %v564_v54  ;;  %v609_v54 = vld [vmem:[#allocation12 + $0x1f8] sm:$0xff]  ;;  %v6065_v26 = vpack.c.bf16 %v598_v44, %v594_v42  ;;  %v379_v32 = vrot.slane %v362_v17, %v378_v24 }
  0xb4   :  { %4437 = vmatprep.subr.bf16.mxu1 %v5994_v43  ;;  %454 = vmatprep.mubr.f32.mxu0 %v5812_v22  ;;  %v6074_v0 = vpack.c.bf16 %v609_v54, %v605_v53  ;;  %p5754_p10 = pnand %p5753_p9, %p5747_p6 }
  0xb5   :  { %531 = vmatprep.mubr.f32.mxu1 %v5812_v22  ;;  %455 = vmatmul.mubr.f32.gmra.mrb[4].mxu0 %v5976_v63 }
  0xb6   :  { %4407 = vmatpush1.bf16.msra.mxu0 %v5999_v49  ;;  %532 = vmatmul.mubr.f32.gmra.mrb[4].mxu1 %v5976_v63  ;;  %v581_v63 = vld [vmem:[#allocation12 + $0x118] sm:$0xff] }
  0xb7   :  { %4439 = vmatpush1.bf16.msra.mxu1 %v6003_v50  ;;  %4409 = vmatprep.subr.bf16.mxu0 %v6005_v51  ;;  %v6038_v14 = vpack.c.bf16 %v585_v7, %v581_v63 }
  0xb8   :  { %4441 = vmatprep.subr.bf16.mxu1 %v6008_v55  ;;  %675 = vmatprep.mubr.f32.mxu0 %v5812_v22 }
  0xb9   :  { %746 = vmatprep.mubr.f32.mxu1 %v5812_v22 }
  0xba   :  { %4411 = vmatpush1.bf16.msra.mxu0 %v6014_v60 }
  0xbb   :  { %4443 = vmatpush1.bf16.msra.mxu1 %v6019_v61  ;;  %4413 = vmatprep.subr.bf16.mxu0 %v6021_v62 }
  0xbc   :  { %4445 = vmatprep.subr.bf16.mxu1 %v6024_v3 }
  0xbe   :  { %4415 = vmatpush1.bf16.msra.mxu0 %v6029_v8 }
  0xbf   :  { %4447 = vmatpush1.bf16.msra.mxu1 %v6033_v9  ;;  %4417 = vmatprep.subr.bf16.mxu0 %v6035_v10 }
  0xc0   :  { %4449 = vmatprep.subr.bf16.mxu1 %v6038_v14 }
  0xc2   :  { %4419 = vmatpush1.bf16.msra.mxu0 %v6041_v20 }
  0xc3   :  { %4451 = vmatpush1.bf16.msra.mxu1 %v6045_v21  ;;  %4421 = vmatprep.subr.bf16.mxu0 %v6047_v23 }
  0xc4   :  { %4453 = vmatprep.subr.bf16.mxu1 %v6050_v29 }
  0xc6   :  { %4423 = vmatpush1.bf16.msra.mxu0 %v6053_v36 }
  0xc7   :  { %4455 = vmatpush1.bf16.msra.mxu1 %v6057_v40  ;;  %4425 = vmatprep.subr.bf16.mxu0 %v6059_v41 }
  0xc8   :  { %4457 = vmatprep.subr.bf16.mxu1 %v6062_v46 }
  0xca   :  { %4427 = vmatpush1.bf16.msra.mxu0 %v6065_v26 }
  0xcb   :  { %4459 = vmatpush1.bf16.msra.mxu1 %v6069_v56  ;;  %4429 = vmatprep.subr.bf16.mxu0 %v6071_v57 }
  0xcc   :  { %4461 = vmatprep.subr.bf16.mxu1 %v6074_v0 }
  0xce   :  { %4431 = vmatpush1.bf16.msra.mxu0 %v6077_v4 }
  0xcf   :  { %4463 = vmatpush1.bf16.msra.mxu1 %v6081_v5  ;;  %4465 = vmatprep.subr.bf16.mxu0 %v5982_v27 }
  0xd0   :  { %4497 = vmatprep.subr.bf16.mxu1 %v5984_v31 }
  0xd1   :  { %676 = vmatmul.mubr.f32.vlgmr.msra.gmra.mrb[6].mxu0 %v5812_v22 }
  0xd2   :  { %747 = vmatmul.mubr.f32.vlgmr.msra.gmra.mrb[6].mxu1 %v5812_v22  ;;  %4467 = vmatpush1.bf16.msra.mxu0 %v5986_v37 }
  0xd3   :  { %4499 = vmatpush1.bf16.msra.mxu1 %v5989_v38  ;;  %4469 = vmatprep.subr.bf16.mxu0 %v5991_v39 }
  0xd4   :  { %4501 = vmatprep.subr.bf16.mxu1 %v5994_v43  ;;  %870 = vmatprep.mubr.f32.mxu0 %v5812_v22 }
  0xd5   :  { %941 = vmatprep.mubr.f32.mxu1 %v5812_v22 }
  0xd6   :  { %4471 = vmatpush1.bf16.msra.mxu0 %v5999_v49 }
  0xd7   :  { %4503 = vmatpush1.bf16.msra.mxu1 %v6003_v50  ;;  %4473 = vmatprep.subr.bf16.mxu0 %v6005_v51 }
  0xd8   :  { %4505 = vmatprep.subr.bf16.mxu1 %v6008_v55 }
  0xda   :  { %4475 = vmatpush1.bf16.msra.mxu0 %v6014_v60 }
  0xdb   :  { %4507 = vmatpush1.bf16.msra.mxu1 %v6019_v61  ;;  %4477 = vmatprep.subr.bf16.mxu0 %v6021_v62 }
  0xdc   :  { %4509 = vmatprep.subr.bf16.mxu1 %v6024_v3 }
  0xde   :  { %4479 = vmatpush1.bf16.msra.mxu0 %v6029_v8 }
  0xdf   :  { %4511 = vmatpush1.bf16.msra.mxu1 %v6033_v9  ;;  %4481 = vmatprep.subr.bf16.mxu0 %v6035_v10 }
  0xe0   :  { %4513 = vmatprep.subr.bf16.mxu1 %v6038_v14 }
  0xe2   :  { %4483 = vmatpush1.bf16.msra.mxu0 %v6041_v20 }
  0xe3   :  { %4515 = vmatpush1.bf16.msra.mxu1 %v6045_v21  ;;  %4485 = vmatprep.subr.bf16.mxu0 %v6047_v23 }
  0xe4   :  { %4517 = vmatprep.subr.bf16.mxu1 %v6050_v29 }
  0xe6   :  { %4487 = vmatpush1.bf16.msra.mxu0 %v6053_v36 }
  0xe7   :  { %4519 = vmatpush1.bf16.msra.mxu1 %v6057_v40  ;;  %4489 = vmatprep.subr.bf16.mxu0 %v6059_v41 }
  0xe8   :  { %4521 = vmatprep.subr.bf16.mxu1 %v6062_v46 }
  0xea   :  { %4491 = vmatpush1.bf16.msra.mxu0 %v6065_v26 }
  0xeb   :  { %4523 = vmatpush1.bf16.msra.mxu1 %v6069_v56  ;;  %4493 = vmatprep.subr.bf16.mxu0 %v6071_v57 }
  0xec   :  { %4525 = vmatprep.subr.bf16.mxu1 %v6074_v0 }
  0xee   :  { %4495 = vmatpush1.bf16.msra.mxu0 %v6077_v4 }
  0xef   :  { %4527 = vmatpush1.bf16.msra.mxu1 %v6081_v5  ;;  %4529 = vmatprep.subr.bf16.mxu0 %v5982_v27 }
  0xf0   :  { %4561 = vmatprep.subr.bf16.mxu1 %v5984_v31 }
 0x164   :  { %v4187_v6 = vpop.f32.mrb[0].mxu0 }
 0x165   :  { %v6124_v63 = vpop.f32.mrb[0].mxu1  ;;  %v196_v7 = vpop.f32.mrb[1].mxu0 }
 0x166   :  { %v6126_v11 = vpack.c.bf16 %v4187_v6, %v196_v7  ;;  %v6128_v12 = vpop.f32.mrb[1].mxu1  ;;  %v5813_v7 = vmov 1966171168  }
 0x167   :  { %v760_v13 = vunpack.c.l.s4 %v5813_v7 }
 0x169   :  { %v761_v16 = vunpack.c.0.s8 %v760_v13 }
 0x16b   :  { %v6133_v17 = vsub.s32 %v761_v16, %v365_v15 }
 0x184   :  { %v450_v33 = vpop.f32.mrb[2].mxu0 }
 0x185   :  { %v451_v34 = vadd.f32 %v450_v33, %v367_v25  ;;  %v527_v35 = vpop.f32.mrb[2].mxu1  ;;  %v452_v42 = vpop.f32.mrb[3].mxu0 }
 0x186   :  { %v528_v44 = vadd.f32 %v527_v35, %v375_v28  ;;  %v453_v45 = vadd.f32 %v452_v42, %v371_v30  ;;  %v529_v47 = vpop.f32.mrb[3].mxu1 }
 0x187   :  { %538 = vst [vmem:[#allocation2] sm:$0xff] %v451_v34  ;;  %v530_v48 = vadd.f32 %v529_v47, %v379_v32 }
 0x188   :  { %540 = vst [vmem:[#allocation2 + $0x10] sm:$0xff] %v528_v44  ;;  %539 = vst [vmem:[#allocation2 + $0x8] sm:$0xff] %v453_v45  ;;  %v456_v52 = vpop.f32.mrb[4].mxu0 }
 0x189   :  { %541 = vst [vmem:[#allocation2 + $0x18] sm:$0xff] %v530_v48  ;;  %v457_v53 = vadd.f32 %v456_v52, %v367_v25  ;;  %v533_v54 = vpop.f32.mrb[4].mxu1  ;;  %v458_v58 = vpop.f32.mrb[5].mxu0 }
 0x18a   :  { %v534_v59 = vadd.f32 %v533_v54, %v375_v28  ;;  %v459_v1 = vadd.f32 %v458_v58, %v371_v30  ;;  %v535_v2 = vpop.f32.mrb[5].mxu1 }
 0x18b   :  { %542 = vst [vmem:[#allocation2 + $0x20] sm:$0xff] %v457_v53  ;;  %v536_v6 = vadd.f32 %v535_v2, %v379_v32 }
 0x18c   :  { %544 = vst [vmem:[#allocation2 + $0x30] sm:$0xff] %v534_v59  ;;  %543 = vst [vmem:[#allocation2 + $0x28] sm:$0xff] %v459_v1 }
 0x18d   :  { %545 = vst [vmem:[#allocation2 + $0x38] sm:$0xff] %v536_v6 }
 0x190   :  { %v610_v42 = vld [vmem:[#allocation2] ss:$8 sm:$0xf] }
 0x1a4   :  { %v677_v18 = vpop.f32.mrb[6].mxu0 }
 0x1a5   :  { %v748_v19 = vpop.f32.mrb[6].mxu1  ;;  %v679_v24 = vpop.f32.mrb[7].mxu0 }
 0x1a6   :  { %v757_v33 = vcombine.low %v677_v18, %v679_v24  ;;  %v750_v25 = vpop.f32.mrb[7].mxu1 }
 0x1a7   :  { %v758_v34 = vcombine.low %v748_v19, %v750_v25 }
 0x1a8   :  { %v765_v28 = vrot.slane %v757_v33, %v6133_v17 }
 0x1a9   :  { %v772_v30 = vrot.slane %v758_v34, %v6133_v17 }
 0x1ab   :  { %v773_v35 = vcombine.low %v765_v28, %v772_v30 }
 0x1ad   :  { %v780_v32 = vrot.slane %v773_v35, %v6133_v17  ;;  %v805_v35 = vld [vmem:[#allocation2 + $0x1] ss:$8 sm:$0xf] }
 0x1af   :  { %v782_v44 = vadd.f32 %v780_v32, %v610_v42 }
 0x1b1   :  { %v4073_v45 = vmul.f32 -1.442695, %v782_v44  ;;  %v790_v48 = vrot.slane %v782_v44, 3 }
 0x1b3   :  { %5478 = vpow2.f32 %v4073_v45 }
 0x1bd   :  { %v5479_v47 = vpop.eup %5478 }
 0x1be   :  { %v786_v15 = vadd.f32 1.0, %v5479_v47 }
 0x1c0   :  { %5480 = vrcp.f32 %v786_v15 }
 0x1c1   :  { %5482 = vtanh.f32 %v790_v48 }
 0x1ca   :  { %v5481_v52 = vpop.eup %5480 }
 0x1cb   :  { %v794_v53 = vrot.slane %v5481_v52, 1  ;;  %v5483_v54 = vpop.eup %5482  ;;  %v800_v2 = vrot.slane %v5481_v52, 2 }
 0x1cc   :  { %v797_v58 = vmul.f32 %v5483_v54, %v5481_v52 }
 0x1cd   :  { %v796_v59 = vmul.f32 0.0, %v794_v53 }
 0x1cf   :  { %v6138_v1 = vadd.f32 %v797_v58, %v796_v59 }
 0x1d1   :  { %5484 = vtanh.f32 %v6138_v1 }
 0x1db   :  { %v5485_v6 = vpop.eup %5484 }
 0x1dc   :  { %v802_v7 = vmul.f32 %v5485_v6, %v800_v2 }
 0x1de   :  { %803 = vst [vmem:[#allocation3] sm:$0x1] %v802_v7  ;;  %871 = vmatmul.mubr.f32.vlgmr.msra.gmra.mrb[8].mxu0 %v802_v7  ;;  %942 = vmatmul.mubr.f32.vlgmr.msra.gmra.mrb[8].mxu1 %v802_v7 }
 0x1df   :  { %4531 = vmatpush1.bf16.msra.mxu0 %v5986_v37  ;;  %4563 = vmatpush1.bf16.msra.mxu1 %v5989_v38 }
 0x1e0   :  { %4533 = vmatprep.subr.bf16.mxu0 %v5991_v39  ;;  %4565 = vmatprep.subr.bf16.mxu1 %v5994_v43 }
 0x1e1   :  { %1065 = vmatprep.mubr.f32.mxu0 %v5812_v22  ;;  %1136 = vmatprep.mubr.f32.mxu1 %v5812_v22 }
 0x1e3   :  { %4535 = vmatpush1.bf16.msra.mxu0 %v5999_v49  ;;  %4567 = vmatpush1.bf16.msra.mxu1 %v6003_v50 }
 0x1e4   :  { %4537 = vmatprep.subr.bf16.mxu0 %v6005_v51  ;;  %4569 = vmatprep.subr.bf16.mxu1 %v6008_v55 }
 0x1e7   :  { %4539 = vmatpush1.bf16.msra.mxu0 %v6014_v60  ;;  %4571 = vmatpush1.bf16.msra.mxu1 %v6019_v61 }
 0x1e8   :  { %4541 = vmatprep.subr.bf16.mxu0 %v6021_v62  ;;  %4573 = vmatprep.subr.bf16.mxu1 %v6024_v3 }
 0x1eb   :  { %4543 = vmatpush1.bf16.msra.mxu0 %v6029_v8  ;;  %4575 = vmatpush1.bf16.msra.mxu1 %v6033_v9 }
 0x1ec   :  { %4545 = vmatprep.subr.bf16.mxu0 %v6035_v10  ;;  %4577 = vmatprep.subr.bf16.mxu1 %v6038_v14 }
 0x1ef   :  { %4547 = vmatpush1.bf16.msra.mxu0 %v6041_v20  ;;  %4579 = vmatpush1.bf16.msra.mxu1 %v6045_v21 }
 0x1f0   :  { %4549 = vmatprep.subr.bf16.mxu0 %v6047_v23  ;;  %4581 = vmatprep.subr.bf16.mxu1 %v6050_v29 }
 0x1f3   :  { %4551 = vmatpush1.bf16.msra.mxu0 %v6053_v36  ;;  %4583 = vmatpush1.bf16.msra.mxu1 %v6057_v40 }
 0x1f4   :  { %4553 = vmatprep.subr.bf16.mxu0 %v6059_v41  ;;  %4585 = vmatprep.subr.bf16.mxu1 %v6062_v46 }
 0x1f7   :  { %4555 = vmatpush1.bf16.msra.mxu0 %v6065_v26  ;;  %4587 = vmatpush1.bf16.msra.mxu1 %v6069_v56 }
 0x1f8   :  { %4557 = vmatprep.subr.bf16.mxu0 %v6071_v57  ;;  %4589 = vmatprep.subr.bf16.mxu1 %v6074_v0 }
 0x1fb   :  { %4559 = vmatpush1.bf16.msra.mxu0 %v6077_v4  ;;  %4591 = vmatpush1.bf16.msra.mxu1 %v6081_v5 }
 0x1fc   :  { %4593 = vmatprep.subr.bf16.mxu0 %v5982_v27  ;;  %4625 = vmatprep.subr.bf16.mxu1 %v5984_v31 }
 0x2b1   :  { %v872_v13 = vpop.f32.mrb[8].mxu0  ;;  %v943_v16 = vpop.f32.mrb[8].mxu1 }
 0x2b2   :  { %v874_v18 = vpop.f32.mrb[9].mxu0  ;;  %v945_v19 = vpop.f32.mrb[9].mxu1 }
 0x2b3   :  { %v952_v24 = vcombine.low %v872_v13, %v874_v18  ;;  %v953_v33 = vcombine.low %v943_v16, %v945_v19 }
 0x2b5   :  { %v960_v25 = vrot.slane %v952_v24, %v6133_v17  ;;  %v967_v34 = vrot.slane %v953_v33, %v6133_v17 }
 0x2b7   :  { %v968_v28 = vcombine.low %v960_v25, %v967_v34 }
 0x2b9   :  { %v975_v30 = vrot.slane %v968_v28, %v6133_v17  ;;  %v1000_v28 = vld [vmem:[#allocation2 + $0x2] ss:$8 sm:$0xf] }
 0x2bb   :  { %v977_v32 = vadd.f32 %v975_v30, %v805_v35 }
 0x2bd   :  { %v4074_v42 = vmul.f32 -1.442695, %v977_v32  ;;  %v985_v47 = vrot.slane %v977_v32, 3 }
 0x2bf   :  { %5486 = vpow2.f32 %v4074_v42 }
 0x2c9   :  { %v5487_v44 = vpop.eup %5486 }
 0x2ca   :  { %v981_v45 = vadd.f32 1.0, %v5487_v44 }
 0x2cc   :  { %5488 = vrcp.f32 %v981_v45 }
 0x2cd   :  { %5490 = vtanh.f32 %v985_v47 }
 0x2d6   :  { %v5489_v15 = vpop.eup %5488 }
 0x2d7   :  { %v989_v48 = vrot.slane %v5489_v15, 1  ;;  %v5491_v52 = vpop.eup %5490  ;;  %v995_v59 = vrot.slane %v5489_v15, 2 }
 0x2d8   :  { %v992_v53 = vmul.f32 %v5491_v52, %v5489_v15 }
 0x2d9   :  { %v991_v54 = vmul.f32 %v989_v48, %v6138_v1 }
 0x2db   :  { %v6179_v58 = vadd.f32 %v992_v53, %v991_v54 }
 0x2dd   :  { %5492 = vtanh.f32 %v6179_v58 }
 0x2e7   :  { %v5493_v2 = vpop.eup %5492 }
 0x2e8   :  { %v997_v6 = vmul.f32 %v5493_v2, %v995_v59 }
 0x2ea   :  { %998 = vst [vmem:[#allocation3 + $0x1] sm:$0x1] %v997_v6  ;;  %1066 = vmatmul.mubr.f32.vlgmr.msra.gmra.mrb[10].mxu0 %v997_v6  ;;  %1137 = vmatmul.mubr.f32.vlgmr.msra.gmra.mrb[10].mxu1 %v997_v6 }
 0x2eb   :  { %4595 = vmatpush1.bf16.msra.mxu0 %v5986_v37  ;;  %4627 = vmatpush1.bf16.msra.mxu1 %v5989_v38 }
 0x2ec   :  { %4597 = vmatprep.subr.bf16.mxu0 %v5991_v39  ;;  %4629 = vmatprep.subr.bf16.mxu1 %v5994_v43 }
 0x2ed   :  { %1260 = vmatprep.mubr.f32.mxu0 %v5812_v22  ;;  %1331 = vmatprep.mubr.f32.mxu1 %v5812_v22 }
 0x2ef   :  { %4599 = vmatpush1.bf16.msra.mxu0 %v5999_v49  ;;  %4631 = vmatpush1.bf16.msra.mxu1 %v6003_v50 }
 0x2f0   :  { %4601 = vmatprep.subr.bf16.mxu0 %v6005_v51  ;;  %4633 = vmatprep.subr.bf16.mxu1 %v6008_v55 }
 0x2f3   :  { %4603 = vmatpush1.bf16.msra.mxu0 %v6014_v60  ;;  %4635 = vmatpush1.bf16.msra.mxu1 %v6019_v61 }
 0x2f4   :  { %4605 = vmatprep.subr.bf16.mxu0 %v6021_v62  ;;  %4637 = vmatprep.subr.bf16.mxu1 %v6024_v3 }
 0x2f7   :  { %4607 = vmatpush1.bf16.msra.mxu0 %v6029_v8  ;;  %4639 = vmatpush1.bf16.msra.mxu1 %v6033_v9 }
 0x2f8   :  { %4609 = vmatprep.subr.bf16.mxu0 %v6035_v10  ;;  %4641 = vmatprep.subr.bf16.mxu1 %v6038_v14 }
 0x2fb   :  { %4611 = vmatpush1.bf16.msra.mxu0 %v6041_v20  ;;  %4643 = vmatpush1.bf16.msra.mxu1 %v6045_v21 }
 0x2fc   :  { %4613 = vmatprep.subr.bf16.mxu0 %v6047_v23  ;;  %4645 = vmatprep.subr.bf16.mxu1 %v6050_v29 }
 0x2ff   :  { %4615 = vmatpush1.bf16.msra.mxu0 %v6053_v36  ;;  %4647 = vmatpush1.bf16.msra.mxu1 %v6057_v40 }
 0x300   :  { %4617 = vmatprep.subr.bf16.mxu0 %v6059_v41  ;;  %4649 = vmatprep.subr.bf16.mxu1 %v6062_v46 }
 0x303   :  { %4619 = vmatpush1.bf16.msra.mxu0 %v6065_v26  ;;  %4651 = vmatpush1.bf16.msra.mxu1 %v6069_v56 }
 0x304   :  { %4621 = vmatprep.subr.bf16.mxu0 %v6071_v57  ;;  %4653 = vmatprep.subr.bf16.mxu1 %v6074_v0 }
 0x307   :  { %4623 = vmatpush1.bf16.msra.mxu0 %v6077_v4  ;;  %4655 = vmatpush1.bf16.msra.mxu1 %v6081_v5 }
 0x308   :  { %4657 = vmatprep.subr.bf16.mxu0 %v5982_v27  ;;  %4689 = vmatprep.subr.bf16.mxu1 %v5984_v31 }
 0x3bd   :  { %v1067_v1 = vpop.f32.mrb[10].mxu0  ;;  %v1138_v7 = vpop.f32.mrb[10].mxu1 }
 0x3be   :  { %v1069_v13 = vpop.f32.mrb[11].mxu0  ;;  %v1140_v16 = vpop.f32.mrb[11].mxu1 }
 0x3bf   :  { %v1147_v18 = vcombine.low %v1067_v1, %v1069_v13  ;;  %v1148_v19 = vcombine.low %v1138_v7, %v1140_v16 }
 0x3c1   :  { %v1155_v24 = vrot.slane %v1147_v18, %v6133_v17  ;;  %v1162_v33 = vrot.slane %v1148_v19, %v6133_v17 }
 0x3c3   :  { %v1163_v25 = vcombine.low %v1155_v24, %v1162_v33 }
 0x3c5   :  { %v1170_v34 = vrot.slane %v1163_v25, %v6133_v17  ;;  %v1195_v25 = vld [vmem:[#allocation2 + $0x3] ss:$8 sm:$0xf] }
 0x3c7   :  { %v1172_v30 = vadd.f32 %v1170_v34, %v1000_v28 }
 0x3c9   :  { %v4075_v35 = vmul.f32 -1.442695, %v1172_v30  ;;  %v1180_v44 = vrot.slane %v1172_v30, 3 }
 0x3cb   :  { %5494 = vpow2.f32 %v4075_v35 }
 0x3d5   :  { %v5495_v32 = vpop.eup %5494 }
 0x3d6   :  { %v1176_v42 = vadd.f32 1.0, %v5495_v32 }
 0x3d8   :  { %5496 = vrcp.f32 %v1176_v42 }
 0x3d9   :  { %5498 = vtanh.f32 %v1180_v44 }
 0x3e2   :  { %v5497_v45 = vpop.eup %5496 }
 0x3e3   :  { %v1184_v47 = vrot.slane %v5497_v45, 1  ;;  %v5499_v15 = vpop.eup %5498  ;;  %v1190_v54 = vrot.slane %v5497_v45, 2 }
 0x3e4   :  { %v1187_v48 = vmul.f32 %v5499_v15, %v5497_v45 }
 0x3e5   :  { %v1186_v52 = vmul.f32 %v1184_v47, %v6179_v58 }
 0x3e7   :  { %v6220_v53 = vadd.f32 %v1187_v48, %v1186_v52 }
 0x3e9   :  { %5500 = vtanh.f32 %v6220_v53 }
 0x3f3   :  { %v5501_v59 = vpop.eup %5500 }
 0x3f4   :  { %v1192_v2 = vmul.f32 %v5501_v59, %v1190_v54 }
 0x3f6   :  { %1193 = vst [vmem:[#allocation3 + $0x2] sm:$0x1] %v1192_v2  ;;  %1261 = vmatmul.mubr.f32.vlgmr.msra.gmra.mrb[12].mxu0 %v1192_v2  ;;  %1332 = vmatmul.mubr.f32.vlgmr.msra.gmra.mrb[12].mxu1 %v1192_v2 }
 0x3f7   :  { %4659 = vmatpush1.bf16.msra.mxu0 %v5986_v37  ;;  %4691 = vmatpush1.bf16.msra.mxu1 %v5989_v38 }
 0x3f8   :  { %4661 = vmatprep.subr.bf16.mxu0 %v5991_v39  ;;  %4693 = vmatprep.subr.bf16.mxu1 %v5994_v43 }
 0x3f9   :  { %1455 = vmatprep.mubr.f32.mxu0 %v5812_v22  ;;  %1526 = vmatprep.mubr.f32.mxu1 %v5812_v22 }
 0x3fb   :  { %4663 = vmatpush1.bf16.msra.mxu0 %v5999_v49  ;;  %4695 = vmatpush1.bf16.msra.mxu1 %v6003_v50 }
 0x3fc   :  { %4665 = vmatprep.subr.bf16.mxu0 %v6005_v51  ;;  %4697 = vmatprep.subr.bf16.mxu1 %v6008_v55 }
 0x3ff   :  { %4667 = vmatpush1.bf16.msra.mxu0 %v6014_v60  ;;  %4699 = vmatpush1.bf16.msra.mxu1 %v6019_v61 }
 0x400   :  { %4669 = vmatprep.subr.bf16.mxu0 %v6021_v62  ;;  %4701 = vmatprep.subr.bf16.mxu1 %v6024_v3 }
 0x403   :  { %4671 = vmatpush1.bf16.msra.mxu0 %v6029_v8  ;;  %4703 = vmatpush1.bf16.msra.mxu1 %v6033_v9 }
 0x404   :  { %4673 = vmatprep.subr.bf16.mxu0 %v6035_v10  ;;  %4705 = vmatprep.subr.bf16.mxu1 %v6038_v14 }
 0x407   :  { %4675 = vmatpush1.bf16.msra.mxu0 %v6041_v20  ;;  %4707 = vmatpush1.bf16.msra.mxu1 %v6045_v21 }
 0x408   :  { %4677 = vmatprep.subr.bf16.mxu0 %v6047_v23  ;;  %4709 = vmatprep.subr.bf16.mxu1 %v6050_v29 }
 0x40b   :  { %4679 = vmatpush1.bf16.msra.mxu0 %v6053_v36  ;;  %4711 = vmatpush1.bf16.msra.mxu1 %v6057_v40 }
 0x40c   :  { %4681 = vmatprep.subr.bf16.mxu0 %v6059_v41  ;;  %4713 = vmatprep.subr.bf16.mxu1 %v6062_v46 }
 0x40f   :  { %4683 = vmatpush1.bf16.msra.mxu0 %v6065_v26  ;;  %4715 = vmatpush1.bf16.msra.mxu1 %v6069_v56 }
 0x410   :  { %4685 = vmatprep.subr.bf16.mxu0 %v6071_v57  ;;  %4717 = vmatprep.subr.bf16.mxu1 %v6074_v0 }
 0x413   :  { %4687 = vmatpush1.bf16.msra.mxu0 %v6077_v4  ;;  %4719 = vmatpush1.bf16.msra.mxu1 %v6081_v5 }
 0x414   :  { %4721 = vmatprep.subr.bf16.mxu0 %v5982_v27  ;;  %4753 = vmatprep.subr.bf16.mxu1 %v5984_v31 }
 0x4c9   :  { %v1262_v58 = vpop.f32.mrb[12].mxu0  ;;  %v1333_v6 = vpop.f32.mrb[12].mxu1 }
 0x4ca   :  { %v1264_v1 = vpop.f32.mrb[13].mxu0  ;;  %v1335_v7 = vpop.f32.mrb[13].mxu1 }
 0x4cb   :  { %v1342_v13 = vcombine.low %v1262_v58, %v1264_v1  ;;  %v1343_v16 = vcombine.low %v1333_v6, %v1335_v7 }
 0x4cd   :  { %v1350_v18 = vrot.slane %v1342_v13, %v6133_v17  ;;  %v1357_v19 = vrot.slane %v1343_v16, %v6133_v17 }
 0x4cf   :  { %v1358_v24 = vcombine.low %v1350_v18, %v1357_v19 }
 0x4d1   :  { %v1365_v33 = vrot.slane %v1358_v24, %v6133_v17  ;;  %v1390_v24 = vld [vmem:[#allocation2 + $0x4] ss:$8 sm:$0xf] }
 0x4d3   :  { %v1367_v34 = vadd.f32 %v1365_v33, %v1195_v25 }
 0x4d5   :  { %v4076_v28 = vmul.f32 -1.442695, %v1367_v34  ;;  %v1375_v32 = vrot.slane %v1367_v34, 3 }
 0x4d7   :  { %5502 = vpow2.f32 %v4076_v28 }
 0x4e1   :  { %v5503_v30 = vpop.eup %5502 }
 0x4e2   :  { %v1371_v35 = vadd.f32 1.0, %v5503_v30 }
 0x4e4   :  { %5504 = vrcp.f32 %v1371_v35 }
 0x4e5   :  { %5506 = vtanh.f32 %v1375_v32 }
 0x4ee   :  { %v5505_v42 = vpop.eup %5504 }
 0x4ef   :  { %v1379_v44 = vrot.slane %v5505_v42, 1  ;;  %v5507_v45 = vpop.eup %5506  ;;  %v1385_v52 = vrot.slane %v5505_v42, 2 }
 0x4f0   :  { %v1382_v47 = vmul.f32 %v5507_v45, %v5505_v42 }
 0x4f1   :  { %v1381_v15 = vmul.f32 %v1379_v44, %v6220_v53 }
 0x4f3   :  { %v6261_v48 = vadd.f32 %v1382_v47, %v1381_v15 }
 0x4f5   :  { %5508 = vtanh.f32 %v6261_v48 }
 0x4ff   :  { %v5509_v54 = vpop.eup %5508 }
 0x500   :  { %v1387_v59 = vmul.f32 %v5509_v54, %v1385_v52 }
 0x502   :  { %1388 = vst [vmem:[#allocation3 + $0x3] sm:$0x1] %v1387_v59  ;;  %1456 = vmatmul.mubr.f32.vlgmr.msra.gmra.mrb[14].mxu0 %v1387_v59  ;;  %1527 = vmatmul.mubr.f32.vlgmr.msra.gmra.mrb[14].mxu1 %v1387_v59 }
 0x503   :  { %4723 = vmatpush1.bf16.msra.mxu0 %v5986_v37  ;;  %4755 = vmatpush1.bf16.msra.mxu1 %v5989_v38 }
 0x504   :  { %4725 = vmatprep.subr.bf16.mxu0 %v5991_v39  ;;  %4757 = vmatprep.subr.bf16.mxu1 %v5994_v43 }
 0x505   :  { %1650 = vmatprep.mubr.f32.mxu0 %v5812_v22  ;;  %1721 = vmatprep.mubr.f32.mxu1 %v5812_v22 }
 0x507   :  { %4727 = vmatpush1.bf16.msra.mxu0 %v5999_v49  ;;  %4759 = vmatpush1.bf16.msra.mxu1 %v6003_v50 }
 0x508   :  { %4729 = vmatprep.subr.bf16.mxu0 %v6005_v51  ;;  %4761 = vmatprep.subr.bf16.mxu1 %v6008_v55 }
 0x50b   :  { %4731 = vmatpush1.bf16.msra.mxu0 %v6014_v60  ;;  %4763 = vmatpush1.bf16.msra.mxu1 %v6019_v61 }
 0x50c   :  { %4733 = vmatprep.subr.bf16.mxu0 %v6021_v62  ;;  %4765 = vmatprep.subr.bf16.mxu1 %v6024_v3 }
 0x50f   :  { %4735 = vmatpush1.bf16.msra.mxu0 %v6029_v8  ;;  %4767 = vmatpush1.bf16.msra.mxu1 %v6033_v9 }
 0x510   :  { %4737 = vmatprep.subr.bf16.mxu0 %v6035_v10  ;;  %4769 = vmatprep.subr.bf16.mxu1 %v6038_v14 }
 0x513   :  { %4739 = vmatpush1.bf16.msra.mxu0 %v6041_v20  ;;  %4771 = vmatpush1.bf16.msra.mxu1 %v6045_v21 }
 0x514   :  { %4741 = vmatprep.subr.bf16.mxu0 %v6047_v23  ;;  %4773 = vmatprep.subr.bf16.mxu1 %v6050_v29 }
 0x517   :  { %4743 = vmatpush1.bf16.msra.mxu0 %v6053_v36  ;;  %4775 = vmatpush1.bf16.msra.mxu1 %v6057_v40 }
 0x518   :  { %4745 = vmatprep.subr.bf16.mxu0 %v6059_v41  ;;  %4777 = vmatprep.subr.bf16.mxu1 %v6062_v46 }
 0x51b   :  { %4747 = vmatpush1.bf16.msra.mxu0 %v6065_v26  ;;  %4779 = vmatpush1.bf16.msra.mxu1 %v6069_v56 }
 0x51c   :  { %4749 = vmatprep.subr.bf16.mxu0 %v6071_v57  ;;  %4781 = vmatprep.subr.bf16.mxu1 %v6074_v0 }
 0x51f   :  { %4751 = vmatpush1.bf16.msra.mxu0 %v6077_v4  ;;  %4783 = vmatpush1.bf16.msra.mxu1 %v6081_v5 }
 0x520   :  { %4785 = vmatprep.subr.bf16.mxu0 %v5982_v27  ;;  %4817 = vmatprep.subr.bf16.mxu1 %v5984_v31 }
 0x5d5   :  { %v1457_v53 = vpop.f32.mrb[14].mxu0  ;;  %v1528_v2 = vpop.f32.mrb[14].mxu1 }
 0x5d6   :  { %v1459_v58 = vpop.f32.mrb[15].mxu0  ;;  %v1530_v6 = vpop.f32.mrb[15].mxu1 }
 0x5d7   :  { %v1537_v1 = vcombine.low %v1457_v53, %v1459_v58  ;;  %v1538_v7 = vcombine.low %v1528_v2, %v1530_v6 }
 0x5d9   :  { %v1545_v13 = vrot.slane %v1537_v1, %v6133_v17  ;;  %v1552_v16 = vrot.slane %v1538_v7, %v6133_v17 }
 0x5db   :  { %v1553_v18 = vcombine.low %v1545_v13, %v1552_v16 }
 0x5dd   :  { %v1560_v19 = vrot.slane %v1553_v18, %v6133_v17  ;;  %v1585_v18 = vld [vmem:[#allocation2 + $0x5] ss:$8 sm:$0xf] }
 0x5df   :  { %v1562_v33 = vadd.f32 %v1560_v19, %v1390_v24 }
 0x5e1   :  { %v4077_v25 = vmul.f32 -1.442695, %v1562_v33  ;;  %v1570_v30 = vrot.slane %v1562_v33, 3 }
 0x5e3   :  { %5510 = vpow2.f32 %v4077_v25 }
 0x5ed   :  { %v5511_v34 = vpop.eup %5510 }
 0x5ee   :  { %v1566_v28 = vadd.f32 1.0, %v5511_v34 }
 0x5f0   :  { %5512 = vrcp.f32 %v1566_v28 }
 0x5f1   :  { %5514 = vtanh.f32 %v1570_v30 }
 0x5fa   :  { %v5513_v35 = vpop.eup %5512 }
 0x5fb   :  { %v1574_v32 = vrot.slane %v5513_v35, 1  ;;  %v5515_v42 = vpop.eup %5514  ;;  %v1580_v15 = vrot.slane %v5513_v35, 2 }
 0x5fc   :  { %v1577_v44 = vmul.f32 %v5515_v42, %v5513_v35 }
 0x5fd   :  { %v1576_v45 = vmul.f32 %v1574_v32, %v6261_v48 }
 0x5ff   :  { %v6302_v47 = vadd.f32 %v1577_v44, %v1576_v45 }
 0x601   :  { %5516 = vtanh.f32 %v6302_v47 }
 0x60b   :  { %v5517_v52 = vpop.eup %5516 }
 0x60c   :  { %v1582_v54 = vmul.f32 %v5517_v52, %v1580_v15 }
 0x60e   :  { %1583 = vst [vmem:[#allocation3 + $0x4] sm:$0x1] %v1582_v54  ;;  %1651 = vmatmul.mubr.f32.vlgmr.msra.gmra.mrb[16].mxu0 %v1582_v54  ;;  %1722 = vmatmul.mubr.f32.vlgmr.msra.gmra.mrb[16].mxu1 %v1582_v54 }
 0x60f   :  { %4787 = vmatpush1.bf16.msra.mxu0 %v5986_v37  ;;  %4819 = vmatpush1.bf16.msra.mxu1 %v5989_v38 }
 0x610   :  { %4789 = vmatprep.subr.bf16.mxu0 %v5991_v39  ;;  %4821 = vmatprep.subr.bf16.mxu1 %v5994_v43 }
 0x611   :  { %1845 = vmatprep.mubr.f32.mxu0 %v5812_v22  ;;  %1916 = vmatprep.mubr.f32.mxu1 %v5812_v22 }
 0x613   :  { %4791 = vmatpush1.bf16.msra.mxu0 %v5999_v49  ;;  %4823 = vmatpush1.bf16.msra.mxu1 %v6003_v50 }
 0x614   :  { %4793 = vmatprep.subr.bf16.mxu0 %v6005_v51  ;;  %4825 = vmatprep.subr.bf16.mxu1 %v6008_v55 }
 0x617   :  { %4795 = vmatpush1.bf16.msra.mxu0 %v6014_v60  ;;  %4827 = vmatpush1.bf16.msra.mxu1 %v6019_v61 }
 0x618   :  { %4797 = vmatprep.subr.bf16.mxu0 %v6021_v62  ;;  %4829 = vmatprep.subr.bf16.mxu1 %v6024_v3 }
 0x61b   :  { %4799 = vmatpush1.bf16.msra.mxu0 %v6029_v8  ;;  %4831 = vmatpush1.bf16.msra.mxu1 %v6033_v9 }
 0x61c   :  { %4801 = vmatprep.subr.bf16.mxu0 %v6035_v10  ;;  %4833 = vmatprep.subr.bf16.mxu1 %v6038_v14 }
 0x61f   :  { %4803 = vmatpush1.bf16.msra.mxu0 %v6041_v20  ;;  %4835 = vmatpush1.bf16.msra.mxu1 %v6045_v21 }
 0x620   :  { %4805 = vmatprep.subr.bf16.mxu0 %v6047_v23  ;;  %4837 = vmatprep.subr.bf16.mxu1 %v6050_v29 }
 0x623   :  { %4807 = vmatpush1.bf16.msra.mxu0 %v6053_v36  ;;  %4839 = vmatpush1.bf16.msra.mxu1 %v6057_v40 }
 0x624   :  { %4809 = vmatprep.subr.bf16.mxu0 %v6059_v41  ;;  %4841 = vmatprep.subr.bf16.mxu1 %v6062_v46 }
 0x627   :  { %4811 = vmatpush1.bf16.msra.mxu0 %v6065_v26  ;;  %4843 = vmatpush1.bf16.msra.mxu1 %v6069_v56 }
 0x628   :  { %4813 = vmatprep.subr.bf16.mxu0 %v6071_v57  ;;  %4845 = vmatprep.subr.bf16.mxu1 %v6074_v0 }
 0x62b   :  { %4815 = vmatpush1.bf16.msra.mxu0 %v6077_v4  ;;  %4847 = vmatpush1.bf16.msra.mxu1 %v6081_v5 }
 0x62c   :  { %4849 = vmatprep.subr.bf16.mxu0 %v5982_v27  ;;  %4881 = vmatprep.subr.bf16.mxu1 %v5984_v31 }
 0x6e1   :  { %v1652_v48 = vpop.f32.mrb[16].mxu0  ;;  %v1723_v59 = vpop.f32.mrb[16].mxu1 }
 0x6e2   :  { %v1654_v53 = vpop.f32.mrb[17].mxu0  ;;  %v1725_v2 = vpop.f32.mrb[17].mxu1 }
 0x6e3   :  { %v1732_v58 = vcombine.low %v1652_v48, %v1654_v53  ;;  %v1733_v6 = vcombine.low %v1723_v59, %v1725_v2 }
 0x6e5   :  { %v1740_v1 = vrot.slane %v1732_v58, %v6133_v17  ;;  %v1747_v7 = vrot.slane %v1733_v6, %v6133_v17 }
 0x6e7   :  { %v1748_v13 = vcombine.low %v1740_v1, %v1747_v7 }
 0x6e9   :  { %v1755_v16 = vrot.slane %v1748_v13, %v6133_v17  ;;  %v1780_v13 = vld [vmem:[#allocation2 + $0x6] ss:$8 sm:$0xf] }
 0x6eb   :  { %v1757_v19 = vadd.f32 %v1755_v16, %v1585_v18 }
 0x6ed   :  { %v4078_v24 = vmul.f32 -1.442695, %v1757_v19  ;;  %v1765_v34 = vrot.slane %v1757_v19, 3 }
 0x6ef   :  { %5518 = vpow2.f32 %v4078_v24 }
 0x6f9   :  { %v5519_v33 = vpop.eup %5518 }
 0x6fa   :  { %v1761_v25 = vadd.f32 1.0, %v5519_v33 }
 0x6fc   :  { %5520 = vrcp.f32 %v1761_v25 }
 0x6fd   :  { %5522 = vtanh.f32 %v1765_v34 }
 0x706   :  { %v5521_v28 = vpop.eup %5520 }
 0x707   :  { %v1769_v30 = vrot.slane %v5521_v28, 1  ;;  %v5523_v35 = vpop.eup %5522  ;;  %v1775_v45 = vrot.slane %v5521_v28, 2 }
 0x708   :  { %v1772_v32 = vmul.f32 %v5523_v35, %v5521_v28 }
 0x709   :  { %v1771_v42 = vmul.f32 %v1769_v30, %v6302_v47 }
 0x70b   :  { %v6343_v44 = vadd.f32 %v1772_v32, %v1771_v42 }
 0x70d   :  { %5524 = vtanh.f32 %v6343_v44 }
 0x717   :  { %v5525_v15 = vpop.eup %5524 }
 0x718   :  { %v1777_v52 = vmul.f32 %v5525_v15, %v1775_v45 }
 0x71a   :  { %1778 = vst [vmem:[#allocation3 + $0x5] sm:$0x1] %v1777_v52  ;;  %1846 = vmatmul.mubr.f32.vlgmr.msra.gmra.mrb[18].mxu0 %v1777_v52  ;;  %1917 = vmatmul.mubr.f32.vlgmr.msra.gmra.mrb[18].mxu1 %v1777_v52 }
 0x71b   :  { %4851 = vmatpush1.bf16.msra.mxu0 %v5986_v37  ;;  %4883 = vmatpush1.bf16.msra.mxu1 %v5989_v38 }
 0x71c   :  { %4853 = vmatprep.subr.bf16.mxu0 %v5991_v39  ;;  %4885 = vmatprep.subr.bf16.mxu1 %v5994_v43 }
 0x71d   :  { %2040 = vmatprep.mubr.f32.mxu0 %v5812_v22  ;;  %2111 = vmatprep.mubr.f32.mxu1 %v5812_v22 }
 0x71f   :  { %4855 = vmatpush1.bf16.msra.mxu0 %v5999_v49  ;;  %4887 = vmatpush1.bf16.msra.mxu1 %v6003_v50 }
 0x720   :  { %4857 = vmatprep.subr.bf16.mxu0 %v6005_v51  ;;  %4889 = vmatprep.subr.bf16.mxu1 %v6008_v55 }
 0x723   :  { %4859 = vmatpush1.bf16.msra.mxu0 %v6014_v60  ;;  %4891 = vmatpush1.bf16.msra.mxu1 %v6019_v61 }
 0x724   :  { %4861 = vmatprep.subr.bf16.mxu0 %v6021_v62  ;;  %4893 = vmatprep.subr.bf16.mxu1 %v6024_v3 }
 0x727   :  { %4863 = vmatpush1.bf16.msra.mxu0 %v6029_v8  ;;  %4895 = vmatpush1.bf16.msra.mxu1 %v6033_v9 }
 0x728   :  { %4865 = vmatprep.subr.bf16.mxu0 %v6035_v10  ;;  %4897 = vmatprep.subr.bf16.mxu1 %v6038_v14 }
 0x72b   :  { %4867 = vmatpush1.bf16.msra.mxu0 %v6041_v20  ;;  %4899 = vmatpush1.bf16.msra.mxu1 %v6045_v21 }
 0x72c   :  { %4869 = vmatprep.subr.bf16.mxu0 %v6047_v23  ;;  %4901 = vmatprep.subr.bf16.mxu1 %v6050_v29 }
 0x72f   :  { %4871 = vmatpush1.bf16.msra.mxu0 %v6053_v36  ;;  %4903 = vmatpush1.bf16.msra.mxu1 %v6057_v40 }
 0x730   :  { %4873 = vmatprep.subr.bf16.mxu0 %v6059_v41  ;;  %4905 = vmatprep.subr.bf16.mxu1 %v6062_v46 }
 0x733   :  { %4875 = vmatpush1.bf16.msra.mxu0 %v6065_v26  ;;  %4907 = vmatpush1.bf16.msra.mxu1 %v6069_v56 }
 0x734   :  { %4877 = vmatprep.subr.bf16.mxu0 %v6071_v57  ;;  %4909 = vmatprep.subr.bf16.mxu1 %v6074_v0 }
 0x737   :  { %4879 = vmatpush1.bf16.msra.mxu0 %v6077_v4  ;;  %4911 = vmatpush1.bf16.msra.mxu1 %v6081_v5 }
 0x738   :  { %4913 = vmatprep.subr.bf16.mxu0 %v5982_v27  ;;  %4945 = vmatprep.subr.bf16.mxu1 %v5984_v31 }
 0x7ed   :  { %v1847_v47 = vpop.f32.mrb[18].mxu0  ;;  %v1918_v54 = vpop.f32.mrb[18].mxu1 }
 0x7ee   :  { %v1849_v48 = vpop.f32.mrb[19].mxu0  ;;  %v1920_v59 = vpop.f32.mrb[19].mxu1 }
 0x7ef   :  { %v1927_v53 = vcombine.low %v1847_v47, %v1849_v48  ;;  %v1928_v2 = vcombine.low %v1918_v54, %v1920_v59 }
 0x7f1   :  { %v1935_v58 = vrot.slane %v1927_v53, %v6133_v17  ;;  %v1942_v6 = vrot.slane %v1928_v2, %v6133_v17 }
 0x7f3   :  { %v1943_v1 = vcombine.low %v1935_v58, %v1942_v6 }
 0x7f5   :  { %v1950_v7 = vrot.slane %v1943_v1, %v6133_v17  ;;  %v1975_v1 = vld [vmem:[#allocation2 + $0x7] ss:$8 sm:$0xf] }
 0x7f7   :  { %v1952_v16 = vadd.f32 %v1950_v7, %v1780_v13 }
 0x7f9   :  { %v4079_v18 = vmul.f32 -1.442695, %v1952_v16  ;;  %v1960_v33 = vrot.slane %v1952_v16, 3 }
 0x7fb   :  { %5526 = vpow2.f32 %v4079_v18 }
 0x805   :  { %v5527_v19 = vpop.eup %5526 }
 0x806   :  { %v1956_v24 = vadd.f32 1.0, %v5527_v19 }
 0x808   :  { %5528 = vrcp.f32 %v1956_v24 }
 0x809   :  { %5530 = vtanh.f32 %v1960_v33 }
 0x812   :  { %v5529_v25 = vpop.eup %5528 }
 0x813   :  { %v1964_v34 = vrot.slane %v5529_v25, 1  ;;  %v5531_v28 = vpop.eup %5530  ;;  %v1970_v42 = vrot.slane %v5529_v25, 2 }
 0x814   :  { %v1967_v30 = vmul.f32 %v5531_v28, %v5529_v25 }
 0x815   :  { %v1966_v35 = vmul.f32 %v1964_v34, %v6343_v44 }
 0x817   :  { %v6384_v32 = vadd.f32 %v1967_v30, %v1966_v35 }
 0x819   :  { %5532 = vtanh.f32 %v6384_v32 }
 0x823   :  { %v5533_v45 = vpop.eup %5532 }
 0x824   :  { %v1972_v15 = vmul.f32 %v5533_v45, %v1970_v42 }
 0x826   :  { %1973 = vst [vmem:[#allocation3 + $0x6] sm:$0x1] %v1972_v15  ;;  %2041 = vmatmul.mubr.f32.vlgmr.msra.gmra.mrb[20].mxu0 %v1972_v15  ;;  %2112 = vmatmul.mubr.f32.vlgmr.msra.gmra.mrb[20].mxu1 %v1972_v15 }
 0x827   :  { %4915 = vmatpush1.bf16.msra.mxu0 %v5986_v37  ;;  %4947 = vmatpush1.bf16.msra.mxu1 %v5989_v38 }
 0x828   :  { %4917 = vmatprep.subr.bf16.mxu0 %v5991_v39  ;;  %4949 = vmatprep.subr.bf16.mxu1 %v5994_v43 }
 0x829   :  { %2235 = vmatprep.mubr.f32.mxu0 %v5812_v22  ;;  %2306 = vmatprep.mubr.f32.mxu1 %v5812_v22 }
 0x82b   :  { %4919 = vmatpush1.bf16.msra.mxu0 %v5999_v49  ;;  %4951 = vmatpush1.bf16.msra.mxu1 %v6003_v50 }
 0x82c   :  { %4921 = vmatprep.subr.bf16.mxu0 %v6005_v51  ;;  %4953 = vmatprep.subr.bf16.mxu1 %v6008_v55 }
 0x82f   :  { %4923 = vmatpush1.bf16.msra.mxu0 %v6014_v60  ;;  %4955 = vmatpush1.bf16.msra.mxu1 %v6019_v61 }
 0x830   :  { %4925 = vmatprep.subr.bf16.mxu0 %v6021_v62  ;;  %4957 = vmatprep.subr.bf16.mxu1 %v6024_v3 }
 0x833   :  { %4927 = vmatpush1.bf16.msra.mxu0 %v6029_v8  ;;  %4959 = vmatpush1.bf16.msra.mxu1 %v6033_v9 }
 0x834   :  { %4929 = vmatprep.subr.bf16.mxu0 %v6035_v10  ;;  %4961 = vmatprep.subr.bf16.mxu1 %v6038_v14 }
 0x837   :  { %4931 = vmatpush1.bf16.msra.mxu0 %v6041_v20  ;;  %4963 = vmatpush1.bf16.msra.mxu1 %v6045_v21 }
 0x838   :  { %4933 = vmatprep.subr.bf16.mxu0 %v6047_v23  ;;  %4965 = vmatprep.subr.bf16.mxu1 %v6050_v29 }
 0x83b   :  { %4935 = vmatpush1.bf16.msra.mxu0 %v6053_v36  ;;  %4967 = vmatpush1.bf16.msra.mxu1 %v6057_v40 }
 0x83c   :  { %4937 = vmatprep.subr.bf16.mxu0 %v6059_v41  ;;  %4969 = vmatprep.subr.bf16.mxu1 %v6062_v46 }
 0x83f   :  { %4939 = vmatpush1.bf16.msra.mxu0 %v6065_v26  ;;  %4971 = vmatpush1.bf16.msra.mxu1 %v6069_v56 }
 0x840   :  { %4941 = vmatprep.subr.bf16.mxu0 %v6071_v57  ;;  %4973 = vmatprep.subr.bf16.mxu1 %v6074_v0 }
 0x843   :  { %4943 = vmatpush1.bf16.msra.mxu0 %v6077_v4  ;;  %4975 = vmatpush1.bf16.msra.mxu1 %v6081_v5 }
 0x844   :  { %4977 = vmatprep.subr.bf16.mxu0 %v5982_v27  ;;  %5009 = vmatprep.subr.bf16.mxu1 %v5984_v31 }
 0x8f9   :  { %v2042_v44 = vpop.f32.mrb[20].mxu0  ;;  %v2113_v52 = vpop.f32.mrb[20].mxu1 }
 0x8fa   :  { %v2044_v47 = vpop.f32.mrb[21].mxu0  ;;  %v2115_v54 = vpop.f32.mrb[21].mxu1 }
 0x8fb   :  { %v2122_v48 = vcombine.low %v2042_v44, %v2044_v47  ;;  %v2123_v59 = vcombine.low %v2113_v52, %v2115_v54 }
 0x8fd   :  { %v2130_v53 = vrot.slane %v2122_v48, %v6133_v17  ;;  %v2137_v2 = vrot.slane %v2123_v59, %v6133_v17 }
 0x8ff   :  { %v2138_v58 = vcombine.low %v2130_v53, %v2137_v2 }
 0x901   :  { %v2145_v6 = vrot.slane %v2138_v58, %v6133_v17  ;;  %v2170_v58 = vld [vmem:[#allocation2 + $0x20] ss:$8 sm:$0xf] }
 0x903   :  { %v2147_v7 = vadd.f32 %v2145_v6, %v1975_v1 }
 0x905   :  { %v4080_v13 = vmul.f32 -1.442695, %v2147_v7  ;;  %v2155_v19 = vrot.slane %v2147_v7, 3 }
 0x907   :  { %5534 = vpow2.f32 %v4080_v13 }
 0x911   :  { %v5535_v16 = vpop.eup %5534 }
 0x912   :  { %v2151_v18 = vadd.f32 1.0, %v5535_v16 }
 0x914   :  { %5536 = vrcp.f32 %v2151_v18 }
 0x915   :  { %5538 = vtanh.f32 %v2155_v19 }
 0x91e   :  { %v5537_v24 = vpop.eup %5536 }
 0x91f   :  { %v2159_v33 = vrot.slane %v5537_v24, 1  ;;  %v5539_v25 = vpop.eup %5538  ;;  %v2165_v35 = vrot.slane %v5537_v24, 2 }
 0x920   :  { %v2162_v34 = vmul.f32 %v5539_v25, %v5537_v24 }
 0x921   :  { %v2161_v28 = vmul.f32 %v2159_v33, %v6384_v32 }
 0x923   :  { %v6425_v30 = vadd.f32 %v2162_v34, %v2161_v28 }
 0x925   :  { %5540 = vtanh.f32 %v6425_v30 }
 0x92f   :  { %v5541_v42 = vpop.eup %5540 }
 0x930   :  { %v2167_v45 = vmul.f32 %v5541_v42, %v2165_v35 }
 0x932   :  { %2168 = vst [vmem:[#allocation3 + $0x7] sm:$0x1] %v2167_v45  ;;  %2236 = vmatmul.mubr.f32.vlgmr.msra.gmra.mrb[22].mxu0 %v2167_v45  ;;  %2307 = vmatmul.mubr.f32.vlgmr.msra.gmra.mrb[22].mxu1 %v2167_v45 }
 0x933   :  { %4979 = vmatpush1.bf16.msra.mxu0 %v5986_v37  ;;  %5011 = vmatpush1.bf16.msra.mxu1 %v5989_v38 }
 0x934   :  { %4981 = vmatprep.subr.bf16.mxu0 %v5991_v39  ;;  %5013 = vmatprep.subr.bf16.mxu1 %v5994_v43 }
 0x935   :  { %2430 = vmatprep.mubr.f32.mxu0 %v5812_v22  ;;  %2501 = vmatprep.mubr.f32.mxu1 %v5812_v22 }
 0x937   :  { %4983 = vmatpush1.bf16.msra.mxu0 %v5999_v49  ;;  %5015 = vmatpush1.bf16.msra.mxu1 %v6003_v50 }
 0x938   :  { %4985 = vmatprep.subr.bf16.mxu0 %v6005_v51  ;;  %5017 = vmatprep.subr.bf16.mxu1 %v6008_v55 }
 0x93b   :  { %4987 = vmatpush1.bf16.msra.mxu0 %v6014_v60  ;;  %5019 = vmatpush1.bf16.msra.mxu1 %v6019_v61 }
 0x93c   :  { %4989 = vmatprep.subr.bf16.mxu0 %v6021_v62  ;;  %5021 = vmatprep.subr.bf16.mxu1 %v6024_v3 }
 0x93f   :  { %4991 = vmatpush1.bf16.msra.mxu0 %v6029_v8  ;;  %5023 = vmatpush1.bf16.msra.mxu1 %v6033_v9 }
 0x940   :  { %4993 = vmatprep.subr.bf16.mxu0 %v6035_v10  ;;  %5025 = vmatprep.subr.bf16.mxu1 %v6038_v14 }
 0x943   :  { %4995 = vmatpush1.bf16.msra.mxu0 %v6041_v20  ;;  %5027 = vmatpush1.bf16.msra.mxu1 %v6045_v21 }
 0x944   :  { %4997 = vmatprep.subr.bf16.mxu0 %v6047_v23  ;;  %5029 = vmatprep.subr.bf16.mxu1 %v6050_v29 }
 0x947   :  { %4999 = vmatpush1.bf16.msra.mxu0 %v6053_v36  ;;  %5031 = vmatpush1.bf16.msra.mxu1 %v6057_v40 }
 0x948   :  { %5001 = vmatprep.subr.bf16.mxu0 %v6059_v41  ;;  %5033 = vmatprep.subr.bf16.mxu1 %v6062_v46 }
 0x94b   :  { %5003 = vmatpush1.bf16.msra.mxu0 %v6065_v26  ;;  %5035 = vmatpush1.bf16.msra.mxu1 %v6069_v56 }
 0x94c   :  { %5005 = vmatprep.subr.bf16.mxu0 %v6071_v57  ;;  %5037 = vmatprep.subr.bf16.mxu1 %v6074_v0 }
 0x94f   :  { %5007 = vmatpush1.bf16.msra.mxu0 %v6077_v4  ;;  %5039 = vmatpush1.bf16.msra.mxu1 %v6081_v5 }
 0x950   :  { %5041 = vmatprep.subr.bf16.mxu0 %v5982_v27  ;;  %5073 = vmatprep.subr.bf16.mxu1 %v5984_v31 }
 0xa05   :  { %v2237_v32 = vpop.f32.mrb[22].mxu0  ;;  %v2308_v15 = vpop.f32.mrb[22].mxu1 }
 0xa06   :  { %v2239_v44 = vpop.f32.mrb[23].mxu0  ;;  %v2310_v52 = vpop.f32.mrb[23].mxu1 }
 0xa07   :  { %v2317_v47 = vcombine.low %v2237_v32, %v2239_v44  ;;  %v2318_v54 = vcombine.low %v2308_v15, %v2310_v52 }
 0xa09   :  { %v2325_v48 = vrot.slane %v2317_v47, %v6133_v17  ;;  %v2332_v59 = vrot.slane %v2318_v54, %v6133_v17 }
 0xa0b   :  { %v2333_v53 = vcombine.low %v2325_v48, %v2332_v59 }
 0xa0d   :  { %v2340_v2 = vrot.slane %v2333_v53, %v6133_v17  ;;  %v2365_v53 = vld [vmem:[#allocation2 + $0x21] ss:$8 sm:$0xf] }
 0xa0f   :  { %v2342_v6 = vadd.f32 %v2340_v2, %v2170_v58 }
 0xa11   :  { %v4081_v1 = vmul.f32 -1.442695, %v2342_v6  ;;  %v2350_v16 = vrot.slane %v2342_v6, 3 }
 0xa13   :  { %5542 = vpow2.f32 %v4081_v1 }
 0xa1d   :  { %v5543_v7 = vpop.eup %5542 }
 0xa1e   :  { %v2346_v13 = vadd.f32 1.0, %v5543_v7 }
 0xa20   :  { %5544 = vrcp.f32 %v2346_v13 }
 0xa21   :  { %5546 = vtanh.f32 %v2350_v16 }
 0xa2a   :  { %v5545_v18 = vpop.eup %5544 }
 0xa2b   :  { %v2354_v19 = vrot.slane %v5545_v18, 1  ;;  %v5547_v24 = vpop.eup %5546  ;;  %v2360_v28 = vrot.slane %v5545_v18, 2 }
 0xa2c   :  { %v2357_v33 = vmul.f32 %v5547_v24, %v5545_v18 }
 0xa2d   :  { %v2356_v25 = vmul.f32 %v2354_v19, %v6425_v30 }
 0xa2f   :  { %v6466_v34 = vadd.f32 %v2357_v33, %v2356_v25 }
 0xa31   :  { %5548 = vtanh.f32 %v6466_v34 }
 0xa3b   :  { %v5549_v35 = vpop.eup %5548 }
 0xa3c   :  { %v2362_v42 = vmul.f32 %v5549_v35, %v2360_v28 }
 0xa3e   :  { %2363 = vst [vmem:[#allocation3 + $0x8] sm:$0x1] %v2362_v42  ;;  %2431 = vmatmul.mubr.f32.vlgmr.msra.gmra.mrb[24].mxu0 %v2362_v42  ;;  %2502 = vmatmul.mubr.f32.vlgmr.msra.gmra.mrb[24].mxu1 %v2362_v42 }
 0xa3f   :  { %5043 = vmatpush1.bf16.msra.mxu0 %v5986_v37  ;;  %5075 = vmatpush1.bf16.msra.mxu1 %v5989_v38 }
 0xa40   :  { %5045 = vmatprep.subr.bf16.mxu0 %v5991_v39  ;;  %5077 = vmatprep.subr.bf16.mxu1 %v5994_v43 }
 0xa41   :  { %2625 = vmatprep.mubr.f32.mxu0 %v5812_v22  ;;  %2696 = vmatprep.mubr.f32.mxu1 %v5812_v22 }
 0xa43   :  { %5047 = vmatpush1.bf16.msra.mxu0 %v5999_v49  ;;  %5079 = vmatpush1.bf16.msra.mxu1 %v6003_v50 }
 0xa44   :  { %5049 = vmatprep.subr.bf16.mxu0 %v6005_v51  ;;  %5081 = vmatprep.subr.bf16.mxu1 %v6008_v55 }
 0xa47   :  { %5051 = vmatpush1.bf16.msra.mxu0 %v6014_v60  ;;  %5083 = vmatpush1.bf16.msra.mxu1 %v6019_v61 }
 0xa48   :  { %5053 = vmatprep.subr.bf16.mxu0 %v6021_v62  ;;  %5085 = vmatprep.subr.bf16.mxu1 %v6024_v3 }
 0xa4b   :  { %5055 = vmatpush1.bf16.msra.mxu0 %v6029_v8  ;;  %5087 = vmatpush1.bf16.msra.mxu1 %v6033_v9 }
 0xa4c   :  { %5057 = vmatprep.subr.bf16.mxu0 %v6035_v10  ;;  %5089 = vmatprep.subr.bf16.mxu1 %v6038_v14 }
 0xa4f   :  { %5059 = vmatpush1.bf16.msra.mxu0 %v6041_v20  ;;  %5091 = vmatpush1.bf16.msra.mxu1 %v6045_v21 }
 0xa50   :  { %5061 = vmatprep.subr.bf16.mxu0 %v6047_v23  ;;  %5093 = vmatprep.subr.bf16.mxu1 %v6050_v29 }
 0xa53   :  { %5063 = vmatpush1.bf16.msra.mxu0 %v6053_v36  ;;  %5095 = vmatpush1.bf16.msra.mxu1 %v6057_v40 }
 0xa54   :  { %5065 = vmatprep.subr.bf16.mxu0 %v6059_v41  ;;  %5097 = vmatprep.subr.bf16.mxu1 %v6062_v46 }
 0xa57   :  { %5067 = vmatpush1.bf16.msra.mxu0 %v6065_v26  ;;  %5099 = vmatpush1.bf16.msra.mxu1 %v6069_v56 }
 0xa58   :  { %5069 = vmatprep.subr.bf16.mxu0 %v6071_v57  ;;  %5101 = vmatprep.subr.bf16.mxu1 %v6074_v0 }
 0xa5b   :  { %5071 = vmatpush1.bf16.msra.mxu0 %v6077_v4  ;;  %5103 = vmatpush1.bf16.msra.mxu1 %v6081_v5 }
 0xa5c   :  { %5105 = vmatprep.subr.bf16.mxu0 %v5982_v27  ;;  %5137 = vmatprep.subr.bf16.mxu1 %v5984_v31 }
 0xb11   :  { %v2432_v30 = vpop.f32.mrb[24].mxu0  ;;  %v2503_v45 = vpop.f32.mrb[24].mxu1 }
 0xb12   :  { %v2434_v32 = vpop.f32.mrb[25].mxu0  ;;  %v2505_v15 = vpop.f32.mrb[25].mxu1 }
 0xb13   :  { %v2512_v44 = vcombine.low %v2432_v30, %v2434_v32  ;;  %v2513_v52 = vcombine.low %v2503_v45, %v2505_v15 }
 0xb15   :  { %v2520_v47 = vrot.slane %v2512_v44, %v6133_v17  ;;  %v2527_v54 = vrot.slane %v2513_v52, %v6133_v17 }
 0xb17   :  { %v2528_v48 = vcombine.low %v2520_v47, %v2527_v54 }
 0xb19   :  { %v2535_v59 = vrot.slane %v2528_v48, %v6133_v17  ;;  %v2560_v48 = vld [vmem:[#allocation2 + $0x22] ss:$8 sm:$0xf] }
 0xb1b   :  { %v2537_v2 = vadd.f32 %v2535_v59, %v2365_v53 }
 0xb1d   :  { %v4082_v58 = vmul.f32 -1.442695, %v2537_v2  ;;  %v2545_v7 = vrot.slane %v2537_v2, 3 }
 0xb1f   :  { %5550 = vpow2.f32 %v4082_v58 }
 0xb29   :  { %v5551_v6 = vpop.eup %5550 }
 0xb2a   :  { %v2541_v1 = vadd.f32 1.0, %v5551_v6 }
 0xb2c   :  { %5552 = vrcp.f32 %v2541_v1 }
 0xb2d   :  { %5554 = vtanh.f32 %v2545_v7 }
 0xb36   :  { %v5553_v13 = vpop.eup %5552 }
 0xb37   :  { %v2549_v16 = vrot.slane %v5553_v13, 1  ;;  %v5555_v18 = vpop.eup %5554  ;;  %v2555_v25 = vrot.slane %v5553_v13, 2 }
 0xb38   :  { %v2552_v19 = vmul.f32 %v5555_v18, %v5553_v13 }
 0xb39   :  { %v2551_v24 = vmul.f32 %v2549_v16, %v6466_v34 }
 0xb3b   :  { %v6507_v33 = vadd.f32 %v2552_v19, %v2551_v24 }
 0xb3d   :  { %5556 = vtanh.f32 %v6507_v33 }
 0xb47   :  { %v5557_v28 = vpop.eup %5556 }
 0xb48   :  { %v2557_v35 = vmul.f32 %v5557_v28, %v2555_v25 }
 0xb4a   :  { %2558 = vst [vmem:[#allocation3 + $0x9] sm:$0x1] %v2557_v35  ;;  %2626 = vmatmul.mubr.f32.vlgmr.msra.gmra.mrb[26].mxu0 %v2557_v35  ;;  %2697 = vmatmul.mubr.f32.vlgmr.msra.gmra.mrb[26].mxu1 %v2557_v35 }
 0xb4b   :  { %5107 = vmatpush1.bf16.msra.mxu0 %v5986_v37  ;;  %5139 = vmatpush1.bf16.msra.mxu1 %v5989_v38 }
 0xb4c   :  { %5109 = vmatprep.subr.bf16.mxu0 %v5991_v39  ;;  %5141 = vmatprep.subr.bf16.mxu1 %v5994_v43 }
 0xb4d   :  { %2820 = vmatprep.mubr.f32.mxu0 %v5812_v22  ;;  %2891 = vmatprep.mubr.f32.mxu1 %v5812_v22 }
 0xb4f   :  { %5111 = vmatpush1.bf16.msra.mxu0 %v5999_v49  ;;  %5143 = vmatpush1.bf16.msra.mxu1 %v6003_v50 }
 0xb50   :  { %5113 = vmatprep.subr.bf16.mxu0 %v6005_v51  ;;  %5145 = vmatprep.subr.bf16.mxu1 %v6008_v55 }
 0xb53   :  { %5115 = vmatpush1.bf16.msra.mxu0 %v6014_v60  ;;  %5147 = vmatpush1.bf16.msra.mxu1 %v6019_v61 }
 0xb54   :  { %5117 = vmatprep.subr.bf16.mxu0 %v6021_v62  ;;  %5149 = vmatprep.subr.bf16.mxu1 %v6024_v3 }
 0xb57   :  { %5119 = vmatpush1.bf16.msra.mxu0 %v6029_v8  ;;  %5151 = vmatpush1.bf16.msra.mxu1 %v6033_v9 }
 0xb58   :  { %5121 = vmatprep.subr.bf16.mxu0 %v6035_v10  ;;  %5153 = vmatprep.subr.bf16.mxu1 %v6038_v14 }
 0xb5b   :  { %5123 = vmatpush1.bf16.msra.mxu0 %v6041_v20  ;;  %5155 = vmatpush1.bf16.msra.mxu1 %v6045_v21 }
 0xb5c   :  { %5125 = vmatprep.subr.bf16.mxu0 %v6047_v23  ;;  %5157 = vmatprep.subr.bf16.mxu1 %v6050_v29 }
 0xb5f   :  { %5127 = vmatpush1.bf16.msra.mxu0 %v6053_v36  ;;  %5159 = vmatpush1.bf16.msra.mxu1 %v6057_v40 }
 0xb60   :  { %5129 = vmatprep.subr.bf16.mxu0 %v6059_v41  ;;  %5161 = vmatprep.subr.bf16.mxu1 %v6062_v46 }
 0xb63   :  { %5131 = vmatpush1.bf16.msra.mxu0 %v6065_v26  ;;  %5163 = vmatpush1.bf16.msra.mxu1 %v6069_v56 }
 0xb64   :  { %5133 = vmatprep.subr.bf16.mxu0 %v6071_v57  ;;  %5165 = vmatprep.subr.bf16.mxu1 %v6074_v0 }
 0xb67   :  { %5135 = vmatpush1.bf16.msra.mxu0 %v6077_v4  ;;  %5167 = vmatpush1.bf16.msra.mxu1 %v6081_v5 }
 0xb68   :  { %5169 = vmatprep.subr.bf16.mxu0 %v5982_v27  ;;  %5201 = vmatprep.subr.bf16.mxu1 %v5984_v31 }
 0xc1d   :  { %v2627_v34 = vpop.f32.mrb[26].mxu0  ;;  %v2698_v42 = vpop.f32.mrb[26].mxu1 }
 0xc1e   :  { %v2629_v30 = vpop.f32.mrb[27].mxu0  ;;  %v2700_v45 = vpop.f32.mrb[27].mxu1 }
 0xc1f   :  { %v2707_v32 = vcombine.low %v2627_v34, %v2629_v30  ;;  %v2708_v15 = vcombine.low %v2698_v42, %v2700_v45 }
 0xc21   :  { %v2715_v44 = vrot.slane %v2707_v32, %v6133_v17  ;;  %v2722_v52 = vrot.slane %v2708_v15, %v6133_v17 }
 0xc23   :  { %v2723_v47 = vcombine.low %v2715_v44, %v2722_v52 }
 0xc25   :  { %v2730_v54 = vrot.slane %v2723_v47, %v6133_v17  ;;  %v2755_v47 = vld [vmem:[#allocation2 + $0x23] ss:$8 sm:$0xf] }
 0xc27   :  { %v2732_v59 = vadd.f32 %v2730_v54, %v2560_v48 }
 0xc29   :  { %v4083_v53 = vmul.f32 -1.442695, %v2732_v59  ;;  %v2740_v6 = vrot.slane %v2732_v59, 3 }
 0xc2b   :  { %5558 = vpow2.f32 %v4083_v53 }
 0xc35   :  { %v5559_v2 = vpop.eup %5558 }
 0xc36   :  { %v2736_v58 = vadd.f32 1.0, %v5559_v2 }
 0xc38   :  { %5560 = vrcp.f32 %v2736_v58 }
 0xc39   :  { %5562 = vtanh.f32 %v2740_v6 }
 0xc42   :  { %v5561_v1 = vpop.eup %5560 }
 0xc43   :  { %v2744_v7 = vrot.slane %v5561_v1, 1  ;;  %v5563_v13 = vpop.eup %5562  ;;  %v2750_v24 = vrot.slane %v5561_v1, 2 }
 0xc44   :  { %v2747_v16 = vmul.f32 %v5563_v13, %v5561_v1 }
 0xc45   :  { %v2746_v18 = vmul.f32 %v2744_v7, %v6507_v33 }
 0xc47   :  { %v6548_v19 = vadd.f32 %v2747_v16, %v2746_v18 }
 0xc49   :  { %5564 = vtanh.f32 %v6548_v19 }
 0xc53   :  { %v5565_v25 = vpop.eup %5564 }
 0xc54   :  { %v2752_v28 = vmul.f32 %v5565_v25, %v2750_v24 }
 0xc56   :  { %2753 = vst [vmem:[#allocation3 + $0xa] sm:$0x1] %v2752_v28  ;;  %2821 = vmatmul.mubr.f32.vlgmr.msra.gmra.mrb[28].mxu0 %v2752_v28  ;;  %2892 = vmatmul.mubr.f32.vlgmr.msra.gmra.mrb[28].mxu1 %v2752_v28 }
 0xc57   :  { %5171 = vmatpush1.bf16.msra.mxu0 %v5986_v37  ;;  %5203 = vmatpush1.bf16.msra.mxu1 %v5989_v38 }
 0xc58   :  { %5173 = vmatprep.subr.bf16.mxu0 %v5991_v39  ;;  %5205 = vmatprep.subr.bf16.mxu1 %v5994_v43 }
 0xc59   :  { %3015 = vmatprep.mubr.f32.mxu0 %v5812_v22  ;;  %3086 = vmatprep.mubr.f32.mxu1 %v5812_v22 }
 0xc5b   :  { %5175 = vmatpush1.bf16.msra.mxu0 %v5999_v49  ;;  %5207 = vmatpush1.bf16.msra.mxu1 %v6003_v50 }
 0xc5c   :  { %5177 = vmatprep.subr.bf16.mxu0 %v6005_v51  ;;  %5209 = vmatprep.subr.bf16.mxu1 %v6008_v55 }
 0xc5f   :  { %5179 = vmatpush1.bf16.msra.mxu0 %v6014_v60  ;;  %5211 = vmatpush1.bf16.msra.mxu1 %v6019_v61 }
 0xc60   :  { %5181 = vmatprep.subr.bf16.mxu0 %v6021_v62  ;;  %5213 = vmatprep.subr.bf16.mxu1 %v6024_v3 }
 0xc63   :  { %5183 = vmatpush1.bf16.msra.mxu0 %v6029_v8  ;;  %5215 = vmatpush1.bf16.msra.mxu1 %v6033_v9 }
 0xc64   :  { %5185 = vmatprep.subr.bf16.mxu0 %v6035_v10  ;;  %5217 = vmatprep.subr.bf16.mxu1 %v6038_v14 }
 0xc67   :  { %5187 = vmatpush1.bf16.msra.mxu0 %v6041_v20  ;;  %5219 = vmatpush1.bf16.msra.mxu1 %v6045_v21 }
 0xc68   :  { %5189 = vmatprep.subr.bf16.mxu0 %v6047_v23  ;;  %5221 = vmatprep.subr.bf16.mxu1 %v6050_v29 }
 0xc6b   :  { %5191 = vmatpush1.bf16.msra.mxu0 %v6053_v36  ;;  %5223 = vmatpush1.bf16.msra.mxu1 %v6057_v40 }
 0xc6c   :  { %5193 = vmatprep.subr.bf16.mxu0 %v6059_v41  ;;  %5225 = vmatprep.subr.bf16.mxu1 %v6062_v46 }
 0xc6f   :  { %5195 = vmatpush1.bf16.msra.mxu0 %v6065_v26  ;;  %5227 = vmatpush1.bf16.msra.mxu1 %v6069_v56 }
 0xc70   :  { %5197 = vmatprep.subr.bf16.mxu0 %v6071_v57  ;;  %5229 = vmatprep.subr.bf16.mxu1 %v6074_v0 }
 0xc73   :  { %5199 = vmatpush1.bf16.msra.mxu0 %v6077_v4  ;;  %5231 = vmatpush1.bf16.msra.mxu1 %v6081_v5 }
 0xc74   :  { %5233 = vmatprep.subr.bf16.mxu0 %v5982_v27  ;;  %5265 = vmatprep.subr.bf16.mxu1 %v5984_v31 }
 0xd29   :  { %v2822_v33 = vpop.f32.mrb[28].mxu0  ;;  %v2893_v35 = vpop.f32.mrb[28].mxu1 }
 0xd2a   :  { %v2824_v34 = vpop.f32.mrb[29].mxu0  ;;  %v2895_v42 = vpop.f32.mrb[29].mxu1 }
 0xd2b   :  { %v2902_v30 = vcombine.low %v2822_v33, %v2824_v34  ;;  %v2903_v45 = vcombine.low %v2893_v35, %v2895_v42 }
 0xd2d   :  { %v2910_v32 = vrot.slane %v2902_v30, %v6133_v17  ;;  %v2917_v15 = vrot.slane %v2903_v45, %v6133_v17 }
 0xd2f   :  { %v2918_v44 = vcombine.low %v2910_v32, %v2917_v15 }
 0xd31   :  { %v2925_v52 = vrot.slane %v2918_v44, %v6133_v17  ;;  %v2950_v44 = vld [vmem:[#allocation2 + $0x24] ss:$8 sm:$0xf] }
 0xd33   :  { %v2927_v54 = vadd.f32 %v2925_v52, %v2755_v47 }
 0xd35   :  { %v4084_v48 = vmul.f32 -1.442695, %v2927_v54  ;;  %v2935_v2 = vrot.slane %v2927_v54, 3 }
 0xd37   :  { %5566 = vpow2.f32 %v4084_v48 }
 0xd41   :  { %v5567_v59 = vpop.eup %5566 }
 0xd42   :  { %v2931_v53 = vadd.f32 1.0, %v5567_v59 }
 0xd44   :  { %5568 = vrcp.f32 %v2931_v53 }
 0xd45   :  { %5570 = vtanh.f32 %v2935_v2 }
 0xd4e   :  { %v5569_v58 = vpop.eup %5568 }
 0xd4f   :  { %v2939_v6 = vrot.slane %v5569_v58, 1  ;;  %v5571_v1 = vpop.eup %5570  ;;  %v2945_v18 = vrot.slane %v5569_v58, 2 }
 0xd50   :  { %v2942_v7 = vmul.f32 %v5571_v1, %v5569_v58 }
 0xd51   :  { %v2941_v13 = vmul.f32 %v2939_v6, %v6548_v19 }
 0xd53   :  { %v6589_v16 = vadd.f32 %v2942_v7, %v2941_v13 }
 0xd55   :  { %5572 = vtanh.f32 %v6589_v16 }
 0xd5f   :  { %v5573_v24 = vpop.eup %5572 }
 0xd60   :  { %v2947_v25 = vmul.f32 %v5573_v24, %v2945_v18 }
 0xd62   :  { %2948 = vst [vmem:[#allocation3 + $0xb] sm:$0x1] %v2947_v25  ;;  %3016 = vmatmul.mubr.f32.vlgmr.msra.gmra.mrb[30].mxu0 %v2947_v25  ;;  %3087 = vmatmul.mubr.f32.vlgmr.msra.gmra.mrb[30].mxu1 %v2947_v25 }
 0xd63   :  { %5235 = vmatpush1.bf16.msra.mxu0 %v5986_v37  ;;  %5267 = vmatpush1.bf16.msra.mxu1 %v5989_v38 }
 0xd64   :  { %5237 = vmatprep.subr.bf16.mxu0 %v5991_v39  ;;  %5269 = vmatprep.subr.bf16.mxu1 %v5994_v43 }
 0xd65   :  { %3210 = vmatprep.mubr.f32.mxu0 %v5812_v22  ;;  %3281 = vmatprep.mubr.f32.mxu1 %v5812_v22 }
 0xd67   :  { %5239 = vmatpush1.bf16.msra.mxu0 %v5999_v49  ;;  %5271 = vmatpush1.bf16.msra.mxu1 %v6003_v50 }
 0xd68   :  { %5241 = vmatprep.subr.bf16.mxu0 %v6005_v51  ;;  %5273 = vmatprep.subr.bf16.mxu1 %v6008_v55 }
 0xd6b   :  { %5243 = vmatpush1.bf16.msra.mxu0 %v6014_v60  ;;  %5275 = vmatpush1.bf16.msra.mxu1 %v6019_v61 }
 0xd6c   :  { %5245 = vmatprep.subr.bf16.mxu0 %v6021_v62  ;;  %5277 = vmatprep.subr.bf16.mxu1 %v6024_v3 }
 0xd6f   :  { %5247 = vmatpush1.bf16.msra.mxu0 %v6029_v8  ;;  %5279 = vmatpush1.bf16.msra.mxu1 %v6033_v9 }
 0xd70   :  { %5249 = vmatprep.subr.bf16.mxu0 %v6035_v10  ;;  %5281 = vmatprep.subr.bf16.mxu1 %v6038_v14 }
 0xd73   :  { %5251 = vmatpush1.bf16.msra.mxu0 %v6041_v20  ;;  %5283 = vmatpush1.bf16.msra.mxu1 %v6045_v21 }
 0xd74   :  { %5253 = vmatprep.subr.bf16.mxu0 %v6047_v23  ;;  %5285 = vmatprep.subr.bf16.mxu1 %v6050_v29 }
 0xd77   :  { %5255 = vmatpush1.bf16.msra.mxu0 %v6053_v36  ;;  %5287 = vmatpush1.bf16.msra.mxu1 %v6057_v40 }
 0xd78   :  { %5257 = vmatprep.subr.bf16.mxu0 %v6059_v41  ;;  %5289 = vmatprep.subr.bf16.mxu1 %v6062_v46 }
 0xd7b   :  { %5259 = vmatpush1.bf16.msra.mxu0 %v6065_v26  ;;  %5291 = vmatpush1.bf16.msra.mxu1 %v6069_v56 }
 0xd7c   :  { %5261 = vmatprep.subr.bf16.mxu0 %v6071_v57  ;;  %5293 = vmatprep.subr.bf16.mxu1 %v6074_v0 }
 0xd7f   :  { %5263 = vmatpush1.bf16.msra.mxu0 %v6077_v4  ;;  %5295 = vmatpush1.bf16.msra.mxu1 %v6081_v5 }
 0xd80   :  { %5297 = vmatprep.subr.bf16.mxu0 %v5982_v27  ;;  %5329 = vmatprep.subr.bf16.mxu1 %v5984_v31 }
 0xe35   :  { %v3017_v19 = vpop.f32.mrb[30].mxu0  ;;  %v3088_v28 = vpop.f32.mrb[30].mxu1 }
 0xe36   :  { %v3019_v33 = vpop.f32.mrb[31].mxu0  ;;  %v3090_v35 = vpop.f32.mrb[31].mxu1 }
 0xe37   :  { %v3097_v34 = vcombine.low %v3017_v19, %v3019_v33  ;;  %v3098_v42 = vcombine.low %v3088_v28, %v3090_v35 }
 0xe39   :  { %v3105_v30 = vrot.slane %v3097_v34, %v6133_v17  ;;  %v3112_v45 = vrot.slane %v3098_v42, %v6133_v17 }
 0xe3b   :  { %v3113_v32 = vcombine.low %v3105_v30, %v3112_v45 }
 0xe3d   :  { %v3120_v15 = vrot.slane %v3113_v32, %v6133_v17  ;;  %v3145_v32 = vld [vmem:[#allocation2 + $0x25] ss:$8 sm:$0xf] }
 0xe3f   :  { %v3122_v52 = vadd.f32 %v3120_v15, %v2950_v44 }
 0xe41   :  { %v4085_v47 = vmul.f32 -1.442695, %v3122_v52  ;;  %v3130_v59 = vrot.slane %v3122_v52, 3 }
 0xe43   :  { %5574 = vpow2.f32 %v4085_v47 }
 0xe4d   :  { %v5575_v54 = vpop.eup %5574 }
 0xe4e   :  { %v3126_v48 = vadd.f32 1.0, %v5575_v54 }
 0xe50   :  { %5576 = vrcp.f32 %v3126_v48 }
 0xe51   :  { %5578 = vtanh.f32 %v3130_v59 }
 0xe5a   :  { %v5577_v53 = vpop.eup %5576 }
 0xe5b   :  { %v3134_v2 = vrot.slane %v5577_v53, 1  ;;  %v5579_v58 = vpop.eup %5578  ;;  %v3140_v13 = vrot.slane %v5577_v53, 2 }
 0xe5c   :  { %v3137_v6 = vmul.f32 %v5579_v58, %v5577_v53 }
 0xe5d   :  { %v3136_v1 = vmul.f32 %v3134_v2, %v6589_v16 }
 0xe5f   :  { %v6630_v7 = vadd.f32 %v3137_v6, %v3136_v1 }
 0xe61   :  { %5580 = vtanh.f32 %v6630_v7 }
 0xe6b   :  { %v5581_v18 = vpop.eup %5580 }
 0xe6c   :  { %v3142_v24 = vmul.f32 %v5581_v18, %v3140_v13 }
 0xe6e   :  { %3143 = vst [vmem:[#allocation3 + $0xc] sm:$0x1] %v3142_v24  ;;  %3211 = vmatmul.mubr.f32.vlgmr.msra.gmra.mrb[32].mxu0 %v3142_v24  ;;  %3282 = vmatmul.mubr.f32.vlgmr.msra.gmra.mrb[32].mxu1 %v3142_v24 }
 0xe6f   :  { %5299 = vmatpush1.bf16.msra.mxu0 %v5986_v37  ;;  %5331 = vmatpush1.bf16.msra.mxu1 %v5989_v38 }
 0xe70   :  { %5301 = vmatprep.subr.bf16.mxu0 %v5991_v39  ;;  %5333 = vmatprep.subr.bf16.mxu1 %v5994_v43 }
 0xe71   :  { %3405 = vmatprep.mubr.f32.mxu0 %v5812_v22  ;;  %3476 = vmatprep.mubr.f32.mxu1 %v5812_v22 }
 0xe73   :  { %5303 = vmatpush1.bf16.msra.mxu0 %v5999_v49  ;;  %5335 = vmatpush1.bf16.msra.mxu1 %v6003_v50 }
 0xe74   :  { %5305 = vmatprep.subr.bf16.mxu0 %v6005_v51  ;;  %5337 = vmatprep.subr.bf16.mxu1 %v6008_v55 }
 0xe77   :  { %5307 = vmatpush1.bf16.msra.mxu0 %v6014_v60  ;;  %5339 = vmatpush1.bf16.msra.mxu1 %v6019_v61 }
 0xe78   :  { %5309 = vmatprep.subr.bf16.mxu0 %v6021_v62  ;;  %5341 = vmatprep.subr.bf16.mxu1 %v6024_v3 }
 0xe7b   :  { %5311 = vmatpush1.bf16.msra.mxu0 %v6029_v8  ;;  %5343 = vmatpush1.bf16.msra.mxu1 %v6033_v9 }
 0xe7c   :  { %5313 = vmatprep.subr.bf16.mxu0 %v6035_v10  ;;  %5345 = vmatprep.subr.bf16.mxu1 %v6038_v14 }
 0xe7f   :  { %5315 = vmatpush1.bf16.msra.mxu0 %v6041_v20  ;;  %5347 = vmatpush1.bf16.msra.mxu1 %v6045_v21 }
 0xe80   :  { %5317 = vmatprep.subr.bf16.mxu0 %v6047_v23  ;;  %5349 = vmatprep.subr.bf16.mxu1 %v6050_v29 }
 0xe83   :  { %5319 = vmatpush1.bf16.msra.mxu0 %v6053_v36  ;;  %5351 = vmatpush1.bf16.msra.mxu1 %v6057_v40 }
 0xe84   :  { %5321 = vmatprep.subr.bf16.mxu0 %v6059_v41  ;;  %5353 = vmatprep.subr.bf16.mxu1 %v6062_v46 }
 0xe87   :  { %5323 = vmatpush1.bf16.msra.mxu0 %v6065_v26  ;;  %5355 = vmatpush1.bf16.msra.mxu1 %v6069_v56 }
 0xe88   :  { %5325 = vmatprep.subr.bf16.mxu0 %v6071_v57  ;;  %5357 = vmatprep.subr.bf16.mxu1 %v6074_v0 }
 0xe8b   :  { %5327 = vmatpush1.bf16.msra.mxu0 %v6077_v4  ;;  %5359 = vmatpush1.bf16.msra.mxu1 %v6081_v5 }
 0xe8c   :  { %5361 = vmatprep.subr.bf16.mxu0 %v5982_v27  ;;  %5393 = vmatprep.subr.bf16.mxu1 %v5984_v31 }
 0xf41   :  { %v3212_v16 = vpop.f32.mrb[32].mxu0  ;;  %v3283_v25 = vpop.f32.mrb[32].mxu1 }
 0xf42   :  { %v3214_v19 = vpop.f32.mrb[33].mxu0  ;;  %v3285_v28 = vpop.f32.mrb[33].mxu1 }
 0xf43   :  { %v3292_v33 = vcombine.low %v3212_v16, %v3214_v19  ;;  %v3293_v35 = vcombine.low %v3283_v25, %v3285_v28 }
 0xf45   :  { %v3300_v34 = vrot.slane %v3292_v33, %v6133_v17  ;;  %v3307_v42 = vrot.slane %v3293_v35, %v6133_v17 }
 0xf47   :  { %v3308_v30 = vcombine.low %v3300_v34, %v3307_v42 }
 0xf49   :  { %v3315_v45 = vrot.slane %v3308_v30, %v6133_v17 }
 0xf4b   :  { %v3317_v15 = vadd.f32 %v3315_v45, %v3145_v32 }
 0xf4d   :  { %v4086_v44 = vmul.f32 -1.442695, %v3317_v15  ;;  %v3325_v31 = vrot.slane %v3317_v15, 3 }
 0xf4f   :  { %5582 = vpow2.f32 %v4086_v44 }
 0xf59   :  { %v5583_v27 = vpop.eup %5582 }
 0xf5a   :  { %v3321_v52 = vadd.f32 1.0, %v5583_v27 }
 0xf5c   :  { %5584 = vrcp.f32 %v3321_v52 }
 0xf5d   :  { %5586 = vtanh.f32 %v3325_v31 }
 0xf66   :  { %v5585_v47 = vpop.eup %5584 }
 0xf67   :  { %v3329_v54 = vrot.slane %v5585_v47, 1  ;;  %v5587_v48 = vpop.eup %5586  ;;  %v3335_v58 = vrot.slane %v5585_v47, 2 }
 0xf68   :  { %v3332_v59 = vmul.f32 %v5587_v48, %v5585_v47 }
 0xf69   :  { %v3331_v53 = vmul.f32 %v3329_v54, %v6630_v7  ;;  %v3729_v54 = vld [vmem:[#allocation3] sm:$0xff] }
 0xf6b   :  { %v6671_v2 = vadd.f32 %v3332_v59, %v3331_v53 }
 0xf6d   :  { %5588 = vtanh.f32 %v6671_v2 }
 0xf77   :  { %v5589_v6 = vpop.eup %5588 }
 0xf78   :  { %v3337_v1 = vmul.f32 %v5589_v6, %v3335_v58 }
 0xf7a   :  { %3338 = vst [vmem:[#allocation3 + $0xd] sm:$0x1] %v3337_v1  ;;  %3406 = vmatmul.mubr.f32.vlgmr.msra.gmra.mrb[34].mxu0 %v3337_v1  ;;  %3477 = vmatmul.mubr.f32.vlgmr.msra.gmra.mrb[34].mxu1 %v3337_v1 }
 0xf7b   :  { %5363 = vmatpush1.bf16.msra.mxu0 %v5986_v37  ;;  %5395 = vmatpush1.bf16.msra.mxu1 %v5989_v38 }
 0xf7c   :  { %5365 = vmatprep.subr.bf16.mxu0 %v5991_v39  ;;  %5397 = vmatprep.subr.bf16.mxu1 %v5994_v43 }
 0xf7d   :  { %3600 = vmatprep.mubr.f32.mxu0 %v5812_v22  ;;  %3671 = vmatprep.mubr.f32.mxu1 %v5812_v22 }
 0xf7f   :  { %5367 = vmatpush1.bf16.msra.mxu0 %v5999_v49  ;;  %5399 = vmatpush1.bf16.msra.mxu1 %v6003_v50 }
 0xf80   :  { %5369 = vmatprep.subr.bf16.mxu0 %v6005_v51  ;;  %5401 = vmatprep.subr.bf16.mxu1 %v6008_v55 }
 0xf83   :  { %5371 = vmatpush1.bf16.msra.mxu0 %v6014_v60  ;;  %5403 = vmatpush1.bf16.msra.mxu1 %v6019_v61  ;;  %v3340_v61 = vld [vmem:[#allocation2 + $0x26] ss:$8 sm:$0xf] }
 0xf84   :  { %5373 = vmatprep.subr.bf16.mxu0 %v6021_v62  ;;  %5405 = vmatprep.subr.bf16.mxu1 %v6024_v3 }
 0xf87   :  { %5375 = vmatpush1.bf16.msra.mxu0 %v6029_v8  ;;  %5407 = vmatpush1.bf16.msra.mxu1 %v6033_v9 }
 0xf88   :  { %5377 = vmatprep.subr.bf16.mxu0 %v6035_v10  ;;  %5409 = vmatprep.subr.bf16.mxu1 %v6038_v14 }
 0xf8b   :  { %5379 = vmatpush1.bf16.msra.mxu0 %v6041_v20  ;;  %5411 = vmatpush1.bf16.msra.mxu1 %v6045_v21 }
 0xf8c   :  { %5381 = vmatprep.subr.bf16.mxu0 %v6047_v23  ;;  %5413 = vmatprep.subr.bf16.mxu1 %v6050_v29 }
 0xf8f   :  { %5383 = vmatpush1.bf16.msra.mxu0 %v6053_v36  ;;  %5415 = vmatpush1.bf16.msra.mxu1 %v6057_v40 }
 0xf90   :  { %5385 = vmatprep.subr.bf16.mxu0 %v6059_v41  ;;  %5417 = vmatprep.subr.bf16.mxu1 %v6062_v46 }
 0xf93   :  { %5387 = vmatpush1.bf16.msra.mxu0 %v6065_v26  ;;  %5419 = vmatpush1.bf16.msra.mxu1 %v6069_v56  ;;  %v296_v26 = vmul.f32 0.06, %v6128_v12  ;;  %v297_v56 = vmul.f32 0.06, %v6124_v63 }
 0xf94   :  { %5389 = vmatprep.subr.bf16.mxu0 %v6071_v57  ;;  %5421 = vmatprep.subr.bf16.mxu1 %v6074_v0 }
 0xf97   :  { %5391 = vmatpush1.bf16.msra.mxu0 %v6077_v4  ;;  %5423 = vmatpush1.bf16.msra.mxu1 %v6081_v5 }
 0xf98   :  { %5425 = vmatprep.subr.bf16.mxu0 %v6126_v11 }
0x104d   :  { %v3407_v22 = vpop.f32.mrb[34].mxu0  ;;  %v3478_v37 = vpop.f32.mrb[34].mxu1 }
0x104e   :  { %v3409_v38 = vpop.f32.mrb[35].mxu0  ;;  %v3480_v39 = vpop.f32.mrb[35].mxu1 }
0x104f   :  { %v3487_v43 = vcombine.low %v3407_v22, %v3409_v38  ;;  %v3488_v49 = vcombine.low %v3478_v37, %v3480_v39 }
0x1051   :  { %v3495_v50 = vrot.slane %v3487_v43, %v6133_v17  ;;  %v3502_v51 = vrot.slane %v3488_v49, %v6133_v17 }
0x1053   :  { %v3503_v55 = vcombine.low %v3495_v50, %v3502_v51 }
0x1055   :  { %v3510_v60 = vrot.slane %v3503_v55, %v6133_v17 }
0x1057   :  { %v3512_v62 = vadd.f32 %v3510_v60, %v3340_v61 }
0x1059   :  { %v4087_v3 = vmul.f32 -1.442695, %v3512_v62  ;;  %v3520_v10 = vrot.slane %v3512_v62, 3  ;;  %v3944_v62 = vld [vmem:[#allocation13] sm:$0xff] }
0x105b   :  { %5590 = vpow2.f32 %v4087_v3  ;;  %v3945_v3 = vld [vmem:[#allocation13 + $0x8] sm:$0xff] }
0x1065   :  { %v5591_v8 = vpop.eup %5590 }
0x1066   :  { %v3516_v9 = vadd.f32 1.0, %v5591_v8  ;;  %v3946_v8 = vld [vmem:[#allocation13 + $0x10] sm:$0xff] }
0x1068   :  { %5592 = vrcp.f32 %v3516_v9  ;;  %v5432_v9 = vpack.c.bf16 %v3945_v3, %v3944_v62 }
0x1069   :  { %5594 = vtanh.f32 %v3520_v10  ;;  %v3947_v10 = vld [vmem:[#allocation13 + $0x18] sm:$0xff] }
0x106a   :  { %5433 = vmatprep.subr.bf16.mxu1 %v5432_v9 }
0x1072   :  { %v5593_v14 = vpop.eup %5592 }
0x1073   :  { %v3524_v20 = vrot.slane %v5593_v14, 1  ;;  %v5595_v21 = vpop.eup %5594  ;;  %v3530_v40 = vrot.slane %v5593_v14, 2 }
0x1074   :  { %v3527_v23 = vmul.f32 %v5595_v21, %v5593_v14  ;;  %v5436_v14 = vpack.c.bf16 %v3947_v10, %v3946_v8  ;;  %v3949_v21 = vld [vmem:[#allocation13 + $0x28] sm:$0xff] }
0x1075   :  { %v3526_v29 = vmul.f32 %v3524_v20, %v6671_v2  ;;  %v3948_v20 = vld [vmem:[#allocation13 + $0x20] sm:$0xff] }
0x1077   :  { %v3528_v36 = vadd.f32 %v3527_v23, %v3526_v29  ;;  %v5440_v23 = vpack.c.bf16 %v3949_v21, %v3948_v20  ;;  %v3950_v29 = vld [vmem:[#allocation13 + $0x30] sm:$0xff] }
0x1079   :  { %5596 = vtanh.f32 %v3528_v36 }
0x1083   :  { %v5597_v41 = vpop.eup %5596 }
0x1084   :  { %v3532_v46 = vmul.f32 %v5597_v41, %v3530_v40  ;;  %v3952_v41 = vld [vmem:[#allocation13 + $0x40] sm:$0xff] }
0x1086   :  { %3533 = vst [vmem:[#allocation3 + $0xe] sm:$0x1] %v3532_v46  ;;  %3601 = vmatmul.mubr.f32.vlgmr.msra.gmra.mrb[36].mxu0 %v3532_v46  ;;  %3672 = vmatmul.mubr.f32.vlgmr.msra.gmra.mrb[36].mxu1 %v3532_v46  ;;  %v3953_v46 = vld [vmem:[#allocation13 + $0x48] sm:$0xff] }
0x1087   :  { %5427 = vmatpush3.bf16.xpose.msra.mxu0 %v6126_v11  ;;  %4227 = vmatprep.mubr.f32.mxu0 %v296_v26  ;;  %v3535_v11 = vld [vmem:[#allocation2 + $0x27] ss:$8 sm:$0xf]  ;;  %v5448_v26 = vpack.c.bf16 %v3953_v46, %v3952_v41 }
0x1088   :  { %5435 = vmatpush3.bf16.msra.mxu1 %v5432_v9 }
0x1089   :  { %5437 = vmatprep.subr.bf16.mxu1 %v5436_v14 }
0x108c   :  { %5439 = vmatpush3.bf16.msra.mxu1 %v5436_v14 }
0x108d   :  { %5441 = vmatprep.subr.bf16.mxu1 %v5440_v23 }
0x108e   :  { %4228 = vmatmul.mubr.f32.vlgmr.msra.gmra.mrb[38].mxu0 %v297_v56  ;;  %v3954_v56 = vld [vmem:[#allocation13 + $0x50] sm:$0xff] }
0x1090   :  { %5443 = vmatpush3.bf16.msra.mxu1 %v5440_v23 }
0x1159   :  { %v3602_v57 = vpop.f32.mrb[36].mxu0  ;;  %v3673_v0 = vpop.f32.mrb[36].mxu1 }
0x115a   :  { %v3604_v4 = vpop.f32.mrb[37].mxu0  ;;  %v3675_v5 = vpop.f32.mrb[37].mxu1 }
0x115b   :  { %v3682_v7 = vcombine.low %v3602_v57, %v3604_v4  ;;  %v3683_v13 = vcombine.low %v3673_v0, %v3675_v5  ;;  %v3955_v57 = vld [vmem:[#allocation13 + $0x58] sm:$0xff]  ;;  %v3956_v4 = vld [vmem:[#allocation13 + $0x60] sm:$0xff]  ;;  %v3957_v5 = vld [vmem:[#allocation13 + $0x68] sm:$0xff] }
0x115c   :  { %v5452_v0 = vpack.c.bf16 %v3955_v57, %v3954_v56 }
0x115d   :  { %v3690_v18 = vrot.slane %v3682_v7, %v6133_v17  ;;  %v3697_v24 = vrot.slane %v3683_v13, %v6133_v17  ;;  %v5456_v7 = vpack.c.bf16 %v3957_v5, %v3956_v4  ;;  %v3958_v13 = vld [vmem:[#allocation13 + $0x70] sm:$0xff] }
0x115f   :  { %v3698_v12 = vcombine.low %v3690_v18, %v3697_v24  ;;  %v3959_v18 = vld [vmem:[#allocation13 + $0x78] sm:$0xff] }
0x1160   :  { %v5460_v24 = vpack.c.bf16 %v3959_v18, %v3958_v13 }
0x1161   :  { %v3705_v16 = vrot.slane %v3698_v12, %v6133_v17  ;;  %v4229_v25 = vpop.f32.mrb[38].mxu0 }
0x1162   :  { %v3797_v19 = vpop.f32.mrb[39].mxu0  ;;  %v3810_v35 = vsel %vm3806_vm0, %v4229_v25, -inf }
0x1163   :  { %v3707_v28 = vadd.f32 %v3705_v16, %v3535_v11  ;;  %v3807_v63 = vsel %vm3806_vm0, %v3797_v19, -inf }
0x1164   :  { %3808 = vmax.xlane.f32.xlu0 %v3807_v63 }
0x1165   :  { %v4088_v33 = vmul.f32 -1.442695, %v3707_v28  ;;  %v3715_v30 = vrot.slane %v3707_v28, 3 }
0x1167   :  { %5598 = vpow2.f32 %v4088_v33 }
0x1168   :  { %3811 = vmax.xlane.f32.xlu0 %v3810_v35 }
0x1171   :  { %v5599_v34 = vpop.eup %5598 }
0x1172   :  { %v3711_v42 = vadd.f32 1.0, %v5599_v34 }
0x1174   :  { %5600 = vrcp.f32 %v3711_v42 }
0x1175   :  { %5602 = vtanh.f32 %v3715_v30 }
0x117e   :  { %v5601_v45 = vpop.eup %5600 }
0x117f   :  { %v3719_v32 = vrot.slane %v5601_v45, 1  ;;  %v5603_v17 = vpop.eup %5602  ;;  %v3725_v52 = vrot.slane %v5601_v45, 2 }
0x1180   :  { %v3722_v44 = vmul.f32 %v5603_v17, %v5601_v45 }
0x1181   :  { %v3721_v15 = vmul.f32 %v3719_v32, %v3528_v36  ;;  %v3951_v36 = vld [vmem:[#allocation13 + $0x38] sm:$0xff] }
0x1182   :  { %v5444_v40 = vpack.c.bf16 %v3951_v36, %v3950_v29 }
0x1183   :  { %v3723_v27 = vadd.f32 %v3722_v44, %v3721_v15 }
0x1184   :  { %5445 = vmatprep.subr.bf16.mxu1 %v5444_v40 }
0x1185   :  { %5604 = vtanh.f32 %v3723_v27  ;;  %5447 = vmatpush3.bf16.msra.mxu1 %v5444_v40 }
0x1186   :  { %5449 = vmatprep.subr.bf16.mxu1 %v5448_v26 }
0x1189   :  { %5451 = vmatpush3.bf16.msra.mxu1 %v5448_v26 }
0x118a   :  { %5453 = vmatprep.subr.bf16.mxu1 %v5452_v0 }
0x118d   :  { %5455 = vmatpush3.bf16.msra.mxu1 %v5452_v0 }
0x118e   :  { %5457 = vmatprep.subr.bf16.mxu1 %v5456_v7 }
0x118f   :  { %v5605_v31 = vpop.eup %5604 }
0x1190   :  { %v3727_v47 = vmul.f32 %v5605_v31, %v3725_v52 }
0x1191   :  { %5459 = vmatpush3.bf16.msra.mxu1 %v5456_v7 }
0x1192   :  { %3728 = vst [vmem:[#allocation3 + $0xf] sm:$0x1] %v3727_v47  ;;  %5461 = vmatprep.subr.bf16.mxu1 %v5460_v24 }
0x1195   :  { %5463 = vmatpush3.bf16.msra.mxu1 %v5460_v24 }
0x1199   :  { %v3730_v48 = vld [vmem:[#allocation3 + $0x8] sm:$0xff] }
0x119a   :  { %v5428_v59 = vpack.c.bf16 %v3730_v48, %v3729_v54 }
0x119c   :  { %5429 = vmatprep.subr.bf16.mxu0 %v5428_v59 }
0x119d   :  { %5431 = vmatpush3.bf16.msra.mxu0 %v5428_v59 }
0x11f1   :  { %v3809_v53 = vpop.xlane.xlu0 %3808 }
0x11f2   :  { %v3813_v2 = vsub.f32 %v3797_v19, %v3809_v53 }
0x11f4   :  { %v3815_v58 = vmul.f32 1.442695, %v3813_v2 }
0x11f5   :  { %v3812_v6 = vpop.xlane.xlu0 %3811 }
0x11f6   :  { %5606 = vpow2.f32 %v3815_v58  ;;  %v3814_v1 = vsub.f32 %v4229_v25, %v3812_v6 }
0x11f8   :  { %v3817_v22 = vmul.f32 1.442695, %v3814_v1 }
0x11fa   :  { %5608 = vpow2.f32 %v3817_v22 }
0x1200   :  { %v5607_v37 = vpop.eup %5606 }
0x1201   :  { %v3819_v38 = vsel %vm3806_vm0, %v5607_v37, 0.0 }
0x1202   :  { %3820 = vadd.xlane.f32.xlu1 %v3819_v38 }
0x1204   :  { %v5609_v39 = vpop.eup %5608 }
0x1205   :  { %v3822_v43 = vsel %vm3806_vm0, %v5609_v39, 0.0 }
0x1206   :  { %3823 = vadd.xlane.f32.xlu1 %v3822_v43 }
0x128f   :  { %v3821_v49 = vpop.xlane.xlu1 %3820 }
0x1290   :  { %5610 = vrcp.f32 %v3821_v49 }
0x1293   :  { %v3824_v50 = vpop.xlane.xlu1 %3823 }
0x1294   :  { %5612 = vrcp.f32 %v3824_v50 }
0x129a   :  { %v5611_v51 = vpop.eup %5610 }
0x129b   :  { %v3827_v55 = vmul.f32 %v5611_v51, %v5607_v37 }
0x129d   :  { %3831 = vxpose.xlu0.b32.start [1/2] (short) (narrow) %v3827_v55, 16  ;;  %3829 = vst.msk [vmem:[#allocation16] sm:$0xff] %vm3806_vm0, %v3827_v55 }
0x129e   :  { %v5613_v60 = vpop.eup %5612 }
0x129f   :  { %v3828_v61 = vmul.f32 %v5613_v60, %v5609_v39 }
0x12a1   :  { %3832 = vxpose.xlu0.b32.end [2/2] (short) (narrow) %v3828_v61, 16  ;;  %3830 = vst.msk [vmem:[#allocation16 + $0x8] sm:$0xff] %vm3806_vm0, %v3828_v61 }
0x131d   :  { %v3847_v12 = vpop.trf.xlu0 }
0x131e   :  { %4234 = vmatprep.mubr.msk.f32.mxu0 %vm3806_vm0, %v3847_v12 }
0x1321   :  { %v3848_v16 = vpop.trf.xlu0 }
0x1322   :  { %4235 = vmatmul.mubr.msk.f32.vlgmr.msra.gmra.mrb[40].mxu0 %vm3806_vm0, %v3848_v16 }
0x13f5   :  { %v4236_v25 = vpop.f32.mrb[40].mxu0 }
0x13f6   :  { %v3935_v11 = vpop.f32.mrb[41].mxu0 }
0x13f7   :  { %4269 = vmatprep.mubr.f32.mxu1 %v3935_v11 }
0x13f8   :  { %4270 = vmatmul.mubr.f32.vlgmr.msra.gmra.mrb[38].mxu1 %v4236_v25 }
0x13f9   :  { %5757 = shalt.err (!%p5754_p10)
}
0x13fa   :  { %s5758_s21 = scalar_lea.hbm %s6763_s8, 256 }
0x13fb   :  { %p5759_p11 = scmp.ne.s32.totalorder %s6763_s8, %s5758_s21  ;;  %p5762_p12 = scmp.lt.u32.totalorder %s5758_s21, %s6763_s8 }
0x13fd   :  { %p5764_p13 = pnand %p5762_p12, %p5759_p11 }
0x13ff   :  { %5767 = shalt.err (!%p5764_p13)
}
0x1400   :  { %4060 = dma.vmem_to_hbm [thread:$0]  %s4055_s15, 256, %s6763_s8, [#allocation17], %s5804_s17, %s5804_s17, %s5805_s18  }
0x1401   :  { %s5815_s2 = smov [#allocation15]  }
0x1402   :  { %s4042_s14 = sshll.u32 %s5815_s2, 4  ;;  %s4043_s14 = int_to_ptr.vmem [resolvable:$true] %s4042_s14 }
0x1403   :  { %s5768_s26 = scalar_lea.vmem %s4043_s14, 256  ;;  %p5773_p1 = scmp.lt.s32.totalorder %s4043_s14, %s4043_s14 }
0x1404   :  { %p5769_p0 = scmp.ne.s32.totalorder %s4043_s14, %s5768_s26  ;;  %p5774_p2 = scmp.lt.s32.totalorder %s5768_s26, %s5768_s26 }
0x1406   :  { %p5775_p3 = por %p5774_p2, %p5773_p1 }
0x1408   :  { %p5776_p4 = pnand %p5775_p3, %p5769_p0 }
0x14cb   :  { %v4271_v19 = vpop.f32.mrb[38].mxu1 }
0x14cc   :  { %4036 = vst [vmem:[#allocation15 + $0x8] sm:$0xff] %v4271_v19  ;;  %v4026_v28 = vpop.f32.mrb[39].mxu1 }
0x14cd   :  { %4035 = vst [vmem:[#allocation15] sm:$0xff] %v4026_v28 }
0x14ce   :  { %5779 = shalt.err (!%p5776_p4)
}
0x14cf   :  { %s5780_s9 = scalar_lea.hbm %s6762_s7, 256 }
0x14d0   :  { %p5781_p5 = scmp.ne.s32.totalorder %s6762_s7, %s5780_s9  ;;  %p5784_p6 = scmp.lt.u32.totalorder %s5780_s9, %s6762_s7 }
0x14d2   :  { %p5786_p7 = pnand %p5784_p6, %p5781_p5 }
0x14d4   :  { %5789 = shalt.err (!%p5786_p7)
}
0x14d5   :  { %4048 = dma.vmem_to_hbm [thread:$0]  %s4043_s14, 256, %s6762_s7, [#allocation6], %s5804_s17, %s5804_s17, %s5805_s18  }
0x14d6   :  { %5798 = dma.done.wait [#allocation6], 256  }
0x14d7   :  { %5799 = vsyncadd [#allocation6], 4294967040 }
0x14d8   :  { %5800 = dma.done.wait [#allocation17], 256  }
0x14d9   :  { %5801 = vsyncadd [#allocation17], 4294967040 }
0x14da   :  { %4067 = vsyncpa [#allocation5], 1 }
0x14db   :  { %4068 = vsyncpa [#allocation8], 1 }
0x14dc   :  { %4069 = vsyncpa [#allocation11], 1 }
0x14dd   :  { %4070 = vsyncpa [#allocation14], 1 }
0x14de   :  { %4071 = vsyncpa [#allocation6], 1 }
0x14df   :  { %4072 = vsyncpa [#allocation17], 1 }

</bundles_post_ra>
